<compile_context>
chip_gen: v6e
topology: v6e:2x2x1
jax: 0.10.0
libtpu: 0.0.40
codegen_flags: <defaults>
</compile_context>

<pallas_src>
import numpy as np
import jax
import jax.numpy as jnp
from jax.experimental import pallas as pl
from jax.experimental.pallas import tpu as pltpu

BN_EPS = 1e-5
ACT_DTYPE = jnp.bfloat16        # inter-kernel activation dtype


def _vmem():
    return pl.BlockSpec(memory_space=pltpu.MemorySpace.VMEM)


# ---------------------------------------------------------------------------
# In-kernel building blocks (operate on loaded f32 values, NHWC over the batch)
# ---------------------------------------------------------------------------

def _fill_padded(pad_ref, x, p):
    """Write x into the interior of pad_ref and zero only the halo strips."""
    N, H, W, C = x.shape
    Hp, Wp = H + 2 * p, W + 2 * p
    z_rows = jnp.zeros((N, p, Wp, C), jnp.float32)
    pad_ref[:, 0:p, :, :] = z_rows
    pad_ref[:, p + H:Hp, :, :] = z_rows
    z_cols = jnp.zeros((N, Hp, p, C), jnp.float32)
    pad_ref[:, :, 0:p, :] = z_cols
    pad_ref[:, :, p + W:Wp, :] = z_cols
    pad_ref[:, p:p + H, p:p + W, :] = x


def _dw_conv(pad_ref, x, w, K, stride, Ho, Wo):
    """Depthwise KxK conv (BN folded), 'same' padding, optional stride.

    x: (N, H, W, C) f32 value; pad_ref: (N, H+2p, W+2p, C) VMEM scratch;
    w: (K, K, C) f32 value.  Returns (N, Ho, Wo, C) f32.
    """
    p = K // 2
    _fill_padded(pad_ref, x, p)
    acc = None
    for kh in range(K):
        for kw in range(K):
            if stride == 1:
                tap = pad_ref[:, kh:kh + Ho, kw:kw + Wo, :]
            else:
                tap = pad_ref[:, pl.ds(kh, Ho, stride=stride),
                              pl.ds(kw, Wo, stride=stride), :]
            term = tap * w[kh, kw, :]
            acc = term if acc is None else acc + term
    return acc


def _conv1x1(x, w_bf16, b):
    """1x1 conv (BN folded) as an MXU matmul over the flattened spatial dims."""
    lead = x.shape[:-1]
    m = int(np.prod(lead))
    x2 = x.reshape(m, x.shape[-1]).astype(jnp.bfloat16)
    y = jnp.dot(x2, w_bf16, preferred_element_type=jnp.float32) + b
    return y.reshape(lead + (w_bf16.shape[-1],))


def _ghost(x, pw, pb, dww, dwb, fs, fb, pad_ref, relu):
    """RepGhostModule: 1x1 conv+BN(+ReLU) -> dw3x3+BN + fusion-BN(identity) (+ReLU)."""
    x1 = _conv1x1(x, pw, pb)
    if relu:
        x1 = jnp.maximum(x1, 0.0)
    _, H, W, _ = x1.shape
    x2 = _dw_conv(pad_ref, x1, dww, 3, 1, H, W) + dwb
    x2 = x2 + x1 * fs + fb                       # re-param fusion BN branch
    if relu:
        x2 = jnp.maximum(x2, 0.0)
    return x2


def _se(x, wr, br, we, be):
    """SqueezeExcite: avgpool -> reduce(+ReLU) -> expand -> hard_sigmoid gate."""
    N, Ho, Wo, C = x.shape
    pooled = jnp.sum(x.reshape(N, Ho * Wo, C), axis=1) * (1.0 / (Ho * Wo))   # (N, C)
    r = jnp.dot(pooled.astype(jnp.bfloat16), wr,
                preferred_element_type=jnp.float32) + br
    r = jnp.maximum(r, 0.0)
    e = jnp.dot(r.astype(jnp.bfloat16), we,
                preferred_element_type=jnp.float32) + be
    gate = jnp.clip(e + 3.0, 0.0, 6.0) * (1.0 / 6.0)                          # hard_sigmoid
    return x * gate[:, None, None, :]


# ---------------------------------------------------------------------------
# Stem conv (3x3, stride 2, BN folded, ReLU) — im2col + one MXU matmul
# ---------------------------------------------------------------------------

def _stem_kernel(x_ref, w_ref, b_ref, o_ref, pad_ref, col_ref):
    x = x_ref[...].astype(jnp.float32)                # (N, H, W, 3)
    N, H, W, Cin = x.shape
    Ho, Wo = o_ref.shape[1], o_ref.shape[2]
    cout = o_ref.shape[3]
    K, stride, p = 3, 2, 1
    _fill_padded(pad_ref, x, p)
    for kh in range(K):
        for kw in range(K):
            t = (kh * K + kw) * Cin
            col_ref[:, :, :, t:t + Cin] = pad_ref[:, pl.ds(kh, Ho, stride=stride),
                                                  pl.ds(kw, Wo, stride=stride), :]
    cols = col_ref[...].reshape(N * Ho * Wo, K * K * Cin)
    y = jnp.dot(cols.astype(jnp.bfloat16), w_ref[...],
                preferred_element_type=jnp.float32) + b_ref[...]
    y = jnp.maximum(y, 0.0)
    o_ref[...] = y.reshape(N, Ho, Wo, cout).astype(o_ref.dtype)


def stem_conv(x, w, b):
    N, H, W, Cin = x.shape
    cout = w.shape[-1]
    Ho = (H + 2 - 3) // 2 + 1
    Wo = (W + 2 - 3) // 2 + 1
    return pl.pallas_call(
        _stem_kernel,
        out_shape=jax.ShapeDtypeStruct((N, Ho, Wo, cout), ACT_DTYPE),
        in_specs=[_vmem()] * 3,
        out_specs=_vmem(),
        scratch_shapes=[pltpu.VMEM((N, H + 2, W + 2, Cin), jnp.float32),
                        pltpu.VMEM((N, Ho, Wo, 9 * Cin), jnp.float32)],
    )(x, w, b)


# ---------------------------------------------------------------------------
# Fully fused RepGhost bottleneck (one pallas_call per bottleneck)
# ---------------------------------------------------------------------------

def _make_bneck_kernel(K, stride, has_se, has_sc):
    def kernel(*refs):
        it = iter(refs)
        x_ref = next(it)
        g1 = tuple(next(it) for _ in range(6))
        if stride > 1:
            dw_w, dw_b = next(it), next(it)
        if has_se:
            se_wr, se_br, se_we, se_be = (next(it) for _ in range(4))
        g2 = tuple(next(it) for _ in range(6))
        if has_sc:
            sc_dw, sc_db, sc_pw, sc_pb = (next(it) for _ in range(4))
        o_ref = next(it)
        pad_g1 = next(it)
        pad_g2 = next(it)
        if stride > 1:
            pad_dw = next(it)
        if has_sc:
            pad_sc = next(it)

        x = x_ref[...].astype(jnp.float32)                 # (N, H, W, Cin)
        Ho, Wo = o_ref.shape[1], o_ref.shape[2]

        # ghost1 (ReLU)
        x1 = _ghost(x, *(r[...] for r in g1), pad_g1, True)

        # strided depthwise conv + BN (only when stride > 1)
        if stride > 1:
            xs = _dw_conv(pad_dw, x1, dw_w[...], K, stride, Ho, Wo) + dw_b[...]
        else:
            xs = x1

        # squeeze-excite
        if has_se:
            xs = _se(xs, se_wr[...], se_br[...], se_we[...], se_be[...])

        # ghost2 (no ReLU)
        y = _ghost(xs, *(r[...] for r in g2), pad_g2, False)

        # shortcut branch + residual add (fused, no extra HBM pass)
        if has_sc:
            sc = _dw_conv(pad_sc, x, sc_dw[...], K, stride, Ho, Wo) + sc_db[...]
            sc = _conv1x1(sc, sc_pw[...], sc_pb[...])
        else:
            sc = x
        o_ref[...] = (y + sc).astype(o_ref.dtype)
    return kernel


def _bneck_params_list(bp, stride, has_se, has_sc):
    g1, g2 = bp["ghost1"], bp["ghost2"]
    args = [g1["pw"], g1["pb"], g1["dw"], g1["db"], g1["fs"], g1["fb"]]
    if stride > 1:
        args += [bp["dw_w"], bp["dw_b"]]
    if has_se:
        args += [bp["se_wr"], bp["se_br"], bp["se_we"], bp["se_be"]]
    args += [g2["pw"], g2["pb"], g2["dw"], g2["db"], g2["fs"], g2["fb"]]
    if has_sc:
        args += [bp["sc_dw"], bp["sc_db"], bp["sc_pw"], bp["sc_pb"]]
    return args


def bottleneck_fused(x, bp):
    K, s, has_se, has_sc, hc, oc = bp["spec"]
    N, H, W, Cin = x.shape
    p = K // 2
    if s > 1:
        Ho = (H + 2 * p - K) // s + 1
        Wo = (W + 2 * p - K) // s + 1
    else:
        Ho, Wo = H, W
    params = _bneck_params_list(bp, s, has_se, has_sc)
    scratch = [pltpu.VMEM((N, H + 2, W + 2, hc), jnp.float32),      # ghost1 dw pad
               pltpu.VMEM((N, Ho + 2, Wo + 2, oc), jnp.float32)]    # ghost2 dw pad
    if s > 1:
        scratch.append(pltpu.VMEM((N, H + 2 * p, W + 2 * p, hc), jnp.float32))
    if has_sc:
        scratch.append(pltpu.VMEM((N, H + 2 * p, W + 2 * p, Cin), jnp.float32))
    return pl.pallas_call(
        _make_bneck_kernel(K, s, has_se, has_sc),
        out_shape=jax.ShapeDtypeStruct((N, Ho, Wo, oc), ACT_DTYPE),
        in_specs=[_vmem()] * (1 + len(params)),
        out_specs=_vmem(),
        scratch_shapes=scratch,
    )(x, *params)


# ---------------------------------------------------------------------------
# Tail ConvBnAct + global pool + conv_head + classifier (one kernel)
# ---------------------------------------------------------------------------

def _head_kernel(x_ref, tw_ref, tb_ref, hw_ref, hb_ref, cw_ref, cb_ref, o_ref):
    x = x_ref[...].astype(jnp.float32)                    # (N, H, W, C)
    N, H, W, C = x.shape
    # tail 1x1 ConvBnAct (BN folded) + ReLU, on the MXU
    t = jnp.dot(x.reshape(N * H * W, C).astype(jnp.bfloat16), tw_ref[...],
                preferred_element_type=jnp.float32) + tb_ref[...]
    t = jnp.maximum(t, 0.0)
    tail_c = t.shape[-1]
    # global average pool
    pooled = jnp.sum(t.reshape(N, H * W, tail_c), axis=1) * (1.0 / (H * W))   # (N, tail_c)
    # conv_head (1x1 w/ bias) + ReLU
    h = jnp.dot(pooled.astype(jnp.bfloat16), hw_ref[...],
                preferred_element_type=jnp.float32) + hb_ref[...]
    h = jnp.maximum(h, 0.0)
    # TODO(synk): F.dropout(p=0.2) is stochastic only in training; eval-mode identity.
    y = jnp.dot(h.astype(jnp.bfloat16), cw_ref[...],
                preferred_element_type=jnp.float32) + cb_ref[...]
    o_ref[...] = y.astype(o_ref.dtype)


def head_forward(x, params):
    N = x.shape[0]
    ncls_pad = params["cls_w"].shape[1]
    args = [x, params["tail_w"], params["tail_b"], params["head_w"],
            params["head_b"], params["cls_w"], params["cls_b"]]
    return pl.pallas_call(
        _head_kernel,
        out_shape=jax.ShapeDtypeStruct((N, ncls_pad), jnp.float32),
        in_specs=[_vmem()] * len(args),
        out_specs=_vmem(),
    )(*args)


# ---------------------------------------------------------------------------
# Parameter construction (deterministic, synthetic; eval-mode BN folded)
# ---------------------------------------------------------------------------

def _make_divisible(v, divisor, min_value=None):
    if min_value is None:
        min_value = divisor
    new_v = max(min_value, int(v + divisor / 2) // divisor * divisor)
    if new_v < 0.9 * v:
        new_v += divisor
    return new_v


def _rnd(key, shape, scale=0.1):
    return jax.random.normal(key, shape, jnp.float32) * scale


def _bn_fold(c):
    # BN at init (eval): gamma=1, beta=0, running_mean=0, running_var=1.
    scale = jnp.full((1, c), 1.0 / np.sqrt(1.0 + BN_EPS), jnp.float32)
    bias = jnp.zeros((1, c), jnp.float32)
    return scale, bias


class KeyGen:
    def __init__(self, key, n=512):
        self.keys = jax.random.split(key, n)
        self.i = 0

    def __call__(self):
        k = self.keys[self.i]
        self.i += 1
        return k


def _init_ghost(kg, inp, oup):
    gp = {}
    s1, b1 = _bn_fold(oup)
    gp["pw"] = (_rnd(kg(), (inp, oup)) * s1).astype(jnp.bfloat16)  # 1x1 conv, BN folded
    gp["pb"] = b1
    s2, b2 = _bn_fold(oup)
    gp["dw"] = _rnd(kg(), (3, 3, oup)) * s2                        # depthwise 3x3, BN folded
    gp["db"] = b2
    gp["fs"], gp["fb"] = _bn_fold(oup)                             # re-param fusion BN branch
    return gp


def init_model(key, cfgs, num_classes=10, width=1.0):
    kg = KeyGen(key)
    p = {"num_classes": num_classes}
    out_c = _make_divisible(16 * width, 4)
    ss, sb = _bn_fold(out_c)
    w_stem = _rnd(kg(), (3, 3, 3, out_c)) * ss            # (kh, kw, cin, cout)
    p["stem_w"] = w_stem.reshape(27, out_c).astype(jnp.bfloat16)   # im2col layout
    p["stem_b"] = sb
    in_c = out_c
    blocks = []
    exp_size = 16
    for cfg in cfgs:
        for k, exp_size, c, se_ratio, s in cfg:
            oc = _make_divisible(c * width, 4)
            hc = _make_divisible(exp_size * width, 4)
            has_se = se_ratio is not None and se_ratio > 0.0
            has_sc = not (in_c == oc and s == 1)
            bp = {"spec": (k, s, has_se, has_sc, hc, oc)}
            bp["ghost1"] = _init_ghost(kg, in_c, hc)
            if s > 1:
                ds_, db_ = _bn_fold(hc)
                bp["dw_w"] = _rnd(kg(), (k, k, hc)) * ds_
                bp["dw_b"] = db_
            if has_se:
                rc = _make_divisible(hc * se_ratio, 4)
                bp["se_wr"] = _rnd(kg(), (hc, rc)).astype(jnp.bfloat16)
                bp["se_br"] = _rnd(kg(), (1, rc), 0.01)
                bp["se_we"] = _rnd(kg(), (rc, hc)).astype(jnp.bfloat16)
                bp["se_be"] = _rnd(kg(), (1, hc), 0.01)
            bp["ghost2"] = _init_ghost(kg, hc, oc)
            if has_sc:
                sds, sdb = _bn_fold(in_c)
                bp["sc_dw"] = _rnd(kg(), (k, k, in_c)) * sds
                bp["sc_db"] = sdb
                sps, spb = _bn_fold(oc)
                bp["sc_pw"] = (_rnd(kg(), (in_c, oc)) * sps).astype(jnp.bfloat16)
                bp["sc_pb"] = spb
            blocks.append(bp)
            in_c = oc
    p["blocks"] = blocks
    tail_c = _make_divisible(exp_size * width * 2, 4)
    ts, tb = _bn_fold(tail_c)
    p["tail_w"] = (_rnd(kg(), (in_c, tail_c)) * ts).astype(jnp.bfloat16)
    p["tail_b"] = tb
    head_c = 1280
    p["head_w"] = _rnd(kg(), (tail_c, head_c), 0.05).astype(jnp.bfloat16)
    p["head_b"] = _rnd(kg(), (1, head_c), 0.01)
    ncls_pad = ((num_classes + 127) // 128) * 128         # lane-dense classifier output
    cls_w = jnp.zeros((head_c, ncls_pad), jnp.float32)
    cls_w = cls_w.at[:, :num_classes].set(_rnd(kg(), (head_c, num_classes), 0.05))
    p["cls_w"] = cls_w.astype(jnp.bfloat16)
    cls_b = jnp.zeros((1, ncls_pad), jnp.float32)
    cls_b = cls_b.at[:, :num_classes].set(_rnd(kg(), (1, num_classes), 0.01))
    p["cls_b"] = cls_b
    return p


# ---------------------------------------------------------------------------
# Forward pass (mirrors RepGhostNet.forward, eval mode)
# ---------------------------------------------------------------------------

def repghostnet_forward(x_nchw, params):
    x = jnp.transpose(x_nchw, (0, 2, 3, 1)).astype(jnp.float32)   # NCHW -> NHWC
    x = stem_conv(x, params["stem_w"], params["stem_b"])
    for bp in params["blocks"]:
        x = bottleneck_fused(x, bp)
    logits = head_forward(x, params)
    return logits[:, :params["num_classes"]]


# ---------------------------------------------------------------------------
# Main
# ---------------------------------------------------------------------------

if __name__ == "__main__":
    # small RepGhostNet config: (kernel, exp_size, out_channels, se_ratio, stride)
    cfgs = [
        [[3, 8, 8, 0, 1]],
        [[3, 24, 12, 0, 2]],
        [[3, 24, 12, 0.25, 1]],
        [[5, 48, 16, 0.25, 2]],
    ]
    root = jax.random.PRNGKey(0)
    k_params, k_x = jax.random.split(root)
    params = init_model(k_params, cfgs, num_classes=10, width=1.0)

    x = jax.random.normal(k_x, (2, 3, 32, 32), jnp.float32)   # NCHW like PyTorch
    out = repghostnet_forward(x, params)
    out = jax.block_until_ready(out)
    assert out.shape == (2, 10), out.shape
    assert bool(jnp.all(jnp.isfinite(out)))
    print("KERNEL_OK")
</pallas_src>

<mosaic_0001>
module attributes {stable_mosaic.version = 11 : i64} {
  func.func @_stem_kernel(%arg0: memref<2x32x32x3xf32, #tpu.memory_space<vmem>>, %arg1: memref<27x16xbf16, #tpu.memory_space<vmem>>, %arg2: memref<1x16xf32, #tpu.memory_space<vmem>>, %arg3: memref<2x16x16x16xbf16, #tpu.memory_space<vmem>>, %arg4: memref<2x34x34x3xf32, #tpu.memory_space<vmem>>, %arg5: memref<2x16x16x27xf32, #tpu.memory_space<vmem>>) attributes {dimension_semantics = [], scalar_prefetch = 0 : i64, scratch_operands = 2 : i64, tpu.core_type = #tpu.core_type<tc>} {
    %c0 = arith.constant 0 : index
    %c0_0 = arith.constant 0 : index
    %c0_1 = arith.constant 0 : index
    %c0_2 = arith.constant 0 : index
    %0 = vector.load %arg0[%c0, %c0_0, %c0_1, %c0_2] : memref<2x32x32x3xf32, #tpu.memory_space<vmem>>, vector<2x32x32x3xf32>
    %cst = arith.constant 0.000000e+00 : f32
    %1 = vector.broadcast %cst : f32 to vector<2x1x34x3xf32>
    %c0_3 = arith.constant 0 : index
    %c0_4 = arith.constant 0 : index
    %c0_5 = arith.constant 0 : index
    %c0_6 = arith.constant 0 : index
    %2 = vector.load %arg4[%c0_3, %c0_4, %c0_5, %c0_6] : memref<2x34x34x3xf32, #tpu.memory_space<vmem>>, vector<2x1x34x3xf32>
    tpu.vector_store %arg4[%c0_3, %c0_4, %c0_5, %c0_6], %1 {strides = array<i32>} : memref<2x34x34x3xf32, #tpu.memory_space<vmem>>, vector<2x1x34x3xf32>,
    %c0_7 = arith.constant 0 : index
    %c33 = arith.constant 33 : index
    %c0_8 = arith.constant 0 : index
    %c0_9 = arith.constant 0 : index
    %3 = vector.load %arg4[%c0_7, %c33, %c0_8, %c0_9] : memref<2x34x34x3xf32, #tpu.memory_space<vmem>>, vector<2x1x34x3xf32>
    tpu.vector_store %arg4[%c0_7, %c33, %c0_8, %c0_9], %1 {strides = array<i32>} : memref<2x34x34x3xf32, #tpu.memory_space<vmem>>, vector<2x1x34x3xf32>,
    %cst_10 = arith.constant 0.000000e+00 : f32
    %4 = vector.broadcast %cst_10 : f32 to vector<2x34x1x3xf32>
    %c0_11 = arith.constant 0 : index
    %c0_12 = arith.constant 0 : index
    %c0_13 = arith.constant 0 : index
    %c0_14 = arith.constant 0 : index
    %5 = vector.load %arg4[%c0_11, %c0_12, %c0_13, %c0_14] : memref<2x34x34x3xf32, #tpu.memory_space<vmem>>, vector<2x34x1x3xf32>
    tpu.vector_store %arg4[%c0_11, %c0_12, %c0_13, %c0_14], %4 {strides = array<i32>} : memref<2x34x34x3xf32, #tpu.memory_space<vmem>>, vector<2x34x1x3xf32>,
    %c0_15 = arith.constant 0 : index
    %c0_16 = arith.constant 0 : index
    %c33_17 = arith.constant 33 : index
    %c0_18 = arith.constant 0 : index
    %6 = vector.load %arg4[%c0_15, %c0_16, %c33_17, %c0_18] : memref<2x34x34x3xf32, #tpu.memory_space<vmem>>, vector<2x34x1x3xf32>
    tpu.vector_store %arg4[%c0_15, %c0_16, %c33_17, %c0_18], %4 {strides = array<i32>} : memref<2x34x34x3xf32, #tpu.memory_space<vmem>>, vector<2x34x1x3xf32>,
    %c0_19 = arith.constant 0 : index
    %c1 = arith.constant 1 : index
    %c1_20 = arith.constant 1 : index
    %c0_21 = arith.constant 0 : index
    %7 = vector.load %arg4[%c0_19, %c1, %c1_20, %c0_21] : memref<2x34x34x3xf32, #tpu.memory_space<vmem>>, vector<2x32x32x3xf32>
    tpu.vector_store %arg4[%c0_19, %c1, %c1_20, %c0_21], %0 {strides = array<i32>} : memref<2x34x34x3xf32, #tpu.memory_space<vmem>>, vector<2x32x32x3xf32>,
    %c0_22 = arith.constant 0 : index
    %c0_23 = arith.constant 0 : index
    %c0_24 = arith.constant 0 : index
    %c0_25 = arith.constant 0 : index
    %8 = tpu.strided_load %arg4[%c0_22, %c0_23, %c0_24, %c0_25] {strides = array<i32: 1, 2, 2, 1>} : memref<2x34x34x3xf32, #tpu.memory_space<vmem>>, vector<2x16x16x3xf32>
    %c0_26 = arith.constant 0 : index
    %c0_27 = arith.constant 0 : index
    %c0_28 = arith.constant 0 : index
    %c0_29 = arith.constant 0 : index
    %9 = vector.load %arg5[%c0_26, %c0_27, %c0_28, %c0_29] : memref<2x16x16x27xf32, #tpu.memory_space<vmem>>, vector<2x16x16x3xf32>
    tpu.vector_store %arg5[%c0_26, %c0_27, %c0_28, %c0_29], %8 {strides = array<i32>} : memref<2x16x16x27xf32, #tpu.memory_space<vmem>>, vector<2x16x16x3xf32>,
    %c0_30 = arith.constant 0 : index
    %c0_31 = arith.constant 0 : index
    %c1_32 = arith.constant 1 : index
    %c0_33 = arith.constant 0 : index
    %10 = tpu.strided_load %arg4[%c0_30, %c0_31, %c1_32, %c0_33] {strides = array<i32: 1, 2, 2, 1>} : memref<2x34x34x3xf32, #tpu.memory_space<vmem>>, vector<2x16x16x3xf32>
    %c0_34 = arith.constant 0 : index
    %c0_35 = arith.constant 0 : index
    %c0_36 = arith.constant 0 : index
    %c3 = arith.constant 3 : index
    %11 = vector.load %arg5[%c0_34, %c0_35, %c0_36, %c3] : memref<2x16x16x27xf32, #tpu.memory_space<vmem>>, vector<2x16x16x3xf32>
    tpu.vector_store %arg5[%c0_34, %c0_35, %c0_36, %c3], %10 {strides = array<i32>} : memref<2x16x16x27xf32, #tpu.memory_space<vmem>>, vector<2x16x16x3xf32>,
    %c0_37 = arith.constant 0 : index
    %c0_38 = arith.constant 0 : index
    %c2 = arith.constant 2 : index
    %c0_39 = arith.constant 0 : index
    %12 = tpu.strided_load %arg4[%c0_37, %c0_38, %c2, %c0_39] {strides = array<i32: 1, 2, 2, 1>} : memref<2x34x34x3xf32, #tpu.memory_space<vmem>>, vector<2x16x16x3xf32>
    %c0_40 = arith.constant 0 : index
    %c0_41 = arith.constant 0 : index
    %c0_42 = arith.constant 0 : index
    %c6 = arith.constant 6 : index
    %13 = vector.load %arg5[%c0_40, %c0_41, %c0_42, %c6] : memref<2x16x16x27xf32, #tpu.memory_space<vmem>>, vector<2x16x16x3xf32>
    tpu.vector_store %arg5[%c0_40, %c0_41, %c0_42, %c6], %12 {strides = array<i32>} : memref<2x16x16x27xf32, #tpu.memory_space<vmem>>, vector<2x16x16x3xf32>,
    %c0_43 = arith.constant 0 : index
    %c1_44 = arith.constant 1 : index
    %c0_45 = arith.constant 0 : index
    %c0_46 = arith.constant 0 : index
    %14 = tpu.strided_load %arg4[%c0_43, %c1_44, %c0_45, %c0_46] {strides = array<i32: 1, 2, 2, 1>} : memref<2x34x34x3xf32, #tpu.memory_space<vmem>>, vector<2x16x16x3xf32>
    %c0_47 = arith.constant 0 : index
    %c0_48 = arith.constant 0 : index
    %c0_49 = arith.constant 0 : index
    %c9 = arith.constant 9 : index
    %15 = vector.load %arg5[%c0_47, %c0_48, %c0_49, %c9] : memref<2x16x16x27xf32, #tpu.memory_space<vmem>>, vector<2x16x16x3xf32>
    tpu.vector_store %arg5[%c0_47, %c0_48, %c0_49, %c9], %14 {strides = array<i32>} : memref<2x16x16x27xf32, #tpu.memory_space<vmem>>, vector<2x16x16x3xf32>,
    %c0_50 = arith.constant 0 : index
    %c1_51 = arith.constant 1 : index
    %c1_52 = arith.constant 1 : index
    %c0_53 = arith.constant 0 : index
    %16 = tpu.strided_load %arg4[%c0_50, %c1_51, %c1_52, %c0_53] {strides = array<i32: 1, 2, 2, 1>} : memref<2x34x34x3xf32, #tpu.memory_space<vmem>>, vector<2x16x16x3xf32>
    %c0_54 = arith.constant 0 : index
    %c0_55 = arith.constant 0 : index
    %c0_56 = arith.constant 0 : index
    %c12 = arith.constant 12 : index
    %17 = vector.load %arg5[%c0_54, %c0_55, %c0_56, %c12] : memref<2x16x16x27xf32, #tpu.memory_space<vmem>>, vector<2x16x16x3xf32>
    tpu.vector_store %arg5[%c0_54, %c0_55, %c0_56, %c12], %16 {strides = array<i32>} : memref<2x16x16x27xf32, #tpu.memory_space<vmem>>, vector<2x16x16x3xf32>,
    %c0_57 = arith.constant 0 : index
    %c1_58 = arith.constant 1 : index
    %c2_59 = arith.constant 2 : index
    %c0_60 = arith.constant 0 : index
    %18 = tpu.strided_load %arg4[%c0_57, %c1_58, %c2_59, %c0_60] {strides = array<i32: 1, 2, 2, 1>} : memref<2x34x34x3xf32, #tpu.memory_space<vmem>>, vector<2x16x16x3xf32>
    %c0_61 = arith.constant 0 : index
    %c0_62 = arith.constant 0 : index
    %c0_63 = arith.constant 0 : index
    %c15 = arith.constant 15 : index
    %19 = vector.load %arg5[%c0_61, %c0_62, %c0_63, %c15] : memref<2x16x16x27xf32, #tpu.memory_space<vmem>>, vector<2x16x16x3xf32>
    tpu.vector_store %arg5[%c0_61, %c0_62, %c0_63, %c15], %18 {strides = array<i32>} : memref<2x16x16x27xf32, #tpu.memory_space<vmem>>, vector<2x16x16x3xf32>,
    %c0_64 = arith.constant 0 : index
    %c2_65 = arith.constant 2 : index
    %c0_66 = arith.constant 0 : index
    %c0_67 = arith.constant 0 : index
    %20 = tpu.strided_load %arg4[%c0_64, %c2_65, %c0_66, %c0_67] {strides = array<i32: 1, 2, 2, 1>} : memref<2x34x34x3xf32, #tpu.memory_space<vmem>>, vector<2x16x16x3xf32>
    %c0_68 = arith.constant 0 : index
    %c0_69 = arith.constant 0 : index
    %c0_70 = arith.constant 0 : index
    %c18 = arith.constant 18 : index
    %21 = vector.load %arg5[%c0_68, %c0_69, %c0_70, %c18] : memref<2x16x16x27xf32, #tpu.memory_space<vmem>>, vector<2x16x16x3xf32>
    tpu.vector_store %arg5[%c0_68, %c0_69, %c0_70, %c18], %20 {strides = array<i32>} : memref<2x16x16x27xf32, #tpu.memory_space<vmem>>, vector<2x16x16x3xf32>,
    %c0_71 = arith.constant 0 : index
    %c2_72 = arith.constant 2 : index
    %c1_73 = arith.constant 1 : index
    %c0_74 = arith.constant 0 : index
    %22 = tpu.strided_load %arg4[%c0_71, %c2_72, %c1_73, %c0_74] {strides = array<i32: 1, 2, 2, 1>} : memref<2x34x34x3xf32, #tpu.memory_space<vmem>>, vector<2x16x16x3xf32>
    %c0_75 = arith.constant 0 : index
    %c0_76 = arith.constant 0 : index
    %c0_77 = arith.constant 0 : index
    %c21 = arith.constant 21 : index
    %23 = vector.load %arg5[%c0_75, %c0_76, %c0_77, %c21] : memref<2x16x16x27xf32, #tpu.memory_space<vmem>>, vector<2x16x16x3xf32>
    tpu.vector_store %arg5[%c0_75, %c0_76, %c0_77, %c21], %22 {strides = array<i32>} : memref<2x16x16x27xf32, #tpu.memory_space<vmem>>, vector<2x16x16x3xf32>,
    %c0_78 = arith.constant 0 : index
    %c2_79 = arith.constant 2 : index
    %c2_80 = arith.constant 2 : index
    %c0_81 = arith.constant 0 : index
    %24 = tpu.strided_load %arg4[%c0_78, %c2_79, %c2_80, %c0_81] {strides = array<i32: 1, 2, 2, 1>} : memref<2x34x34x3xf32, #tpu.memory_space<vmem>>, vector<2x16x16x3xf32>
    %c0_82 = arith.constant 0 : index
    %c0_83 = arith.constant 0 : index
    %c0_84 = arith.constant 0 : index
    %c24 = arith.constant 24 : index
    %25 = vector.load %arg5[%c0_82, %c0_83, %c0_84, %c24] : memref<2x16x16x27xf32, #tpu.memory_space<vmem>>, vector<2x16x16x3xf32>
    tpu.vector_store %arg5[%c0_82, %c0_83, %c0_84, %c24], %24 {strides = array<i32>} : memref<2x16x16x27xf32, #tpu.memory_space<vmem>>, vector<2x16x16x3xf32>,
    %c0_85 = arith.constant 0 : index
    %c0_86 = arith.constant 0 : index
    %c0_87 = arith.constant 0 : index
    %c0_88 = arith.constant 0 : index
    %26 = vector.load %arg5[%c0_85, %c0_86, %c0_87, %c0_88] : memref<2x16x16x27xf32, #tpu.memory_space<vmem>>, vector<2x16x16x27xf32>
    %27 = vector.shape_cast %26 : vector<2x16x16x27xf32> to vector<512x27xf32>
    %28 = arith.truncf %27 : vector<512x27xf32> to vector<512x27xbf16>
    %c0_89 = arith.constant 0 : index
    %c0_90 = arith.constant 0 : index
    %29 = vector.load %arg1[%c0_89, %c0_90] : memref<27x16xbf16, #tpu.memory_space<vmem>>, vector<27x16xbf16>
    %cst_91 = arith.constant dense<0.000000e+00> : vector<512x16xf32>
    %30 = tpu.matmul %28, %29, %cst_91 {dimension_numbers = #tpu.dot_dimension_numbers<[1], [0], [0], [1], [0, 0, 1, 1], [], []>} : vector<512x27xbf16>, vector<27x16xbf16>, vector<512x16xf32> -> vector<512x16xf32>
    %c0_92 = arith.constant 0 : index
    %c0_93 = arith.constant 0 : index
    %31 = vector.load %arg2[%c0_92, %c0_93] : memref<1x16xf32, #tpu.memory_space<vmem>>, vector<1x16xf32>
    %32 = vector.broadcast %31 : vector<1x16xf32> to vector<512x16xf32>
    %33 = arith.addf %30, %32 : vector<512x16xf32>
    %cst_94 = arith.constant 0.000000e+00 : f32
    %34 = vector.broadcast %cst_94 : f32 to vector<512x16xf32>
    %35 = arith.maximumf %33, %34 : vector<512x16xf32>
    %36 = vector.shape_cast %35 : vector<512x16xf32> to vector<2x16x16x16xf32>
    %37 = arith.truncf %36 : vector<2x16x16x16xf32> to vector<2x16x16x16xbf16>
    %c0_95 = arith.constant 0 : index
    %c0_96 = arith.constant 0 : index
    %c0_97 = arith.constant 0 : index
    %c0_98 = arith.constant 0 : index
    %38 = vector.load %arg3[%c0_95, %c0_96, %c0_97, %c0_98] : memref<2x16x16x16xbf16, #tpu.memory_space<vmem>>, vector<2x16x16x16xbf16>
    tpu.vector_store %arg3[%c0_95, %c0_96, %c0_97, %c0_98], %37 {strides = array<i32>} : memref<2x16x16x16xbf16, #tpu.memory_space<vmem>>, vector<2x16x16x16xbf16>,
    return
  }
}

</mosaic_0001>

<bundles_post_ra>
// kernel: tpu_custom_call.1
= control target key start
LH: loop header
LB: loop body
LE: loop exit
PB: predicated region body
PF: predicated region fallthrough
CT: control target
= control target key end

     0   :  { %vm272_vm0 = vcmask 23552   ;;  %vm295_vm1 = vcmask 16384   ;;  %v6071_v2 = vmov 0.0   ;;  %vm277_vm2 = vcmask 17408   ;;  %s6072_s4 = smov 3   ;;  %s8546_s0 = inlined_call_operand.vmem [shape: f32[2,32,32,3], index: 0, kind: input, shape index: {}]   ;;  %s8547_s1 = inlined_call_operand.vmem [shape: bf16[27,16], index: 1, kind: input, shape index: {}]   ;;  %s8548_s2 = inlined_call_operand.vmem [shape: f32[1,16], index: 2, kind: input, shape index: {}]   ;;  %s8549_s3 = inlined_call_operand.hbm [shape: bf16[2,16,16,16], index: 3, kind: output, shape index: {}]  }
   0x1   :  { %v6107_v0 = vld [vmem:[%s8546_s0 + $0x20] sm:$0xff]  ;;  %v6112_v1 = vld [vmem:[%s8546_s0 + $0x28] sm:$0xff]  ;;  %273 = vst.msk [vmem:[#allocation2] sm:$0xff] %vm272_vm0, %v6071_v2  ;;  %274 = vst.msk [vmem:[#allocation2 + $0x8] sm:$0xff] %vm272_vm0, %v6071_v2 }
   0x2   :  { %275 = vst.msk [vmem:[#allocation2 + $0x10] sm:$0xff] %vm272_vm0, %v6071_v2  ;;  %276 = vst.msk [vmem:[#allocation2 + $0x18] sm:$0xff] %vm272_vm0, %v6071_v2  ;;  %v22_v3 = vld [vmem:[%s8546_s0 + $0x30] sm:$0xff]  ;;  %v23_v4 = vld [vmem:[%s8546_s0 + $0x38] sm:$0xff] }
   0x3   :  { %279 = vst.msk [vmem:[#allocation2 + $0x550] sm:$0xff] %vm272_vm0, %v6071_v2  ;;  %280 = vst.msk [vmem:[#allocation2 + $0x558] sm:$0xff] %vm272_vm0, %v6071_v2  ;;  %v28_v5 = vld [vmem:[%s8546_s0 + $0x60] sm:$0xff]  ;;  %v29_v6 = vld [vmem:[%s8546_s0 + $0x68] sm:$0xff] }
   0x4   :  { %281 = vst.msk [vmem:[#allocation2 + $0x560] sm:$0xff] %vm272_vm0, %v6071_v2  ;;  %282 = vst.msk [vmem:[#allocation2 + $0x568] sm:$0xff] %vm272_vm0, %v6071_v2  ;;  %v30_v7 = vld [vmem:[%s8546_s0 + $0x70] sm:$0xff]  ;;  %v31_v8 = vld [vmem:[%s8546_s0 + $0x78] sm:$0xff] }
   0x5   :  { %297 = vst.msk [vmem:[#allocation2 + $0x28] sm:$0x1] %vm295_vm1, %v6071_v2  ;;  %298 = vst.msk [vmem:[#allocation2 + $0x50] sm:$0x1] %vm295_vm1, %v6071_v2  ;;  %v36_v9 = vld [vmem:[%s8546_s0 + $0xa0] sm:$0xff]  ;;  %v37_v10 = vld [vmem:[%s8546_s0 + $0xa8] sm:$0xff] }
   0x6   :  { %299 = vst.msk [vmem:[#allocation2 + $0x78] sm:$0x1] %vm295_vm1, %v6071_v2  ;;  %300 = vst.msk [vmem:[#allocation2 + $0xa0] sm:$0x1] %vm295_vm1, %v6071_v2  ;;  %v38_v11 = vld [vmem:[%s8546_s0 + $0xb0] sm:$0xff]  ;;  %v39_v12 = vld [vmem:[%s8546_s0 + $0xb8] sm:$0xff] }
   0x7   :  { %301 = vst.msk [vmem:[#allocation2 + $0xc8] sm:$0x1] %vm295_vm1, %v6071_v2  ;;  %302 = vst.msk [vmem:[#allocation2 + $0xf0] sm:$0x1] %vm295_vm1, %v6071_v2  ;;  %v44_v13 = vld [vmem:[%s8546_s0 + $0xe0] sm:$0xff]  ;;  %v45_v14 = vld [vmem:[%s8546_s0 + $0xe8] sm:$0xff] }
   0x8   :  { %303 = vst.msk [vmem:[#allocation2 + $0x118] sm:$0x1] %vm295_vm1, %v6071_v2  ;;  %304 = vst.msk [vmem:[#allocation2 + $0x140] sm:$0x1] %vm295_vm1, %v6071_v2  ;;  %v46_v15 = vld [vmem:[%s8546_s0 + $0xf0] sm:$0xff]  ;;  %v47_v16 = vld [vmem:[%s8546_s0 + $0xf8] sm:$0xff] }
   0x9   :  { %305 = vst.msk [vmem:[#allocation2 + $0x168] sm:$0x1] %vm295_vm1, %v6071_v2  ;;  %306 = vst.msk [vmem:[#allocation2 + $0x190] sm:$0x1] %vm295_vm1, %v6071_v2  ;;  %v52_v17 = vld [vmem:[%s8546_s0 + $0x120] sm:$0xff]  ;;  %v53_v18 = vld [vmem:[%s8546_s0 + $0x128] sm:$0xff] }
   0xa   :  { %307 = vst.msk [vmem:[#allocation2 + $0x1b8] sm:$0x1] %vm295_vm1, %v6071_v2  ;;  %308 = vst.msk [vmem:[#allocation2 + $0x1e0] sm:$0x1] %vm295_vm1, %v6071_v2  ;;  %v54_v19 = vld [vmem:[%s8546_s0 + $0x130] sm:$0xff]  ;;  %v55_v20 = vld [vmem:[%s8546_s0 + $0x138] sm:$0xff] }
   0xb   :  { %309 = vst.msk [vmem:[#allocation2 + $0x208] sm:$0x1] %vm295_vm1, %v6071_v2  ;;  %310 = vst.msk [vmem:[#allocation2 + $0x230] sm:$0x1] %vm295_vm1, %v6071_v2  ;;  %v60_v21 = vld [vmem:[%s8546_s0 + $0x160] sm:$0xff]  ;;  %v61_v22 = vld [vmem:[%s8546_s0 + $0x168] sm:$0xff] }
   0xc   :  { %311 = vst.msk [vmem:[#allocation2 + $0x258] sm:$0x1] %vm295_vm1, %v6071_v2  ;;  %312 = vst.msk [vmem:[#allocation2 + $0x280] sm:$0x1] %vm295_vm1, %v6071_v2  ;;  %v62_v23 = vld [vmem:[%s8546_s0 + $0x170] sm:$0xff]  ;;  %v63_v26 = vld [vmem:[%s8546_s0 + $0x178] sm:$0xff] }
   0xd   :  { %313 = vst.msk [vmem:[#allocation2 + $0x2a8] sm:$0x1] %vm295_vm1, %v6071_v2  ;;  %314 = vst.msk [vmem:[#allocation2 + $0x2d0] sm:$0x1] %vm295_vm1, %v6071_v2  ;;  %v881_v24 = vld [vmem:[#allocation2 + $0x1] ss:$2 sm:$0xff] }
   0xe   :  { %315 = vst.msk [vmem:[#allocation2 + $0x2f8] sm:$0x1] %vm295_vm1, %v6071_v2  ;;  %316 = vst.msk [vmem:[#allocation2 + $0x320] sm:$0x1] %vm295_vm1, %v6071_v2  ;;  %1072 = vrot.lane.b32.xlu0 %v881_v24, %s6072_s4  ;;  %v68_v27 = vld [vmem:[%s8546_s0 + $0x1a0] sm:$0xff]  ;;  %v69_v30 = vld [vmem:[%s8546_s0 + $0x1a8] sm:$0xff] }
   0xf   :  { %317 = vst.msk [vmem:[#allocation2 + $0x348] sm:$0x1] %vm295_vm1, %v6071_v2  ;;  %318 = vst.msk [vmem:[#allocation2 + $0x370] sm:$0x1] %vm295_vm1, %v6071_v2  ;;  %v883_v28 = vld [vmem:[#allocation2 + $0x11] ss:$2 sm:$0xff] }
  0x10   :  { %319 = vst.msk [vmem:[#allocation2 + $0x398] sm:$0x1] %vm295_vm1, %v6071_v2  ;;  %320 = vst.msk [vmem:[#allocation2 + $0x3c0] sm:$0x1] %vm295_vm1, %v6071_v2  ;;  %v70_v31 = vld [vmem:[%s8546_s0 + $0x1b0] sm:$0xff]  ;;  %v71_v32 = vld [vmem:[%s8546_s0 + $0x1b8] sm:$0xff] }
  0x11   :  { %321 = vst.msk [vmem:[#allocation2 + $0x3e8] sm:$0x1] %vm295_vm1, %v6071_v2  ;;  %322 = vst.msk [vmem:[#allocation2 + $0x410] sm:$0x1] %vm295_vm1, %v6071_v2  ;;  %v76_v33 = vld [vmem:[%s8546_s0 + $0x1e0] sm:$0xff]  ;;  %v77_v34 = vld [vmem:[%s8546_s0 + $0x1e8] sm:$0xff] }
  0x12   :  { %323 = vst.msk [vmem:[#allocation2 + $0x438] sm:$0x1] %vm295_vm1, %v6071_v2  ;;  %324 = vst.msk [vmem:[#allocation2 + $0x460] sm:$0x1] %vm295_vm1, %v6071_v2  ;;  %1074 = vrot.lane.b32.xlu0 %v883_v28, %s6072_s4  ;;  %v78_v35 = vld [vmem:[%s8546_s0 + $0x1f0] sm:$0xff]  ;;  %v79_v38 = vld [vmem:[%s8546_s0 + $0x1f8] sm:$0xff] }
  0x13   :  { %325 = vst.msk [vmem:[#allocation2 + $0x488] sm:$0x1] %vm295_vm1, %v6071_v2  ;;  %326 = vst.msk [vmem:[#allocation2 + $0x4b0] sm:$0x1] %vm295_vm1, %v6071_v2  ;;  %v84_v39 = vld [vmem:[%s8546_s0 + $0x220] sm:$0xff]  ;;  %v85_v40 = vld [vmem:[%s8546_s0 + $0x228] sm:$0xff] }
  0x14   :  { %327 = vst.msk [vmem:[#allocation2 + $0x4d8] sm:$0x1] %vm295_vm1, %v6071_v2  ;;  %328 = vst.msk [vmem:[#allocation2 + $0x500] sm:$0x1] %vm295_vm1, %v6071_v2  ;;  %v86_v41 = vld [vmem:[%s8546_s0 + $0x230] sm:$0xff]  ;;  %v87_v42 = vld [vmem:[%s8546_s0 + $0x238] sm:$0xff] }
  0x15   :  { %331 = vst.msk [vmem:[#allocation2 + $0x578] sm:$0x1] %vm295_vm1, %v6071_v2  ;;  %332 = vst.msk [vmem:[#allocation2 + $0x5a0] sm:$0x1] %vm295_vm1, %v6071_v2  ;;  %v92_v43 = vld [vmem:[%s8546_s0 + $0x260] sm:$0xff]  ;;  %v93_v45 = vld [vmem:[%s8546_s0 + $0x268] sm:$0xff] }
  0x16   :  { %333 = vst.msk [vmem:[#allocation2 + $0x5c8] sm:$0x1] %vm295_vm1, %v6071_v2  ;;  %334 = vst.msk [vmem:[#allocation2 + $0x5f0] sm:$0x1] %vm295_vm1, %v6071_v2  ;;  %v94_v46 = vld [vmem:[%s8546_s0 + $0x270] sm:$0xff]  ;;  %v95_v48 = vld [vmem:[%s8546_s0 + $0x278] sm:$0xff] }
  0x17   :  { %335 = vst.msk [vmem:[#allocation2 + $0x618] sm:$0x1] %vm295_vm1, %v6071_v2  ;;  %336 = vst.msk [vmem:[#allocation2 + $0x640] sm:$0x1] %vm295_vm1, %v6071_v2  ;;  %v100_v49 = vld [vmem:[%s8546_s0 + $0x2a0] sm:$0xff]  ;;  %v101_v50 = vld [vmem:[%s8546_s0 + $0x2a8] sm:$0xff] }
  0x18   :  { %337 = vst.msk [vmem:[#allocation2 + $0x668] sm:$0x1] %vm295_vm1, %v6071_v2  ;;  %338 = vst.msk [vmem:[#allocation2 + $0x690] sm:$0x1] %vm295_vm1, %v6071_v2  ;;  %v102_v51 = vld [vmem:[%s8546_s0 + $0x2b0] sm:$0xff]  ;;  %v103_v52 = vld [vmem:[%s8546_s0 + $0x2b8] sm:$0xff] }
  0x19   :  { %339 = vst.msk [vmem:[#allocation2 + $0x6b8] sm:$0x1] %vm295_vm1, %v6071_v2  ;;  %340 = vst.msk [vmem:[#allocation2 + $0x6e0] sm:$0x1] %vm295_vm1, %v6071_v2  ;;  %v108_v53 = vld [vmem:[%s8546_s0 + $0x2e0] sm:$0xff]  ;;  %v109_v54 = vld [vmem:[%s8546_s0 + $0x2e8] sm:$0xff] }
  0x1a   :  { %341 = vst.msk [vmem:[#allocation2 + $0x708] sm:$0x1] %vm295_vm1, %v6071_v2  ;;  %342 = vst.msk [vmem:[#allocation2 + $0x730] sm:$0x1] %vm295_vm1, %v6071_v2  ;;  %v110_v56 = vld [vmem:[%s8546_s0 + $0x2f0] sm:$0xff]  ;;  %v111_v57 = vld [vmem:[%s8546_s0 + $0x2f8] sm:$0xff] }
  0x1b   :  { %343 = vst.msk [vmem:[#allocation2 + $0x758] sm:$0x1] %vm295_vm1, %v6071_v2  ;;  %344 = vst.msk [vmem:[#allocation2 + $0x780] sm:$0x1] %vm295_vm1, %v6071_v2  ;;  %v116_v59 = vld [vmem:[%s8546_s0 + $0x320] sm:$0xff]  ;;  %v117_v60 = vld [vmem:[%s8546_s0 + $0x328] sm:$0xff] }
  0x1c   :  { %345 = vst.msk [vmem:[#allocation2 + $0x7a8] sm:$0x1] %vm295_vm1, %v6071_v2  ;;  %346 = vst.msk [vmem:[#allocation2 + $0x7d0] sm:$0x1] %vm295_vm1, %v6071_v2  ;;  %v118_v61 = vld [vmem:[%s8546_s0 + $0x330] sm:$0xff]  ;;  %v119_v62 = vld [vmem:[%s8546_s0 + $0x338] sm:$0xff] }
  0x1d   :  { %347 = vst.msk [vmem:[#allocation2 + $0x7f8] sm:$0x1] %vm295_vm1, %v6071_v2  ;;  %348 = vst.msk [vmem:[#allocation2 + $0x820] sm:$0x1] %vm295_vm1, %v6071_v2  ;;  %v124_v63 = vld [vmem:[%s8546_s0 + $0x360] sm:$0xff]  ;;  %v167_v24 = vld [vmem:[%s8546_s0 + $0x4b8] sm:$0xff] }
  0x1e   :  { %349 = vst.msk [vmem:[#allocation2 + $0x848] sm:$0x1] %vm295_vm1, %v6071_v2  ;;  %350 = vst.msk [vmem:[#allocation2 + $0x870] sm:$0x1] %vm295_vm1, %v6071_v2  ;;  %v174_v28 = vld [vmem:[%s8546_s0 + $0x4f0] sm:$0xff] }
  0x1f   :  { %351 = vst.msk [vmem:[#allocation2 + $0x898] sm:$0x1] %vm295_vm1, %v6071_v2  ;;  %352 = vst.msk [vmem:[#allocation2 + $0x8c0] sm:$0x1] %vm295_vm1, %v6071_v2 }
  0x20   :  { %353 = vst.msk [vmem:[#allocation2 + $0x8e8] sm:$0x1] %vm295_vm1, %v6071_v2  ;;  %354 = vst.msk [vmem:[#allocation2 + $0x910] sm:$0x1] %vm295_vm1, %v6071_v2 }
  0x21   :  { %355 = vst.msk [vmem:[#allocation2 + $0x938] sm:$0x1] %vm295_vm1, %v6071_v2  ;;  %356 = vst.msk [vmem:[#allocation2 + $0x960] sm:$0x1] %vm295_vm1, %v6071_v2 }
  0x22   :  { %357 = vst.msk [vmem:[#allocation2 + $0x988] sm:$0x1] %vm295_vm1, %v6071_v2  ;;  %358 = vst.msk [vmem:[#allocation2 + $0x9b0] sm:$0x1] %vm295_vm1, %v6071_v2 }
  0x23   :  { %359 = vst.msk [vmem:[#allocation2 + $0x9d8] sm:$0x1] %vm295_vm1, %v6071_v2  ;;  %360 = vst.msk [vmem:[#allocation2 + $0xa00] sm:$0x1] %vm295_vm1, %v6071_v2 }
  0x24   :  { %361 = vst.msk [vmem:[#allocation2 + $0xa28] sm:$0x1] %vm295_vm1, %v6071_v2  ;;  %362 = vst.msk [vmem:[#allocation2 + $0xa50] sm:$0x1] %vm295_vm1, %v6071_v2 }
  0x25   :  { %437 = vst.msk [vmem:[#allocation2 + $0x51] sm:$0xff] %vm272_vm0, %v6107_v0  ;;  %438 = vst.msk [vmem:[#allocation2 + $0x59] sm:$0xff] %vm272_vm0, %v6112_v1  ;;  %v125_v0 = vld [vmem:[%s8546_s0 + $0x368] sm:$0xff] }
  0x26   :  { %296 = vst.msk [vmem:[#allocation2] sm:$0x1] %vm295_vm1, %v6071_v2  ;;  %330 = vst.msk [vmem:[#allocation2 + $0x550] sm:$0x1] %vm295_vm1, %v6071_v2 }
  0x27   :  { %439 = vst.msk [vmem:[#allocation2 + $0x61] sm:$0xff] %vm272_vm0, %v22_v3  ;;  %440 = vst.msk [vmem:[#allocation2 + $0x69] sm:$0xff] %vm272_vm0, %v23_v4  ;;  %v127_v3 = vld [vmem:[%s8546_s0 + $0x378] sm:$0xff] }
  0x28   :  { %445 = vst.msk [vmem:[#allocation2 + $0xa1] sm:$0xff] %vm272_vm0, %v28_v5  ;;  %446 = vst.msk [vmem:[#allocation2 + $0xa9] sm:$0xff] %vm272_vm0, %v29_v6  ;;  %v132_v5 = vld [vmem:[%s8546_s0 + $0x3a0] sm:$0xff]  ;;  %v133_v6 = vld [vmem:[%s8546_s0 + $0x3a8] sm:$0xff] }
  0x29   :  { %278 = vst.msk [vmem:[#allocation2 + $0x20] sm:$0x3] %vm277_vm2, %v6071_v2  ;;  %283 = vst.msk [vmem:[#allocation2 + $0x570] sm:$0x3] %vm277_vm2, %v6071_v2  ;;  %v126_v2 = vld [vmem:[%s8546_s0 + $0x370] sm:$0xff] }
  0x2a   :  { %447 = vst.msk [vmem:[#allocation2 + $0xb1] sm:$0xff] %vm272_vm0, %v30_v7  ;;  %448 = vst.msk [vmem:[#allocation2 + $0xb9] sm:$0xff] %vm272_vm0, %v31_v8  ;;  %v134_v7 = vld [vmem:[%s8546_s0 + $0x3b0] sm:$0xff]  ;;  %v135_v8 = vld [vmem:[%s8546_s0 + $0x3b8] sm:$0xff] }
  0x2b   :  { %453 = vst.msk [vmem:[#allocation2 + $0xf1] sm:$0xff] %vm272_vm0, %v36_v9  ;;  %454 = vst.msk [vmem:[#allocation2 + $0xf9] sm:$0xff] %vm272_vm0, %v37_v10  ;;  %v148_v10 = vld [vmem:[%s8546_s0 + $0x420] sm:$0xff] }
  0x2c   :  { %455 = vst.msk [vmem:[#allocation2 + $0x101] sm:$0xff] %vm272_vm0, %v38_v11  ;;  %456 = vst.msk [vmem:[#allocation2 + $0x109] sm:$0xff] %vm272_vm0, %v39_v12  ;;  %v885_v25 = vld [vmem:[#allocation2 + $0x51] ss:$2 sm:$0xff]  ;;  %v149_v12 = vld [vmem:[%s8546_s0 + $0x428] sm:$0xff] }
  0x2d   :  { %461 = vst.msk [vmem:[#allocation2 + $0x141] sm:$0xff] %vm272_vm0, %v44_v13  ;;  %462 = vst.msk [vmem:[#allocation2 + $0x149] sm:$0xff] %vm272_vm0, %v45_v14  ;;  %1076 = vrot.lane.b32.xlu1 %v885_v25, %s6072_s4  ;;  %v150_v13 = vld [vmem:[%s8546_s0 + $0x430] sm:$0xff]  ;;  %v151_v14 = vld [vmem:[%s8546_s0 + $0x438] sm:$0xff] }
  0x2e   :  { %463 = vst.msk [vmem:[#allocation2 + $0x151] sm:$0xff] %vm272_vm0, %v46_v15  ;;  %464 = vst.msk [vmem:[#allocation2 + $0x159] sm:$0xff] %vm272_vm0, %v47_v16  ;;  %v887_v29 = vld [vmem:[#allocation2 + $0x61] ss:$2 sm:$0xff] }
  0x2f   :  { %469 = vst.msk [vmem:[#allocation2 + $0x191] sm:$0xff] %vm272_vm0, %v52_v17  ;;  %470 = vst.msk [vmem:[#allocation2 + $0x199] sm:$0xff] %vm272_vm0, %v53_v18  ;;  %v889_v36 = vld [vmem:[#allocation2 + $0xa1] ss:$2 sm:$0xff]  ;;  %v158_v17 = vld [vmem:[%s8546_s0 + $0x470] sm:$0xff] }
  0x30   :  { %471 = vst.msk [vmem:[#allocation2 + $0x1a1] sm:$0xff] %vm272_vm0, %v54_v19  ;;  %472 = vst.msk [vmem:[#allocation2 + $0x1a9] sm:$0xff] %vm272_vm0, %v55_v20  ;;  %1080 = vrot.lane.b32.xlu0 %v889_v36, %s6072_s4  ;;  %v156_v15 = vld [vmem:[%s8546_s0 + $0x460] sm:$0xff]  ;;  %v157_v16 = vld [vmem:[%s8546_s0 + $0x468] sm:$0xff] }
  0x31   :  { %477 = vst.msk [vmem:[#allocation2 + $0x1e1] sm:$0xff] %vm272_vm0, %v60_v21  ;;  %478 = vst.msk [vmem:[#allocation2 + $0x1e9] sm:$0xff] %vm272_vm0, %v61_v22  ;;  %1078 = vrot.lane.b32.xlu1 %v887_v29, %s6072_s4  ;;  %v891_v37 = vld [vmem:[#allocation2 + $0xb1] ss:$2 sm:$0xff]  ;;  %v164_v20 = vld [vmem:[%s8546_s0 + $0x4a0] sm:$0xff] }
  0x32   :  { %479 = vst.msk [vmem:[#allocation2 + $0x1f1] sm:$0xff] %vm272_vm0, %v62_v23  ;;  %480 = vst.msk [vmem:[#allocation2 + $0x1f9] sm:$0xff] %vm272_vm0, %v63_v26  ;;  %v893_v44 = vld [vmem:[#allocation2 + $0xf1] ss:$2 sm:$0xff]  ;;  %v165_v22 = vld [vmem:[%s8546_s0 + $0x4a8] sm:$0xff] }
  0x33   :  { %485 = vst.msk [vmem:[#allocation2 + $0x231] sm:$0xff] %vm272_vm0, %v68_v27  ;;  %486 = vst.msk [vmem:[#allocation2 + $0x239] sm:$0xff] %vm272_vm0, %v69_v30  ;;  %v895_v47 = vld [vmem:[#allocation2 + $0x101] ss:$2 sm:$0xff]  ;;  %v159_v19 = vld [vmem:[%s8546_s0 + $0x478] sm:$0xff] }
  0x34   :  { %487 = vst.msk [vmem:[#allocation2 + $0x241] sm:$0xff] %vm272_vm0, %v70_v31  ;;  %488 = vst.msk [vmem:[#allocation2 + $0x249] sm:$0xff] %vm272_vm0, %v71_v32  ;;  %1084 = vrot.lane.b32.xlu0 %v893_v44, %s6072_s4  ;;  %v897_v55 = vld [vmem:[#allocation2 + $0x141] ss:$2 sm:$0xff]  ;;  %v166_v23 = vld [vmem:[%s8546_s0 + $0x4b0] sm:$0xff] }
  0x35   :  { %493 = vst.msk [vmem:[#allocation2 + $0x281] sm:$0xff] %vm272_vm0, %v76_v33  ;;  %494 = vst.msk [vmem:[#allocation2 + $0x289] sm:$0xff] %vm272_vm0, %v77_v34  ;;  %1082 = vrot.lane.b32.xlu1 %v891_v37, %s6072_s4  ;;  %v899_v58 = vld [vmem:[#allocation2 + $0x151] ss:$2 sm:$0xff]  ;;  %v172_v25 = vld [vmem:[%s8546_s0 + $0x4e0] sm:$0xff] }
  0x36   :  { %495 = vst.msk [vmem:[#allocation2 + $0x291] sm:$0xff] %vm272_vm0, %v78_v35  ;;  %496 = vst.msk [vmem:[#allocation2 + $0x299] sm:$0xff] %vm272_vm0, %v79_v38  ;;  %v901_v1 = vld [vmem:[#allocation2 + $0x191] ss:$2 sm:$0xff]  ;;  %v173_v27 = vld [vmem:[%s8546_s0 + $0x4e8] sm:$0xff] }
  0x37   :  { %501 = vst.msk [vmem:[#allocation2 + $0x2d1] sm:$0xff] %vm272_vm0, %v84_v39  ;;  %502 = vst.msk [vmem:[#allocation2 + $0x2d9] sm:$0xff] %vm272_vm0, %v85_v40  ;;  %v903_v4 = vld [vmem:[#allocation2 + $0x1a1] ss:$2 sm:$0xff]  ;;  %v175_v29 = vld [vmem:[%s8546_s0 + $0x4f8] sm:$0xff] }
  0x38   :  { %503 = vst.msk [vmem:[#allocation2 + $0x2e1] sm:$0xff] %vm272_vm0, %v86_v41  ;;  %504 = vst.msk [vmem:[#allocation2 + $0x2e9] sm:$0xff] %vm272_vm0, %v87_v42  ;;  %1088 = vrot.lane.b32.xlu0 %v897_v55, %s6072_s4  ;;  %v905_v9 = vld [vmem:[#allocation2 + $0x1e1] ss:$2 sm:$0xff]  ;;  %v689_v32 = vld [vmem:[#allocation2] ss:$2 sm:$0xff] }
  0x39   :  { %509 = vst.msk [vmem:[#allocation2 + $0x321] sm:$0xff] %vm272_vm0, %v92_v43  ;;  %510 = vst.msk [vmem:[#allocation2 + $0x329] sm:$0xff] %vm272_vm0, %v93_v45  ;;  %1086 = vrot.lane.b32.xlu1 %v895_v47, %s6072_s4  ;;  %v907_v11 = vld [vmem:[#allocation2 + $0x1f1] ss:$2 sm:$0xff]  ;;  %v180_v30 = vld [vmem:[%s8546_s0 + $0x520] sm:$0xff] }
  0x3a   :  { %511 = vst.msk [vmem:[#allocation2 + $0x331] sm:$0xff] %vm272_vm0, %v94_v46  ;;  %512 = vst.msk [vmem:[#allocation2 + $0x339] sm:$0xff] %vm272_vm0, %v95_v48  ;;  %v909_v18 = vld [vmem:[#allocation2 + $0x231] ss:$2 sm:$0xff]  ;;  %v181_v31 = vld [vmem:[%s8546_s0 + $0x528] sm:$0xff] }
  0x3b   :  { %517 = vst.msk [vmem:[#allocation2 + $0x371] sm:$0xff] %vm272_vm0, %v100_v49  ;;  %518 = vst.msk [vmem:[#allocation2 + $0x379] sm:$0xff] %vm272_vm0, %v101_v50  ;;  %v911_v21 = vld [vmem:[#allocation2 + $0x241] ss:$2 sm:$0xff]  ;;  %v182_v34 = vld [vmem:[%s8546_s0 + $0x530] sm:$0xff] }
  0x3c   :  { %519 = vst.msk [vmem:[#allocation2 + $0x381] sm:$0xff] %vm272_vm0, %v102_v51  ;;  %520 = vst.msk [vmem:[#allocation2 + $0x389] sm:$0xff] %vm272_vm0, %v103_v52  ;;  %1092 = vrot.lane.b32.xlu0 %v901_v1, %s6072_s4  ;;  %v913_v26 = vld [vmem:[#allocation2 + $0x281] ss:$2 sm:$0xff]  ;;  %v183_v35 = vld [vmem:[%s8546_s0 + $0x538] sm:$0xff] }
  0x3d   :  { %525 = vst.msk [vmem:[#allocation2 + $0x3c1] sm:$0xff] %vm272_vm0, %v108_v53  ;;  %526 = vst.msk [vmem:[#allocation2 + $0x3c9] sm:$0xff] %vm272_vm0, %v109_v54  ;;  %1090 = vrot.lane.b32.xlu1 %v899_v58, %s6072_s4  ;;  %v915_v33 = vld [vmem:[#allocation2 + $0x291] ss:$2 sm:$0xff]  ;;  %v188_v36 = vld [vmem:[%s8546_s0 + $0x560] sm:$0xff] }
  0x3e   :  { %527 = vst.msk [vmem:[#allocation2 + $0x3d1] sm:$0xff] %vm272_vm0, %v110_v56  ;;  %528 = vst.msk [vmem:[#allocation2 + $0x3d9] sm:$0xff] %vm272_vm0, %v111_v57  ;;  %v189_v37 = vld [vmem:[%s8546_s0 + $0x568] sm:$0xff]  ;;  %v190_v38 = vld [vmem:[%s8546_s0 + $0x570] sm:$0xff] }
  0x3f   :  { %533 = vst.msk [vmem:[#allocation2 + $0x411] sm:$0xff] %vm272_vm0, %v116_v59  ;;  %534 = vst.msk [vmem:[#allocation2 + $0x419] sm:$0xff] %vm272_vm0, %v117_v60  ;;  %v191_v39 = vld [vmem:[%s8546_s0 + $0x578] sm:$0xff]  ;;  %v196_v41 = vld [vmem:[%s8546_s0 + $0x5a0] sm:$0xff] }
  0x40   :  { %535 = vst.msk [vmem:[#allocation2 + $0x421] sm:$0xff] %vm272_vm0, %v118_v61  ;;  %536 = vst.msk [vmem:[#allocation2 + $0x429] sm:$0xff] %vm272_vm0, %v119_v62  ;;  %1096 = vrot.lane.b32.xlu0 %v905_v9, %s6072_s4  ;;  %v917_v40 = vld [vmem:[#allocation2 + $0x2d1] ss:$2 sm:$0xff]  ;;  %v197_v42 = vld [vmem:[%s8546_s0 + $0x5a8] sm:$0xff] }
  0x41   :  { %541 = vst.msk [vmem:[#allocation2 + $0x461] sm:$0xff] %vm272_vm0, %v124_v63  ;;  %542 = vst.msk [vmem:[#allocation2 + $0x469] sm:$0xff] %vm272_vm0, %v125_v0  ;;  %1094 = vrot.lane.b32.xlu1 %v903_v4, %s6072_s4  ;;  %v919_v43 = vld [vmem:[#allocation2 + $0x2e1] ss:$2 sm:$0xff]  ;;  %v198_v44 = vld [vmem:[%s8546_s0 + $0x5b0] sm:$0xff] }
  0x42   :  { %543 = vst.msk [vmem:[#allocation2 + $0x471] sm:$0xff] %vm272_vm0, %v126_v2  ;;  %544 = vst.msk [vmem:[#allocation2 + $0x479] sm:$0xff] %vm272_vm0, %v127_v3  ;;  %v199_v45 = vld [vmem:[%s8546_s0 + $0x5b8] sm:$0xff]  ;;  %v204_v46 = vld [vmem:[%s8546_s0 + $0x5e0] sm:$0xff] }
  0x43   :  { %549 = vst.msk [vmem:[#allocation2 + $0x4b1] sm:$0xff] %vm272_vm0, %v132_v5  ;;  %550 = vst.msk [vmem:[#allocation2 + $0x4b9] sm:$0xff] %vm272_vm0, %v133_v6  ;;  %v205_v47 = vld [vmem:[%s8546_s0 + $0x5e8] sm:$0xff]  ;;  %v206_v48 = vld [vmem:[%s8546_s0 + $0x5f0] sm:$0xff] }
  0x44   :  { %551 = vst.msk [vmem:[#allocation2 + $0x4c1] sm:$0xff] %vm272_vm0, %v134_v7  ;;  %552 = vst.msk [vmem:[#allocation2 + $0x4c9] sm:$0xff] %vm272_vm0, %v135_v8  ;;  %1100 = vrot.lane.b32.xlu0 %v909_v18, %s6072_s4  ;;  %v921_v49 = vld [vmem:[#allocation2 + $0x321] ss:$2 sm:$0xff]  ;;  %v207_v50 = vld [vmem:[%s8546_s0 + $0x5f8] sm:$0xff] }
  0x45   :  { %565 = vst.msk [vmem:[#allocation2 + $0x5a1] sm:$0xff] %vm272_vm0, %v148_v10  ;;  %566 = vst.msk [vmem:[#allocation2 + $0x5a9] sm:$0xff] %vm272_vm0, %v149_v12  ;;  %1098 = vrot.lane.b32.xlu1 %v907_v11, %s6072_s4  ;;  %v212_v51 = vld [vmem:[%s8546_s0 + $0x620] sm:$0xff]  ;;  %v923_v52 = vld [vmem:[#allocation2 + $0x331] ss:$2 sm:$0xff] }
  0x46   :  { %567 = vst.msk [vmem:[#allocation2 + $0x5b1] sm:$0xff] %vm272_vm0, %v150_v13  ;;  %568 = vst.msk [vmem:[#allocation2 + $0x5b9] sm:$0xff] %vm272_vm0, %v151_v14  ;;  %v213_v53 = vld [vmem:[%s8546_s0 + $0x628] sm:$0xff]  ;;  %v214_v54 = vld [vmem:[%s8546_s0 + $0x630] sm:$0xff] }
  0x47   :  { %573 = vst.msk [vmem:[#allocation2 + $0x5f1] sm:$0xff] %vm272_vm0, %v156_v15  ;;  %574 = vst.msk [vmem:[#allocation2 + $0x5f9] sm:$0xff] %vm272_vm0, %v157_v16  ;;  %v215_v55 = vld [vmem:[%s8546_s0 + $0x638] sm:$0xff]  ;;  %v220_v56 = vld [vmem:[%s8546_s0 + $0x660] sm:$0xff] }
  0x48   :  { %575 = vst.msk [vmem:[#allocation2 + $0x601] sm:$0xff] %vm272_vm0, %v158_v17  ;;  %576 = vst.msk [vmem:[#allocation2 + $0x609] sm:$0xff] %vm272_vm0, %v159_v19  ;;  %1104 = vrot.lane.b32.xlu0 %v913_v26, %s6072_s4  ;;  %v221_v57 = vld [vmem:[%s8546_s0 + $0x668] sm:$0xff]  ;;  %v222_v58 = vld [vmem:[%s8546_s0 + $0x670] sm:$0xff] }
  0x49   :  { %581 = vst.msk [vmem:[#allocation2 + $0x641] sm:$0xff] %vm272_vm0, %v164_v20  ;;  %582 = vst.msk [vmem:[#allocation2 + $0x649] sm:$0xff] %vm272_vm0, %v165_v22  ;;  %1102 = vrot.lane.b32.xlu1 %v911_v21, %s6072_s4  ;;  %v925_v59 = vld [vmem:[#allocation2 + $0x371] ss:$2 sm:$0xff]  ;;  %v228_v61 = vld [vmem:[%s8546_s0 + $0x6a0] sm:$0xff] }
  0x4a   :  { %583 = vst.msk [vmem:[#allocation2 + $0x651] sm:$0xff] %vm272_vm0, %v166_v23  ;;  %584 = vst.msk [vmem:[#allocation2 + $0x659] sm:$0xff] %vm272_vm0, %v167_v24  ;;  %v223_v60 = vld [vmem:[%s8546_s0 + $0x678] sm:$0xff]  ;;  %v927_v62 = vld [vmem:[#allocation2 + $0x381] ss:$2 sm:$0xff] }
  0x4b   :  { %589 = vst.msk [vmem:[#allocation2 + $0x691] sm:$0xff] %vm272_vm0, %v172_v25  ;;  %590 = vst.msk [vmem:[#allocation2 + $0x699] sm:$0xff] %vm272_vm0, %v173_v27  ;;  %v229_v63 = vld [vmem:[%s8546_s0 + $0x6a8] sm:$0xff]  ;;  %v230_v0 = vld [vmem:[%s8546_s0 + $0x6b0] sm:$0xff] }
  0x4c   :  { %591 = vst.msk [vmem:[#allocation2 + $0x6a1] sm:$0xff] %vm272_vm0, %v174_v28  ;;  %592 = vst.msk [vmem:[#allocation2 + $0x6a9] sm:$0xff] %vm272_vm0, %v175_v29  ;;  %1108 = vrot.lane.b32.xlu0 %v917_v40, %s6072_s4  ;;  %v231_v1 = vld [vmem:[%s8546_s0 + $0x6b8] sm:$0xff]  ;;  %v236_v2 = vld [vmem:[%s8546_s0 + $0x6e0] sm:$0xff] }
  0x4d   :  { %597 = vst.msk [vmem:[#allocation2 + $0x6e1] sm:$0xff] %vm272_vm0, %v180_v30  ;;  %598 = vst.msk [vmem:[#allocation2 + $0x6e9] sm:$0xff] %vm272_vm0, %v181_v31  ;;  %1106 = vrot.lane.b32.xlu1 %v915_v33, %s6072_s4  ;;  %v237_v3 = vld [vmem:[%s8546_s0 + $0x6e8] sm:$0xff]  ;;  %v238_v4 = vld [vmem:[%s8546_s0 + $0x6f0] sm:$0xff] }
  0x4e   :  { %816 = vst.msk [vmem:[#allocation3] sm:$0xff] %vm272_vm0, %v689_v32  ;;  %599 = vst.msk [vmem:[#allocation2 + $0x6f1] sm:$0xff] %vm272_vm0, %v182_v34  ;;  %v239_v5 = vld [vmem:[%s8546_s0 + $0x6f8] sm:$0xff]  ;;  %v929_v6 = vld [vmem:[#allocation2 + $0x3c1] ss:$2 sm:$0xff] }
  0x4f   :  { %600 = vst.msk [vmem:[#allocation2 + $0x6f9] sm:$0xff] %vm272_vm0, %v183_v35  ;;  %605 = vst.msk [vmem:[#allocation2 + $0x731] sm:$0xff] %vm272_vm0, %v188_v36  ;;  %v693_v7 = vld [vmem:[#allocation2 + $0x50] ss:$2 sm:$0xff]  ;;  %v244_v8 = vld [vmem:[%s8546_s0 + $0x720] sm:$0xff] }
  0x50   :  { %606 = vst.msk [vmem:[#allocation2 + $0x739] sm:$0xff] %vm272_vm0, %v189_v37  ;;  %607 = vst.msk [vmem:[#allocation2 + $0x741] sm:$0xff] %vm272_vm0, %v190_v38  ;;  %1112 = vrot.lane.b32.xlu0 %v921_v49, %s6072_s4  ;;  %v931_v9 = vld [vmem:[#allocation2 + $0x3d1] ss:$2 sm:$0xff]  ;;  %v245_v10 = vld [vmem:[%s8546_s0 + $0x728] sm:$0xff] }
  0x51   :  { %608 = vst.msk [vmem:[#allocation2 + $0x749] sm:$0xff] %vm272_vm0, %v191_v39  ;;  %613 = vst.msk [vmem:[#allocation2 + $0x781] sm:$0xff] %vm272_vm0, %v196_v41  ;;  %1110 = vrot.lane.b32.xlu1 %v919_v43, %s6072_s4  ;;  %v246_v11 = vld [vmem:[%s8546_s0 + $0x730] sm:$0xff]  ;;  %v247_v12 = vld [vmem:[%s8546_s0 + $0x738] sm:$0xff] }
  0x52   :  { %614 = vst.msk [vmem:[#allocation2 + $0x789] sm:$0xff] %vm272_vm0, %v197_v42  ;;  %615 = vst.msk [vmem:[#allocation2 + $0x791] sm:$0xff] %vm272_vm0, %v198_v44  ;;  %v691_v13 = vld [vmem:[#allocation2 + $0x10] ss:$2 sm:$0xff]  ;;  %v695_v14 = vld [vmem:[#allocation2 + $0x60] ss:$2 sm:$0xff] }
  0x53   :  { %616 = vst.msk [vmem:[#allocation2 + $0x799] sm:$0xff] %vm272_vm0, %v199_v45  ;;  %621 = vst.msk [vmem:[#allocation2 + $0x7d1] sm:$0xff] %vm272_vm0, %v204_v46  ;;  %v252_v15 = vld [vmem:[%s8546_s0 + $0x760] sm:$0xff]  ;;  %v933_v16 = vld [vmem:[#allocation2 + $0x411] ss:$2 sm:$0xff] }
  0x54   :  { %622 = vst.msk [vmem:[#allocation2 + $0x7d9] sm:$0xff] %vm272_vm0, %v205_v47  ;;  %623 = vst.msk [vmem:[#allocation2 + $0x7e1] sm:$0xff] %vm272_vm0, %v206_v48  ;;  %1116 = vrot.lane.b32.xlu0 %v925_v59, %s6072_s4  ;;  %v253_v17 = vld [vmem:[%s8546_s0 + $0x768] sm:$0xff]  ;;  %v254_v18 = vld [vmem:[%s8546_s0 + $0x770] sm:$0xff] }
  0x55   :  { %624 = vst.msk [vmem:[#allocation2 + $0x7e9] sm:$0xff] %vm272_vm0, %v207_v50  ;;  %629 = vst.msk [vmem:[#allocation2 + $0x821] sm:$0xff] %vm272_vm0, %v212_v51  ;;  %1114 = vrot.lane.b32.xlu1 %v923_v52, %s6072_s4  ;;  %v935_v19 = vld [vmem:[#allocation2 + $0x421] ss:$2 sm:$0xff]  ;;  %v255_v20 = vld [vmem:[%s8546_s0 + $0x778] sm:$0xff] }
  0x56   :  { %630 = vst.msk [vmem:[#allocation2 + $0x829] sm:$0xff] %vm272_vm0, %v213_v53  ;;  %631 = vst.msk [vmem:[#allocation2 + $0x831] sm:$0xff] %vm272_vm0, %v214_v54  ;;  %v697_v21 = vld [vmem:[#allocation2 + $0xa0] ss:$2 sm:$0xff]  ;;  %v699_v22 = vld [vmem:[#allocation2 + $0xb0] ss:$2 sm:$0xff] }
  0x57   :  { %632 = vst.msk [vmem:[#allocation2 + $0x839] sm:$0xff] %vm272_vm0, %v215_v55  ;;  %637 = vst.msk [vmem:[#allocation2 + $0x871] sm:$0xff] %vm272_vm0, %v220_v56  ;;  %v260_v23 = vld [vmem:[%s8546_s0 + $0x7a0] sm:$0xff]  ;;  %v261_v24 = vld [vmem:[%s8546_s0 + $0x7a8] sm:$0xff] }
  0x58   :  { %638 = vst.msk [vmem:[#allocation2 + $0x879] sm:$0xff] %vm272_vm0, %v221_v57  ;;  %639 = vst.msk [vmem:[#allocation2 + $0x881] sm:$0xff] %vm272_vm0, %v222_v58  ;;  %1120 = vrot.lane.b32.xlu0 %v929_v6, %s6072_s4  ;;  %v262_v25 = vld [vmem:[%s8546_s0 + $0x7b0] sm:$0xff]  ;;  %v263_v26 = vld [vmem:[%s8546_s0 + $0x7b8] sm:$0xff] }
  0x59   :  { %640 = vst.msk [vmem:[#allocation2 + $0x889] sm:$0xff] %vm272_vm0, %v223_v60  ;;  %645 = vst.msk [vmem:[#allocation2 + $0x8c1] sm:$0xff] %vm272_vm0, %v228_v61  ;;  %1118 = vrot.lane.b32.xlu1 %v927_v62, %s6072_s4  ;;  %v701_v27 = vld [vmem:[#allocation2 + $0xf0] ss:$2 sm:$0xff]  ;;  %v937_v28 = vld [vmem:[#allocation2 + $0x461] ss:$2 sm:$0xff] }
  0x5a   :  { %646 = vst.msk [vmem:[#allocation2 + $0x8c9] sm:$0xff] %vm272_vm0, %v229_v63  ;;  %647 = vst.msk [vmem:[#allocation2 + $0x8d1] sm:$0xff] %vm272_vm0, %v230_v0  ;;  %v939_v29 = vld [vmem:[#allocation2 + $0x471] ss:$2 sm:$0xff]  ;;  %v703_v30 = vld [vmem:[#allocation2 + $0x100] ss:$2 sm:$0xff] }
  0x5b   :  { %648 = vst.msk [vmem:[#allocation2 + $0x8d9] sm:$0xff] %vm272_vm0, %v231_v1  ;;  %653 = vst.msk [vmem:[#allocation2 + $0x911] sm:$0xff] %vm272_vm0, %v236_v2  ;;  %v705_v31 = vld [vmem:[#allocation2 + $0x140] ss:$2 sm:$0xff]  ;;  %v707_v32 = vld [vmem:[#allocation2 + $0x150] ss:$2 sm:$0xff] }
  0x5c   :  { %654 = vst.msk [vmem:[#allocation2 + $0x919] sm:$0xff] %vm272_vm0, %v237_v3  ;;  %655 = vst.msk [vmem:[#allocation2 + $0x921] sm:$0xff] %vm272_vm0, %v238_v4  ;;  %1124 = vrot.lane.b32.xlu0 %v933_v16, %s6072_s4  ;;  %v709_v33 = vld [vmem:[#allocation2 + $0x190] ss:$2 sm:$0xff]  ;;  %v711_v34 = vld [vmem:[#allocation2 + $0x1a0] ss:$2 sm:$0xff] }
  0x5d   :  { %656 = vst.msk [vmem:[#allocation2 + $0x929] sm:$0xff] %vm272_vm0, %v239_v5  ;;  %818 = vst.msk [vmem:[#allocation3 + $0x10] sm:$0xff] %vm272_vm0, %v693_v7  ;;  %1122 = vrot.lane.b32.xlu1 %v931_v9, %s6072_s4  ;;  %v941_v35 = vld [vmem:[#allocation2 + $0x4b1] ss:$2 sm:$0xff]  ;;  %v943_v36 = vld [vmem:[#allocation2 + $0x4c1] ss:$2 sm:$0xff] }
  0x5e   :  { %661 = vst.msk [vmem:[#allocation2 + $0x961] sm:$0xff] %vm272_vm0, %v244_v8  ;;  %662 = vst.msk [vmem:[#allocation2 + $0x969] sm:$0xff] %vm272_vm0, %v245_v10  ;;  %v713_v37 = vld [vmem:[#allocation2 + $0x1e0] ss:$2 sm:$0xff]  ;;  %v715_v38 = vld [vmem:[#allocation2 + $0x1f0] ss:$2 sm:$0xff] }
  0x5f   :  { %663 = vst.msk [vmem:[#allocation2 + $0x971] sm:$0xff] %vm272_vm0, %v246_v11  ;;  %664 = vst.msk [vmem:[#allocation2 + $0x979] sm:$0xff] %vm272_vm0, %v247_v12  ;;  %v717_v39 = vld [vmem:[#allocation2 + $0x230] ss:$2 sm:$0xff]  ;;  %v945_v40 = vld [vmem:[#allocation2 + $0x551] ss:$2 sm:$0xff] }
  0x60   :  { %817 = vst.msk [vmem:[#allocation3 + $0x8] sm:$0xff] %vm272_vm0, %v691_v13  ;;  %819 = vst.msk [vmem:[#allocation3 + $0x18] sm:$0xff] %vm272_vm0, %v695_v14  ;;  %1128 = vrot.lane.b32.xlu0 %v937_v28, %s6072_s4  ;;  %v719_v41 = vld [vmem:[#allocation2 + $0x240] ss:$2 sm:$0xff]  ;;  %v947_v42 = vld [vmem:[#allocation2 + $0x561] ss:$2 sm:$0xff] }
  0x61   :  { %669 = vst.msk [vmem:[#allocation2 + $0x9b1] sm:$0xff] %vm272_vm0, %v252_v15  ;;  %670 = vst.msk [vmem:[#allocation2 + $0x9b9] sm:$0xff] %vm272_vm0, %v253_v17  ;;  %1126 = vrot.lane.b32.xlu1 %v935_v19, %s6072_s4  ;;  %v721_v43 = vld [vmem:[#allocation2 + $0x280] ss:$2 sm:$0xff]  ;;  %v723_v44 = vld [vmem:[#allocation2 + $0x290] ss:$2 sm:$0xff] }
  0x62   :  { %671 = vst.msk [vmem:[#allocation2 + $0x9c1] sm:$0xff] %vm272_vm0, %v254_v18  ;;  %672 = vst.msk [vmem:[#allocation2 + $0x9c9] sm:$0xff] %vm272_vm0, %v255_v20  ;;  %v725_v45 = vld [vmem:[#allocation2 + $0x2d0] ss:$2 sm:$0xff]  ;;  %v727_v46 = vld [vmem:[#allocation2 + $0x2e0] ss:$2 sm:$0xff] }
  0x63   :  { %820 = vst.msk [vmem:[#allocation3 + $0x20] sm:$0xff] %vm272_vm0, %v697_v21  ;;  %821 = vst.msk [vmem:[#allocation3 + $0x28] sm:$0xff] %vm272_vm0, %v699_v22  ;;  %v949_v47 = vld [vmem:[#allocation2 + $0x5a1] ss:$2 sm:$0xff]  ;;  %v729_v48 = vld [vmem:[#allocation2 + $0x320] ss:$2 sm:$0xff] }
  0x64   :  { %677 = vst.msk [vmem:[#allocation2 + $0xa01] sm:$0xff] %vm272_vm0, %v260_v23  ;;  %678 = vst.msk [vmem:[#allocation2 + $0xa09] sm:$0xff] %vm272_vm0, %v261_v24  ;;  %1132 = vrot.lane.b32.xlu0 %v941_v35, %s6072_s4  ;;  %v731_v49 = vld [vmem:[#allocation2 + $0x330] ss:$2 sm:$0xff]  ;;  %v951_v50 = vld [vmem:[#allocation2 + $0x5b1] ss:$2 sm:$0xff] }
  0x65   :  { %679 = vst.msk [vmem:[#allocation2 + $0xa11] sm:$0xff] %vm272_vm0, %v262_v25  ;;  %680 = vst.msk [vmem:[#allocation2 + $0xa19] sm:$0xff] %vm272_vm0, %v263_v26  ;;  %1130 = vrot.lane.b32.xlu1 %v939_v29, %s6072_s4  ;;  %v733_v51 = vld [vmem:[#allocation2 + $0x370] ss:$2 sm:$0xff]  ;;  %v735_v52 = vld [vmem:[#allocation2 + $0x380] ss:$2 sm:$0xff] }
  0x66   :  { %822 = vst.msk [vmem:[#allocation3 + $0x30] sm:$0xff] %vm272_vm0, %v701_v27  ;;  %823 = vst.msk [vmem:[#allocation3 + $0x38] sm:$0xff] %vm272_vm0, %v703_v30  ;;  %v737_v53 = vld [vmem:[#allocation2 + $0x3c0] ss:$2 sm:$0xff]  ;;  %v739_v54 = vld [vmem:[#allocation2 + $0x3d0] ss:$2 sm:$0xff] }
  0x67   :  { %824 = vst.msk [vmem:[#allocation3 + $0x40] sm:$0xff] %vm272_vm0, %v705_v31  ;;  %825 = vst.msk [vmem:[#allocation3 + $0x48] sm:$0xff] %vm272_vm0, %v707_v32  ;;  %v953_v55 = vld [vmem:[#allocation2 + $0x5f1] ss:$2 sm:$0xff]  ;;  %v741_v56 = vld [vmem:[#allocation2 + $0x410] ss:$2 sm:$0xff] }
  0x68   :  { %826 = vst.msk [vmem:[#allocation3 + $0x50] sm:$0xff] %vm272_vm0, %v709_v33  ;;  %827 = vst.msk [vmem:[#allocation3 + $0x58] sm:$0xff] %vm272_vm0, %v711_v34  ;;  %1136 = vrot.lane.b32.xlu0 %v945_v40, %s6072_s4  ;;  %v743_v57 = vld [vmem:[#allocation2 + $0x420] ss:$2 sm:$0xff]  ;;  %v955_v58 = vld [vmem:[#allocation2 + $0x601] ss:$2 sm:$0xff] }
  0x69   :  { %828 = vst.msk [vmem:[#allocation3 + $0x60] sm:$0xff] %vm272_vm0, %v713_v37  ;;  %829 = vst.msk [vmem:[#allocation3 + $0x68] sm:$0xff] %vm272_vm0, %v715_v38  ;;  %1134 = vrot.lane.b32.xlu1 %v943_v36, %s6072_s4  ;;  %v745_v59 = vld [vmem:[#allocation2 + $0x460] ss:$2 sm:$0xff]  ;;  %v747_v60 = vld [vmem:[#allocation2 + $0x470] ss:$2 sm:$0xff] }
  0x6a   :  { %830 = vst.msk [vmem:[#allocation3 + $0x70] sm:$0xff] %vm272_vm0, %v717_v39  ;;  %831 = vst.msk [vmem:[#allocation3 + $0x78] sm:$0xff] %vm272_vm0, %v719_v41  ;;  %v749_v61 = vld [vmem:[#allocation2 + $0x4b0] ss:$2 sm:$0xff]  ;;  %v751_v62 = vld [vmem:[#allocation2 + $0x4c0] ss:$2 sm:$0xff] }
  0x6b   :  { %832 = vst.msk [vmem:[#allocation3 + $0x80] sm:$0xff] %vm272_vm0, %v721_v43  ;;  %833 = vst.msk [vmem:[#allocation3 + $0x88] sm:$0xff] %vm272_vm0, %v723_v44  ;;  %v957_v63 = vld [vmem:[#allocation2 + $0x641] ss:$2 sm:$0xff]  ;;  %v753_v0 = vld [vmem:[#allocation2 + $0x550] ss:$2 sm:$0xff] }
  0x6c   :  { %834 = vst.msk [vmem:[#allocation3 + $0x90] sm:$0xff] %vm272_vm0, %v725_v45  ;;  %835 = vst.msk [vmem:[#allocation3 + $0x98] sm:$0xff] %vm272_vm0, %v727_v46  ;;  %1140 = vrot.lane.b32.xlu0 %v949_v47, %s6072_s4  ;;  %v755_v1 = vld [vmem:[#allocation2 + $0x560] ss:$2 sm:$0xff]  ;;  %v959_v2 = vld [vmem:[#allocation2 + $0x651] ss:$2 sm:$0xff] }
  0x6d   :  { %1138 = vrot.lane.b32.xlu1 %v947_v42, %s6072_s4  ;;  %836 = vst.msk [vmem:[#allocation3 + $0xa0] sm:$0xff] %vm272_vm0, %v729_v48  ;;  %837 = vst.msk [vmem:[#allocation3 + $0xa8] sm:$0xff] %vm272_vm0, %v731_v49  ;;  %v757_v3 = vld [vmem:[#allocation2 + $0x5a0] ss:$2 sm:$0xff]  ;;  %v759_v4 = vld [vmem:[#allocation2 + $0x5b0] ss:$2 sm:$0xff] }
  0x6e   :  { %838 = vst.msk [vmem:[#allocation3 + $0xb0] sm:$0xff] %vm272_vm0, %v733_v51  ;;  %839 = vst.msk [vmem:[#allocation3 + $0xb8] sm:$0xff] %vm272_vm0, %v735_v52  ;;  %v761_v5 = vld [vmem:[#allocation2 + $0x5f0] ss:$2 sm:$0xff]  ;;  %v763_v6 = vld [vmem:[#allocation2 + $0x600] ss:$2 sm:$0xff] }
  0x6f   :  { %840 = vst.msk [vmem:[#allocation3 + $0xc0] sm:$0xff] %vm272_vm0, %v737_v53  ;;  %841 = vst.msk [vmem:[#allocation3 + $0xc8] sm:$0xff] %vm272_vm0, %v739_v54  ;;  %v961_v7 = vld [vmem:[#allocation2 + $0x691] ss:$2 sm:$0xff]  ;;  %v765_v8 = vld [vmem:[#allocation2 + $0x640] ss:$2 sm:$0xff] }
  0x70   :  { %842 = vst.msk [vmem:[#allocation3 + $0xd0] sm:$0xff] %vm272_vm0, %v741_v56  ;;  %843 = vst.msk [vmem:[#allocation3 + $0xd8] sm:$0xff] %vm272_vm0, %v743_v57  ;;  %1144 = vrot.lane.b32.xlu0 %v953_v55, %s6072_s4  ;;  %v767_v9 = vld [vmem:[#allocation2 + $0x650] ss:$2 sm:$0xff]  ;;  %v963_v10 = vld [vmem:[#allocation2 + $0x6a1] ss:$2 sm:$0xff] }
  0x71   :  { %1142 = vrot.lane.b32.xlu1 %v951_v50, %s6072_s4  ;;  %844 = vst.msk [vmem:[#allocation3 + $0xe0] sm:$0xff] %vm272_vm0, %v745_v59  ;;  %845 = vst.msk [vmem:[#allocation3 + $0xe8] sm:$0xff] %vm272_vm0, %v747_v60  ;;  %v769_v11 = vld [vmem:[#allocation2 + $0x690] ss:$2 sm:$0xff]  ;;  %v771_v12 = vld [vmem:[#allocation2 + $0x6a0] ss:$2 sm:$0xff] }
  0x72   :  { %846 = vst.msk [vmem:[#allocation3 + $0xf0] sm:$0xff] %vm272_vm0, %v749_v61  ;;  %847 = vst.msk [vmem:[#allocation3 + $0xf8] sm:$0xff] %vm272_vm0, %v751_v62  ;;  %v773_v13 = vld [vmem:[#allocation2 + $0x6e0] ss:$2 sm:$0xff]  ;;  %v775_v14 = vld [vmem:[#allocation2 + $0x6f0] ss:$2 sm:$0xff] }
  0x73   :  { %848 = vst.msk [vmem:[#allocation3 + $0x100] sm:$0xff] %vm272_vm0, %v753_v0  ;;  %849 = vst.msk [vmem:[#allocation3 + $0x108] sm:$0xff] %vm272_vm0, %v755_v1  ;;  %v965_v15 = vld [vmem:[#allocation2 + $0x6e1] ss:$2 sm:$0xff]  ;;  %v777_v16 = vld [vmem:[#allocation2 + $0x730] ss:$2 sm:$0xff] }
  0x74   :  { %850 = vst.msk [vmem:[#allocation3 + $0x110] sm:$0xff] %vm272_vm0, %v757_v3  ;;  %851 = vst.msk [vmem:[#allocation3 + $0x118] sm:$0xff] %vm272_vm0, %v759_v4  ;;  %1148 = vrot.lane.b32.xlu0 %v957_v63, %s6072_s4  ;;  %v779_v17 = vld [vmem:[#allocation2 + $0x740] ss:$2 sm:$0xff]  ;;  %v967_v18 = vld [vmem:[#allocation2 + $0x6f1] ss:$2 sm:$0xff] }
  0x75   :  { %1146 = vrot.lane.b32.xlu1 %v955_v58, %s6072_s4  ;;  %852 = vst.msk [vmem:[#allocation3 + $0x120] sm:$0xff] %vm272_vm0, %v761_v5  ;;  %853 = vst.msk [vmem:[#allocation3 + $0x128] sm:$0xff] %vm272_vm0, %v763_v6  ;;  %v781_v19 = vld [vmem:[#allocation2 + $0x780] ss:$2 sm:$0xff]  ;;  %v783_v20 = vld [vmem:[#allocation2 + $0x790] ss:$2 sm:$0xff] }
  0x76   :  { %854 = vst.msk [vmem:[#allocation3 + $0x130] sm:$0xff] %vm272_vm0, %v765_v8  ;;  %855 = vst.msk [vmem:[#allocation3 + $0x138] sm:$0xff] %vm272_vm0, %v767_v9  ;;  %v785_v21 = vld [vmem:[#allocation2 + $0x7d0] ss:$2 sm:$0xff]  ;;  %v969_v22 = vld [vmem:[#allocation2 + $0x731] ss:$2 sm:$0xff] }
  0x77   :  { %856 = vst.msk [vmem:[#allocation3 + $0x140] sm:$0xff] %vm272_vm0, %v769_v11  ;;  %857 = vst.msk [vmem:[#allocation3 + $0x148] sm:$0xff] %vm272_vm0, %v771_v12  ;;  %v971_v23 = vld [vmem:[#allocation2 + $0x741] ss:$2 sm:$0xff]  ;;  %v787_v24 = vld [vmem:[#allocation2 + $0x7e0] ss:$2 sm:$0xff] }
  0x78   :  { %858 = vst.msk [vmem:[#allocation3 + $0x150] sm:$0xff] %vm272_vm0, %v773_v13  ;;  %1152 = vrot.lane.b32.xlu0 %v961_v7, %s6072_s4  ;;  %859 = vst.msk [vmem:[#allocation3 + $0x158] sm:$0xff] %vm272_vm0, %v775_v14  ;;  %v789_v25 = vld [vmem:[#allocation2 + $0x820] ss:$2 sm:$0xff]  ;;  %v791_v26 = vld [vmem:[#allocation2 + $0x830] ss:$2 sm:$0xff] }
  0x79   :  { %1150 = vrot.lane.b32.xlu1 %v959_v2, %s6072_s4  ;;  %860 = vst.msk [vmem:[#allocation3 + $0x160] sm:$0xff] %vm272_vm0, %v777_v16  ;;  %861 = vst.msk [vmem:[#allocation3 + $0x168] sm:$0xff] %vm272_vm0, %v779_v17 }
  0x7a   :  { %862 = vst.msk [vmem:[#allocation3 + $0x170] sm:$0xff] %vm272_vm0, %v781_v19  ;;  %863 = vst.msk [vmem:[#allocation3 + $0x178] sm:$0xff] %vm272_vm0, %v783_v20 }
  0x7b   :  { %864 = vst.msk [vmem:[#allocation3 + $0x180] sm:$0xff] %vm272_vm0, %v785_v21  ;;  %865 = vst.msk [vmem:[#allocation3 + $0x188] sm:$0xff] %vm272_vm0, %v787_v24 }
  0x7c   :  { %1156 = vrot.lane.b32.xlu0 %v965_v15, %s6072_s4  ;;  %866 = vst.msk [vmem:[#allocation3 + $0x190] sm:$0xff] %vm272_vm0, %v789_v25  ;;  %867 = vst.msk [vmem:[#allocation3 + $0x198] sm:$0xff] %vm272_vm0, %v791_v26 }
  0x7d   :  { %1154 = vrot.lane.b32.xlu1 %v963_v10, %s6072_s4 }
  0x81   :  { %1158 = vrot.lane.b32.xlu1 %v967_v18, %s6072_s4 }
  0x82   :  { %8 = vsyncpa [#allocation5], 0  ;;  %1160 = vrot.lane.b32.xlu0 %v969_v22, %s6072_s4  ;;  %v793_v27 = vld [vmem:[#allocation2 + $0x870] ss:$2 sm:$0xff]  ;;  %v973_v28 = vld [vmem:[#allocation2 + $0x781] ss:$2 sm:$0xff]  ;;  %v1073_v53 = vpop.permute.xlu0 %1072 }
  0x83   :  { %v975_v29 = vld [vmem:[#allocation2 + $0x791] ss:$2 sm:$0xff]  ;;  %868 = vst.msk [vmem:[#allocation3 + $0x1a0] sm:$0xff] %vm272_vm0, %v793_v27  ;;  %v795_v30 = vld [vmem:[#allocation2 + $0x880] ss:$2 sm:$0xff]  ;;  %vm1264_vm3 = vcmask 48152  }
  0x84   :  { %869 = vst.msk [vmem:[#allocation3 + $0x1a8] sm:$0xff] %vm272_vm0, %v795_v30  ;;  %v797_v31 = vld [vmem:[#allocation2 + $0x8c0] ss:$2 sm:$0xff]  ;;  %v977_v32 = vld [vmem:[#allocation2 + $0x7d1] ss:$2 sm:$0xff]  ;;  %s6073_s12 = smov 6  }
  0x85   :  { %1162 = vrot.lane.b32.xlu1 %v971_v23, %s6072_s4  ;;  %v979_v33 = vld [vmem:[#allocation2 + $0x7e1] ss:$2 sm:$0xff]  ;;  %870 = vst.msk [vmem:[#allocation3 + $0x1b0] sm:$0xff] %vm272_vm0, %v797_v31  ;;  %v799_v34 = vld [vmem:[#allocation2 + $0x8d0] ss:$2 sm:$0xff]  ;;  %vm1713_vm4 = vcmask 72752  }
  0x86   :  { %1164 = vrot.lane.b32.xlu0 %v973_v28, %s6072_s4  ;;  %871 = vst.msk [vmem:[#allocation3 + $0x1b8] sm:$0xff] %vm272_vm0, %v799_v34  ;;  %v801_v35 = vld [vmem:[#allocation2 + $0x910] ss:$2 sm:$0xff]  ;;  %v981_v36 = vld [vmem:[#allocation2 + $0x821] ss:$2 sm:$0xff]  ;;  %v1075_v57 = vpop.permute.xlu0 %1074  ;;  %s6074_s13 = smov 9  }
  0x87   :  { %v983_v37 = vld [vmem:[#allocation2 + $0x831] ss:$2 sm:$0xff]  ;;  %872 = vst.msk [vmem:[#allocation3 + $0x1c0] sm:$0xff] %vm272_vm0, %v801_v35  ;;  %v803_v38 = vld [vmem:[#allocation2 + $0x920] ss:$2 sm:$0xff]  ;;  %vm2161_vm5 = vcmask 97352  }
  0x88   :  { %873 = vst.msk [vmem:[#allocation3 + $0x1c8] sm:$0xff] %vm272_vm0, %v803_v38  ;;  %v805_v39 = vld [vmem:[#allocation2 + $0x960] ss:$2 sm:$0xff]  ;;  %v985_v40 = vld [vmem:[#allocation2 + $0x871] ss:$2 sm:$0xff]  ;;  %vm2610_vm6 = vcmask 121952  }
  0x89   :  { %1166 = vrot.lane.b32.xlu1 %v975_v29, %s6072_s4  ;;  %v987_v41 = vld [vmem:[#allocation2 + $0x881] ss:$2 sm:$0xff]  ;;  %874 = vst.msk [vmem:[#allocation3 + $0x1d0] sm:$0xff] %vm272_vm0, %v805_v39  ;;  %v807_v42 = vld [vmem:[#allocation2 + $0x970] ss:$2 sm:$0xff]  ;;  %s6076_s14 = smov 15  }
  0x8a   :  { %1168 = vrot.lane.b32.xlu0 %v977_v32, %s6072_s4  ;;  %875 = vst.msk [vmem:[#allocation3 + $0x1d8] sm:$0xff] %vm272_vm0, %v807_v42  ;;  %v809_v43 = vld [vmem:[#allocation2 + $0x9b0] ss:$2 sm:$0xff]  ;;  %v989_v44 = vld [vmem:[#allocation2 + $0x8c1] ss:$2 sm:$0xff]  ;;  %vm3059_vm7 = vcmask 146552  }
  0x8b   :  { %v991_v45 = vld [vmem:[#allocation2 + $0x8d1] ss:$2 sm:$0xff]  ;;  %876 = vst.msk [vmem:[#allocation3 + $0x1e0] sm:$0xff] %vm272_vm0, %v809_v43  ;;  %v811_v46 = vld [vmem:[#allocation2 + $0x9c0] ss:$2 sm:$0xff]  ;;  %s6077_s15 = smov 18  }
  0x8c   :  { %877 = vst.msk [vmem:[#allocation3 + $0x1e8] sm:$0xff] %vm272_vm0, %v811_v46  ;;  %v813_v47 = vld [vmem:[#allocation2 + $0xa00] ss:$2 sm:$0xff]  ;;  %v993_v48 = vld [vmem:[#allocation2 + $0x911] ss:$2 sm:$0xff]  ;;  %s6078_s16 = smov 21  }
  0x8d   :  { %1170 = vrot.lane.b32.xlu1 %v979_v33, %s6072_s4  ;;  %v995_v49 = vld [vmem:[#allocation2 + $0x921] ss:$2 sm:$0xff]  ;;  %878 = vst.msk [vmem:[#allocation3 + $0x1f0] sm:$0xff] %vm272_vm0, %v813_v47  ;;  %v815_v50 = vld [vmem:[#allocation2 + $0xa10] ss:$2 sm:$0xff]  ;;  %vm4686_vm8 = vcmask 1044480  }
  0x8e   :  { %1172 = vrot.lane.b32.xlu0 %v981_v36, %s6072_s4  ;;  %879 = vst.msk [vmem:[#allocation3 + $0x1f8] sm:$0xff] %vm272_vm0, %v815_v50  ;;  %v997_v51 = vld [vmem:[#allocation2 + $0x961] ss:$2 sm:$0xff]  ;;  %v999_v52 = vld [vmem:[#allocation2 + $0x971] ss:$2 sm:$0xff]  ;;  %vm4687_vm9 = vcmask 1045504  }
  0x8f   :  { %1265 = vst.msk [vmem:[#allocation3] sm:$0xff] %vm1264_vm3, %v1073_v53  ;;  %v1001_v55 = vld [vmem:[#allocation2 + $0x9b1] ss:$2 sm:$0xff]  ;;  %v1003_v56 = vld [vmem:[#allocation2 + $0x9c1] ss:$2 sm:$0xff]  ;;  %1266 = vst.msk [vmem:[#allocation3 + $0x8] sm:$0xff] %vm1264_vm3, %v1075_v57 }
  0x90   :  { %v17_v59 = vld [vmem:[%s8546_s0 + $0x8] sm:$0xff]  ;;  %v18_v60 = vld [vmem:[%s8546_s0 + $0x10] sm:$0xff]  ;;  %v19_v61 = vld [vmem:[%s8546_s0 + $0x18] sm:$0xff]  ;;  %s6080_s21 = smov 24   ;;  %vm3508_vm10 = vcmask 171152   ;;  %vm3957_vm11 = vcmask 195752  }
  0x91   :  { %1174 = vrot.lane.b32.xlu1 %v983_v37, %s6072_s4  ;;  %434 = vst.msk [vmem:[#allocation2 + $0x31] sm:$0xff] %vm272_vm0, %v17_v59  ;;  %v1005_v62 = vld [vmem:[#allocation2 + $0xa01] ss:$2 sm:$0xff]  ;;  %v1007_v63 = vld [vmem:[#allocation2 + $0xa11] ss:$2 sm:$0xff]  ;;  %435 = vst.msk [vmem:[#allocation2 + $0x39] sm:$0xff] %vm272_vm0, %v18_v60 }
  0x92   :  { %1176 = vrot.lane.b32.xlu0 %v985_v40, %s6072_s4  ;;  %436 = vst.msk [vmem:[#allocation2 + $0x41] sm:$0xff] %vm272_vm0, %v19_v61  ;;  %v16_v0 = vld [vmem:[%s8546_s0] sm:$0xff]  ;;  %v25_v3 = vld [vmem:[%s8546_s0 + $0x48] sm:$0xff]  ;;  %v26_v4 = vld [vmem:[%s8546_s0 + $0x50] sm:$0xff]  ;;  %vm4406_vm12 = vcmask 220352   ;;  %vm4589_vm13 = vcmask 220160  }
  0x93   :  { %433 = vst.msk [vmem:[#allocation2 + $0x29] sm:$0xff] %vm272_vm0, %v16_v0  ;;  %v27_v5 = vld [vmem:[%s8546_s0 + $0x58] sm:$0xff]  ;;  %442 = vst.msk [vmem:[#allocation2 + $0x81] sm:$0xff] %vm272_vm0, %v25_v3  ;;  %v1330_v6 = vld [vmem:[#allocation2 + $0x2] ss:$2 sm:$0xff]  ;;  %vm5302_vm14 = vcmask 125952  }
  0x94   :  { %v1332_v7 = vld [vmem:[#allocation2 + $0x12] ss:$2 sm:$0xff]  ;;  %443 = vst.msk [vmem:[#allocation2 + $0x89] sm:$0xff] %vm272_vm0, %v26_v4  ;;  %444 = vst.msk [vmem:[#allocation2 + $0x91] sm:$0xff] %vm272_vm0, %v27_v5  ;;  %v33_v11 = vld [vmem:[%s8546_s0 + $0x88] sm:$0xff] }
  0x95   :  { %1178 = vrot.lane.b32.xlu1 %v987_v41, %s6072_s4  ;;  %v24_v8 = vld [vmem:[%s8546_s0 + $0x40] sm:$0xff]  ;;  %v34_v12 = vld [vmem:[%s8546_s0 + $0x90] sm:$0xff]  ;;  %v35_v13 = vld [vmem:[%s8546_s0 + $0x98] sm:$0xff]  ;;  %450 = vst.msk [vmem:[#allocation2 + $0xd1] sm:$0xff] %vm272_vm0, %v33_v11 }
  0x96   :  { %1180 = vrot.lane.b32.xlu0 %v989_v44, %s6072_s4  ;;  %441 = vst.msk [vmem:[#allocation2 + $0x79] sm:$0xff] %vm272_vm0, %v24_v8  ;;  %451 = vst.msk [vmem:[#allocation2 + $0xd9] sm:$0xff] %vm272_vm0, %v34_v12  ;;  %v32_v14 = vld [vmem:[%s8546_s0 + $0x80] sm:$0xff]  ;;  %v41_v19 = vld [vmem:[%s8546_s0 + $0xc8] sm:$0xff] }
  0x97   :  { %452 = vst.msk [vmem:[#allocation2 + $0xe1] sm:$0xff] %vm272_vm0, %v35_v13  ;;  %v1334_v15 = vld [vmem:[#allocation2 + $0x52] ss:$2 sm:$0xff]  ;;  %v1336_v16 = vld [vmem:[#allocation2 + $0x62] ss:$2 sm:$0xff]  ;;  %449 = vst.msk [vmem:[#allocation2 + $0xc9] sm:$0xff] %vm272_vm0, %v32_v14 }
  0x98   :  { %v42_v20 = vld [vmem:[%s8546_s0 + $0xd0] sm:$0xff]  ;;  %v43_v21 = vld [vmem:[%s8546_s0 + $0xd8] sm:$0xff]  ;;  %458 = vst.msk [vmem:[#allocation2 + $0x121] sm:$0xff] %vm272_vm0, %v41_v19  ;;  %v40_v22 = vld [vmem:[%s8546_s0 + $0xc0] sm:$0xff] }
  0x99   :  { %1182 = vrot.lane.b32.xlu1 %v991_v45, %s6072_s4  ;;  %459 = vst.msk [vmem:[#allocation2 + $0x129] sm:$0xff] %vm272_vm0, %v42_v20  ;;  %460 = vst.msk [vmem:[#allocation2 + $0x131] sm:$0xff] %vm272_vm0, %v43_v21  ;;  %v1338_v23 = vld [vmem:[#allocation2 + $0xa2] ss:$2 sm:$0xff]  ;;  %v1340_v24 = vld [vmem:[#allocation2 + $0xb2] ss:$2 sm:$0xff] }
  0x9a   :  { %1184 = vrot.lane.b32.xlu0 %v993_v48, %s6072_s4  ;;  %457 = vst.msk [vmem:[#allocation2 + $0x119] sm:$0xff] %vm272_vm0, %v40_v22  ;;  %v49_v27 = vld [vmem:[%s8546_s0 + $0x108] sm:$0xff]  ;;  %v50_v28 = vld [vmem:[%s8546_s0 + $0x110] sm:$0xff]  ;;  %v51_v29 = vld [vmem:[%s8546_s0 + $0x118] sm:$0xff] }
  0x9b   :  { %466 = vst.msk [vmem:[#allocation2 + $0x171] sm:$0xff] %vm272_vm0, %v49_v27  ;;  %467 = vst.msk [vmem:[#allocation2 + $0x179] sm:$0xff] %vm272_vm0, %v50_v28  ;;  %v48_v30 = vld [vmem:[%s8546_s0 + $0x100] sm:$0xff]  ;;  %v57_v35 = vld [vmem:[%s8546_s0 + $0x148] sm:$0xff] }
  0x9c   :  { %v1342_v31 = vld [vmem:[#allocation2 + $0xf2] ss:$2 sm:$0xff]  ;;  %v1344_v32 = vld [vmem:[#allocation2 + $0x102] ss:$2 sm:$0xff]  ;;  %468 = vst.msk [vmem:[#allocation2 + $0x181] sm:$0xff] %vm272_vm0, %v51_v29  ;;  %465 = vst.msk [vmem:[#allocation2 + $0x169] sm:$0xff] %vm272_vm0, %v48_v30 }
  0x9d   :  { %1186 = vrot.lane.b32.xlu1 %v995_v49, %s6072_s4  ;;  %v58_v36 = vld [vmem:[%s8546_s0 + $0x150] sm:$0xff]  ;;  %v59_v37 = vld [vmem:[%s8546_s0 + $0x158] sm:$0xff]  ;;  %474 = vst.msk [vmem:[#allocation2 + $0x1c1] sm:$0xff] %vm272_vm0, %v57_v35  ;;  %v56_v38 = vld [vmem:[%s8546_s0 + $0x140] sm:$0xff] }
  0x9e   :  { %1188 = vrot.lane.b32.xlu0 %v997_v51, %s6072_s4  ;;  %475 = vst.msk [vmem:[#allocation2 + $0x1c9] sm:$0xff] %vm272_vm0, %v58_v36  ;;  %v1346_v39 = vld [vmem:[#allocation2 + $0x142] ss:$2 sm:$0xff]  ;;  %v1348_v40 = vld [vmem:[#allocation2 + $0x152] ss:$2 sm:$0xff]  ;;  %476 = vst.msk [vmem:[#allocation2 + $0x1d1] sm:$0xff] %vm272_vm0, %v59_v37 }
  0x9f   :  { %v1077_v54 = vpop.permute.xlu1 %1076  ;;  %473 = vst.msk [vmem:[#allocation2 + $0x1b9] sm:$0xff] %vm272_vm0, %v56_v38  ;;  %v65_v43 = vld [vmem:[%s8546_s0 + $0x188] sm:$0xff]  ;;  %v66_v44 = vld [vmem:[%s8546_s0 + $0x190] sm:$0xff]  ;;  %v67_v45 = vld [vmem:[%s8546_s0 + $0x198] sm:$0xff] }
  0xa0   :  { %1267 = vst.msk [vmem:[#allocation3 + $0x10] sm:$0xff] %vm1264_vm3, %v1077_v54  ;;  %v64_v46 = vld [vmem:[%s8546_s0 + $0x180] sm:$0xff]  ;;  %v73_v51 = vld [vmem:[%s8546_s0 + $0x1c8] sm:$0xff]  ;;  %v75_v53 = vld [vmem:[%s8546_s0 + $0x1d8] sm:$0xff] }
  0xa1   :  { %1190 = vrot.lane.b32.xlu1 %v999_v52, %s6072_s4  ;;  %482 = vst.msk [vmem:[#allocation2 + $0x211] sm:$0xff] %vm272_vm0, %v65_v43  ;;  %483 = vst.msk [vmem:[#allocation2 + $0x219] sm:$0xff] %vm272_vm0, %v66_v44  ;;  %v1350_v47 = vld [vmem:[#allocation2 + $0x192] ss:$2 sm:$0xff]  ;;  %v1352_v48 = vld [vmem:[#allocation2 + $0x1a2] ss:$2 sm:$0xff] }
  0xa2   :  { %1192 = vrot.lane.b32.xlu0 %v1001_v55, %s6072_s4  ;;  %v1081_v1 = vpop.permute.xlu0 %1080  ;;  %484 = vst.msk [vmem:[#allocation2 + $0x221] sm:$0xff] %vm272_vm0, %v67_v45  ;;  %481 = vst.msk [vmem:[#allocation2 + $0x209] sm:$0xff] %vm272_vm0, %v64_v46  ;;  %v74_v52 = vld [vmem:[%s8546_s0 + $0x1d0] sm:$0xff]  ;;  %v72_v54 = vld [vmem:[%s8546_s0 + $0x1c0] sm:$0xff] }
  0xa3   :  { %v1079_v58 = vpop.permute.xlu1 %1078  ;;  %1269 = vst.msk [vmem:[#allocation3 + $0x20] sm:$0xff] %vm1264_vm3, %v1081_v1  ;;  %v1354_v55 = vld [vmem:[#allocation2 + $0x1e2] ss:$2 sm:$0xff]  ;;  %v83_v61 = vld [vmem:[%s8546_s0 + $0x218] sm:$0xff] }
  0xa4   :  { %1268 = vst.msk [vmem:[#allocation3 + $0x18] sm:$0xff] %vm1264_vm3, %v1079_v58  ;;  %v81_v59 = vld [vmem:[%s8546_s0 + $0x208] sm:$0xff]  ;;  %v82_v60 = vld [vmem:[%s8546_s0 + $0x210] sm:$0xff]  ;;  %v91_v5 = vld [vmem:[%s8546_s0 + $0x258] sm:$0xff] }
  0xa5   :  { %1194 = vrot.lane.b32.xlu1 %v1003_v56, %s6072_s4  ;;  %490 = vst.msk [vmem:[#allocation2 + $0x261] sm:$0xff] %vm272_vm0, %v73_v51  ;;  %491 = vst.msk [vmem:[#allocation2 + $0x269] sm:$0xff] %vm272_vm0, %v74_v52  ;;  %v1356_v56 = vld [vmem:[#allocation2 + $0x1f2] ss:$2 sm:$0xff]  ;;  %v1360_v0 = vld [vmem:[#allocation2 + $0x242] ss:$2 sm:$0xff] }
  0xa6   :  { %1196 = vrot.lane.b32.xlu0 %v1005_v62, %s6072_s4  ;;  %v1085_v9 = vpop.permute.xlu0 %1084  ;;  %492 = vst.msk [vmem:[#allocation2 + $0x271] sm:$0xff] %vm272_vm0, %v75_v53  ;;  %489 = vst.msk [vmem:[#allocation2 + $0x259] sm:$0xff] %vm272_vm0, %v72_v54  ;;  %v80_v62 = vld [vmem:[%s8546_s0 + $0x200] sm:$0xff]  ;;  %v89_v3 = vld [vmem:[%s8546_s0 + $0x248] sm:$0xff] }
  0xa7   :  { %v1083_v2 = vpop.permute.xlu1 %1082  ;;  %1271 = vst.msk [vmem:[#allocation3 + $0x30] sm:$0xff] %vm1264_vm3, %v1085_v9  ;;  %v90_v4 = vld [vmem:[%s8546_s0 + $0x250] sm:$0xff]  ;;  %v97_v11 = vld [vmem:[%s8546_s0 + $0x288] sm:$0xff]  ;;  %v99_v13 = vld [vmem:[%s8546_s0 + $0x298] sm:$0xff] }
  0xa8   :  { %1270 = vst.msk [vmem:[#allocation3 + $0x28] sm:$0xff] %vm1264_vm3, %v1083_v2  ;;  %v1364_v8 = vld [vmem:[#allocation2 + $0x292] ss:$2 sm:$0xff]  ;;  %v105_v19 = vld [vmem:[%s8546_s0 + $0x2c8] sm:$0xff] }
  0xa9   :  { %1198 = vrot.lane.b32.xlu1 %v1007_v63, %s6072_s4  ;;  %498 = vst.msk [vmem:[#allocation2 + $0x2b1] sm:$0xff] %vm272_vm0, %v81_v59  ;;  %499 = vst.msk [vmem:[#allocation2 + $0x2b9] sm:$0xff] %vm272_vm0, %v82_v60  ;;  %v1358_v63 = vld [vmem:[#allocation2 + $0x232] ss:$2 sm:$0xff]  ;;  %v113_v27 = vld [vmem:[%s8546_s0 + $0x308] sm:$0xff] }
  0xaa   :  { %1521 = vrot.lane.b32.xlu0 %v1330_v6, %s6073_s12  ;;  %v1089_v17 = vpop.permute.xlu0 %1088  ;;  %500 = vst.msk [vmem:[#allocation2 + $0x2c1] sm:$0xff] %vm272_vm0, %v83_v61  ;;  %497 = vst.msk [vmem:[#allocation2 + $0x2a9] sm:$0xff] %vm272_vm0, %v80_v62  ;;  %v88_v6 = vld [vmem:[%s8546_s0 + $0x240] sm:$0xff]  ;;  %v98_v12 = vld [vmem:[%s8546_s0 + $0x290] sm:$0xff] }
  0xab   :  { %v1087_v10 = vpop.permute.xlu1 %1086  ;;  %1273 = vst.msk [vmem:[#allocation3 + $0x40] sm:$0xff] %vm1264_vm3, %v1089_v17  ;;  %v96_v14 = vld [vmem:[%s8546_s0 + $0x280] sm:$0xff]  ;;  %v106_v20 = vld [vmem:[%s8546_s0 + $0x2d0] sm:$0xff]  ;;  %v107_v21 = vld [vmem:[%s8546_s0 + $0x2d8] sm:$0xff] }
  0xac   :  { %1272 = vst.msk [vmem:[#allocation3 + $0x38] sm:$0xff] %vm1264_vm3, %v1087_v10  ;;  %v104_v22 = vld [vmem:[%s8546_s0 + $0x2c0] sm:$0xff]  ;;  %v114_v28 = vld [vmem:[%s8546_s0 + $0x310] sm:$0xff]  ;;  %v115_v29 = vld [vmem:[%s8546_s0 + $0x318] sm:$0xff] }
  0xad   :  { %1523 = vrot.lane.b32.xlu1 %v1332_v7, %s6073_s12  ;;  %506 = vst.msk [vmem:[#allocation2 + $0x301] sm:$0xff] %vm272_vm0, %v89_v3  ;;  %507 = vst.msk [vmem:[#allocation2 + $0x309] sm:$0xff] %vm272_vm0, %v90_v4  ;;  %v1362_v7 = vld [vmem:[#allocation2 + $0x282] ss:$2 sm:$0xff]  ;;  %v123_v37 = vld [vmem:[%s8546_s0 + $0x358] sm:$0xff] }
  0xae   :  { %1525 = vrot.lane.b32.xlu0 %v1334_v15, %s6073_s12  ;;  %v1093_v25 = vpop.permute.xlu0 %1092  ;;  %508 = vst.msk [vmem:[#allocation2 + $0x311] sm:$0xff] %vm272_vm0, %v91_v5  ;;  %505 = vst.msk [vmem:[#allocation2 + $0x2f9] sm:$0xff] %vm272_vm0, %v88_v6  ;;  %v1366_v15 = vld [vmem:[#allocation2 + $0x2d2] ss:$2 sm:$0xff]  ;;  %v121_v35 = vld [vmem:[%s8546_s0 + $0x348] sm:$0xff] }
  0xaf   :  { %v1091_v18 = vpop.permute.xlu1 %1090  ;;  %1275 = vst.msk [vmem:[#allocation3 + $0x50] sm:$0xff] %vm1264_vm3, %v1093_v25  ;;  %v112_v30 = vld [vmem:[%s8546_s0 + $0x300] sm:$0xff]  ;;  %v122_v36 = vld [vmem:[%s8546_s0 + $0x350] sm:$0xff]  ;;  %v129_v43 = vld [vmem:[%s8546_s0 + $0x388] sm:$0xff] }
  0xb0   :  { %1274 = vst.msk [vmem:[#allocation3 + $0x48] sm:$0xff] %vm1264_vm3, %v1091_v18  ;;  %v120_v38 = vld [vmem:[%s8546_s0 + $0x340] sm:$0xff]  ;;  %v130_v44 = vld [vmem:[%s8546_s0 + $0x390] sm:$0xff]  ;;  %v131_v45 = vld [vmem:[%s8546_s0 + $0x398] sm:$0xff] }
  0xb1   :  { %1527 = vrot.lane.b32.xlu1 %v1336_v16, %s6073_s12  ;;  %514 = vst.msk [vmem:[#allocation2 + $0x351] sm:$0xff] %vm272_vm0, %v97_v11  ;;  %515 = vst.msk [vmem:[#allocation2 + $0x359] sm:$0xff] %vm272_vm0, %v98_v12  ;;  %v1368_v16 = vld [vmem:[#allocation2 + $0x2e2] ss:$2 sm:$0xff]  ;;  %v139_v53 = vld [vmem:[%s8546_s0 + $0x3d8] sm:$0xff] }
  0xb2   :  { %1529 = vrot.lane.b32.xlu0 %v1338_v23, %s6073_s12  ;;  %v1097_v33 = vpop.permute.xlu0 %1096  ;;  %516 = vst.msk [vmem:[#allocation2 + $0x361] sm:$0xff] %vm272_vm0, %v99_v13  ;;  %513 = vst.msk [vmem:[#allocation2 + $0x349] sm:$0xff] %vm272_vm0, %v96_v14  ;;  %v1370_v23 = vld [vmem:[#allocation2 + $0x322] ss:$2 sm:$0xff]  ;;  %v147_v61 = vld [vmem:[%s8546_s0 + $0x418] sm:$0xff] }
  0xb3   :  { %v1095_v26 = vpop.permute.xlu1 %1094  ;;  %1277 = vst.msk [vmem:[#allocation3 + $0x60] sm:$0xff] %vm1264_vm3, %v1097_v33  ;;  %v128_v46 = vld [vmem:[%s8546_s0 + $0x380] sm:$0xff]  ;;  %v137_v51 = vld [vmem:[%s8546_s0 + $0x3c8] sm:$0xff]  ;;  %v138_v52 = vld [vmem:[%s8546_s0 + $0x3d0] sm:$0xff] }
  0xb4   :  { %1276 = vst.msk [vmem:[#allocation3 + $0x58] sm:$0xff] %vm1264_vm3, %v1095_v26  ;;  %v136_v54 = vld [vmem:[%s8546_s0 + $0x3c0] sm:$0xff]  ;;  %v145_v59 = vld [vmem:[%s8546_s0 + $0x408] sm:$0xff]  ;;  %v146_v60 = vld [vmem:[%s8546_s0 + $0x410] sm:$0xff] }
  0xb5   :  { %1531 = vrot.lane.b32.xlu1 %v1340_v24, %s6073_s12  ;;  %522 = vst.msk [vmem:[#allocation2 + $0x3a1] sm:$0xff] %vm272_vm0, %v105_v19  ;;  %523 = vst.msk [vmem:[#allocation2 + $0x3a9] sm:$0xff] %vm272_vm0, %v106_v20  ;;  %v1372_v24 = vld [vmem:[#allocation2 + $0x332] ss:$2 sm:$0xff]  ;;  %v153_v3 = vld [vmem:[%s8546_s0 + $0x448] sm:$0xff] }
  0xb6   :  { %1533 = vrot.lane.b32.xlu0 %v1342_v31, %s6073_s12  ;;  %v1101_v41 = vpop.permute.xlu0 %1100  ;;  %524 = vst.msk [vmem:[#allocation2 + $0x3b1] sm:$0xff] %vm272_vm0, %v107_v21  ;;  %521 = vst.msk [vmem:[#allocation2 + $0x399] sm:$0xff] %vm272_vm0, %v104_v22  ;;  %v1374_v31 = vld [vmem:[#allocation2 + $0x372] ss:$2 sm:$0xff]  ;;  %v161_v11 = vld [vmem:[%s8546_s0 + $0x488] sm:$0xff] }
  0xb7   :  { %v1099_v34 = vpop.permute.xlu1 %1098  ;;  %1279 = vst.msk [vmem:[#allocation3 + $0x70] sm:$0xff] %vm1264_vm3, %v1101_v41  ;;  %v144_v62 = vld [vmem:[%s8546_s0 + $0x400] sm:$0xff]  ;;  %v154_v4 = vld [vmem:[%s8546_s0 + $0x450] sm:$0xff]  ;;  %v155_v5 = vld [vmem:[%s8546_s0 + $0x458] sm:$0xff] }
  0xb8   :  { %1278 = vst.msk [vmem:[#allocation3 + $0x68] sm:$0xff] %vm1264_vm3, %v1099_v34  ;;  %v152_v6 = vld [vmem:[%s8546_s0 + $0x440] sm:$0xff]  ;;  %v162_v12 = vld [vmem:[%s8546_s0 + $0x490] sm:$0xff]  ;;  %v163_v13 = vld [vmem:[%s8546_s0 + $0x498] sm:$0xff] }
  0xb9   :  { %1535 = vrot.lane.b32.xlu1 %v1344_v32, %s6073_s12  ;;  %530 = vst.msk [vmem:[#allocation2 + $0x3f1] sm:$0xff] %vm272_vm0, %v113_v27  ;;  %531 = vst.msk [vmem:[#allocation2 + $0x3f9] sm:$0xff] %vm272_vm0, %v114_v28  ;;  %v1376_v32 = vld [vmem:[#allocation2 + $0x382] ss:$2 sm:$0xff]  ;;  %v171_v21 = vld [vmem:[%s8546_s0 + $0x4d8] sm:$0xff] }
  0xba   :  { %1537 = vrot.lane.b32.xlu0 %v1346_v39, %s6073_s12  ;;  %v1105_v49 = vpop.permute.xlu0 %1104  ;;  %532 = vst.msk [vmem:[#allocation2 + $0x401] sm:$0xff] %vm272_vm0, %v115_v29  ;;  %529 = vst.msk [vmem:[#allocation2 + $0x3e9] sm:$0xff] %vm272_vm0, %v112_v30  ;;  %v1378_v39 = vld [vmem:[#allocation2 + $0x3c2] ss:$2 sm:$0xff]  ;;  %v179_v29 = vld [vmem:[%s8546_s0 + $0x518] sm:$0xff] }
  0xbb   :  { %v1103_v42 = vpop.permute.xlu1 %1102  ;;  %1281 = vst.msk [vmem:[#allocation3 + $0x80] sm:$0xff] %vm1264_vm3, %v1105_v49  ;;  %v160_v14 = vld [vmem:[%s8546_s0 + $0x480] sm:$0xff]  ;;  %v169_v19 = vld [vmem:[%s8546_s0 + $0x4c8] sm:$0xff]  ;;  %v170_v20 = vld [vmem:[%s8546_s0 + $0x4d0] sm:$0xff] }
  0xbc   :  { %1280 = vst.msk [vmem:[#allocation3 + $0x78] sm:$0xff] %vm1264_vm3, %v1103_v42  ;;  %v168_v22 = vld [vmem:[%s8546_s0 + $0x4c0] sm:$0xff]  ;;  %v177_v27 = vld [vmem:[%s8546_s0 + $0x508] sm:$0xff]  ;;  %v178_v28 = vld [vmem:[%s8546_s0 + $0x510] sm:$0xff] }
  0xbd   :  { %1539 = vrot.lane.b32.xlu1 %v1348_v40, %s6073_s12  ;;  %538 = vst.msk [vmem:[#allocation2 + $0x441] sm:$0xff] %vm272_vm0, %v121_v35  ;;  %539 = vst.msk [vmem:[#allocation2 + $0x449] sm:$0xff] %vm272_vm0, %v122_v36  ;;  %v1380_v40 = vld [vmem:[#allocation2 + $0x3d2] ss:$2 sm:$0xff]  ;;  %v185_v35 = vld [vmem:[%s8546_s0 + $0x548] sm:$0xff] }
  0xbe   :  { %1541 = vrot.lane.b32.xlu0 %v1350_v47, %s6073_s12  ;;  %v1109_v57 = vpop.permute.xlu0 %1108  ;;  %540 = vst.msk [vmem:[#allocation2 + $0x451] sm:$0xff] %vm272_vm0, %v123_v37  ;;  %537 = vst.msk [vmem:[#allocation2 + $0x439] sm:$0xff] %vm272_vm0, %v120_v38  ;;  %v1382_v47 = vld [vmem:[#allocation2 + $0x412] ss:$2 sm:$0xff] }
  0xbf   :  { %v1107_v50 = vpop.permute.xlu1 %1106  ;;  %1283 = vst.msk [vmem:[#allocation3 + $0x90] sm:$0xff] %vm1264_vm3, %v1109_v57  ;;  %v176_v30 = vld [vmem:[%s8546_s0 + $0x500] sm:$0xff]  ;;  %v186_v36 = vld [vmem:[%s8546_s0 + $0x550] sm:$0xff]  ;;  %v187_v37 = vld [vmem:[%s8546_s0 + $0x558] sm:$0xff] }
  0xc0   :  { %1282 = vst.msk [vmem:[#allocation3 + $0x88] sm:$0xff] %vm1264_vm3, %v1107_v50  ;;  %v184_v38 = vld [vmem:[%s8546_s0 + $0x540] sm:$0xff] }
  0xc1   :  { %1543 = vrot.lane.b32.xlu1 %v1352_v48, %s6073_s12  ;;  %546 = vst.msk [vmem:[#allocation2 + $0x491] sm:$0xff] %vm272_vm0, %v129_v43  ;;  %547 = vst.msk [vmem:[#allocation2 + $0x499] sm:$0xff] %vm272_vm0, %v130_v44  ;;  %v1384_v48 = vld [vmem:[#allocation2 + $0x422] ss:$2 sm:$0xff] }
  0xc2   :  { %1545 = vrot.lane.b32.xlu0 %v1354_v55, %s6073_s12  ;;  %v1113_v1 = vpop.permute.xlu0 %1112  ;;  %548 = vst.msk [vmem:[#allocation2 + $0x4a1] sm:$0xff] %vm272_vm0, %v131_v45  ;;  %545 = vst.msk [vmem:[#allocation2 + $0x489] sm:$0xff] %vm272_vm0, %v128_v46  ;;  %v1386_v55 = vld [vmem:[#allocation2 + $0x462] ss:$2 sm:$0xff]  ;;  %v195_v45 = vld [vmem:[%s8546_s0 + $0x598] sm:$0xff] }
  0xc3   :  { %v1111_v58 = vpop.permute.xlu1 %1110  ;;  %1285 = vst.msk [vmem:[#allocation3 + $0xa0] sm:$0xff] %vm1264_vm3, %v1113_v1  ;;  %v193_v43 = vld [vmem:[%s8546_s0 + $0x588] sm:$0xff]  ;;  %v194_v44 = vld [vmem:[%s8546_s0 + $0x590] sm:$0xff]  ;;  %v192_v46 = vld [vmem:[%s8546_s0 + $0x580] sm:$0xff] }
  0xc4   :  { %1284 = vst.msk [vmem:[#allocation3 + $0x98] sm:$0xff] %vm1264_vm3, %v1111_v58 }
  0xc5   :  { %1547 = vrot.lane.b32.xlu1 %v1356_v56, %s6073_s12  ;;  %554 = vst.msk [vmem:[#allocation2 + $0x4e1] sm:$0xff] %vm272_vm0, %v137_v51  ;;  %555 = vst.msk [vmem:[#allocation2 + $0x4e9] sm:$0xff] %vm272_vm0, %v138_v52  ;;  %v1388_v56 = vld [vmem:[#allocation2 + $0x472] ss:$2 sm:$0xff]  ;;  %v201_v51 = vld [vmem:[%s8546_s0 + $0x5c8] sm:$0xff] }
  0xc6   :  { %1549 = vrot.lane.b32.xlu0 %v1358_v63, %s6073_s12  ;;  %v1117_v9 = vpop.permute.xlu0 %1116  ;;  %556 = vst.msk [vmem:[#allocation2 + $0x4f1] sm:$0xff] %vm272_vm0, %v139_v53  ;;  %553 = vst.msk [vmem:[#allocation2 + $0x4d9] sm:$0xff] %vm272_vm0, %v136_v54  ;;  %v1390_v63 = vld [vmem:[#allocation2 + $0x4b2] ss:$2 sm:$0xff] }
  0xc7   :  { %v1115_v2 = vpop.permute.xlu1 %1114  ;;  %1287 = vst.msk [vmem:[#allocation3 + $0xb0] sm:$0xff] %vm1264_vm3, %v1117_v9  ;;  %v202_v52 = vld [vmem:[%s8546_s0 + $0x5d0] sm:$0xff]  ;;  %v203_v53 = vld [vmem:[%s8546_s0 + $0x5d8] sm:$0xff]  ;;  %v200_v54 = vld [vmem:[%s8546_s0 + $0x5c0] sm:$0xff] }
  0xc8   :  { %1286 = vst.msk [vmem:[#allocation3 + $0xa8] sm:$0xff] %vm1264_vm3, %v1115_v2 }
  0xc9   :  { %1551 = vrot.lane.b32.xlu1 %v1360_v0, %s6073_s12  ;;  %562 = vst.msk [vmem:[#allocation2 + $0x581] sm:$0xff] %vm272_vm0, %v145_v59  ;;  %563 = vst.msk [vmem:[#allocation2 + $0x589] sm:$0xff] %vm272_vm0, %v146_v60  ;;  %v1392_v0 = vld [vmem:[#allocation2 + $0x4c2] ss:$2 sm:$0xff] }
  0xca   :  { %1553 = vrot.lane.b32.xlu0 %v1362_v7, %s6073_s12  ;;  %v1121_v17 = vpop.permute.xlu0 %1120  ;;  %564 = vst.msk [vmem:[#allocation2 + $0x591] sm:$0xff] %vm272_vm0, %v147_v61  ;;  %561 = vst.msk [vmem:[#allocation2 + $0x579] sm:$0xff] %vm272_vm0, %v144_v62  ;;  %v1394_v7 = vld [vmem:[#allocation2 + $0x552] ss:$2 sm:$0xff]  ;;  %v209_v59 = vld [vmem:[%s8546_s0 + $0x608] sm:$0xff] }
  0xcb   :  { %v1119_v10 = vpop.permute.xlu1 %1118  ;;  %1289 = vst.msk [vmem:[#allocation3 + $0xc0] sm:$0xff] %vm1264_vm3, %v1121_v17  ;;  %v210_v60 = vld [vmem:[%s8546_s0 + $0x610] sm:$0xff]  ;;  %v211_v61 = vld [vmem:[%s8546_s0 + $0x618] sm:$0xff]  ;;  %v208_v62 = vld [vmem:[%s8546_s0 + $0x600] sm:$0xff] }
  0xcc   :  { %1288 = vst.msk [vmem:[#allocation3 + $0xb8] sm:$0xff] %vm1264_vm3, %v1119_v10 }
  0xcd   :  { %1555 = vrot.lane.b32.xlu1 %v1364_v8, %s6073_s12  ;;  %570 = vst.msk [vmem:[#allocation2 + $0x5d1] sm:$0xff] %vm272_vm0, %v153_v3  ;;  %571 = vst.msk [vmem:[#allocation2 + $0x5d9] sm:$0xff] %vm272_vm0, %v154_v4  ;;  %v1396_v8 = vld [vmem:[#allocation2 + $0x562] ss:$2 sm:$0xff] }
  0xce   :  { %1557 = vrot.lane.b32.xlu0 %v1366_v15, %s6073_s12  ;;  %v1125_v25 = vpop.permute.xlu0 %1124  ;;  %572 = vst.msk [vmem:[#allocation2 + $0x5e1] sm:$0xff] %vm272_vm0, %v155_v5  ;;  %569 = vst.msk [vmem:[#allocation2 + $0x5c9] sm:$0xff] %vm272_vm0, %v152_v6  ;;  %v1398_v15 = vld [vmem:[#allocation2 + $0x5a2] ss:$2 sm:$0xff]  ;;  %v219_v5 = vld [vmem:[%s8546_s0 + $0x658] sm:$0xff] }
  0xcf   :  { %v1123_v18 = vpop.permute.xlu1 %1122  ;;  %1291 = vst.msk [vmem:[#allocation3 + $0xd0] sm:$0xff] %vm1264_vm3, %v1125_v25  ;;  %v217_v3 = vld [vmem:[%s8546_s0 + $0x648] sm:$0xff]  ;;  %v218_v4 = vld [vmem:[%s8546_s0 + $0x650] sm:$0xff]  ;;  %v216_v6 = vld [vmem:[%s8546_s0 + $0x640] sm:$0xff] }
  0xd0   :  { %1290 = vst.msk [vmem:[#allocation3 + $0xc8] sm:$0xff] %vm1264_vm3, %v1123_v18 }
  0xd1   :  { %1559 = vrot.lane.b32.xlu1 %v1368_v16, %s6073_s12  ;;  %578 = vst.msk [vmem:[#allocation2 + $0x621] sm:$0xff] %vm272_vm0, %v161_v11  ;;  %579 = vst.msk [vmem:[#allocation2 + $0x629] sm:$0xff] %vm272_vm0, %v162_v12  ;;  %v1400_v16 = vld [vmem:[#allocation2 + $0x5b2] ss:$2 sm:$0xff]  ;;  %v225_v11 = vld [vmem:[%s8546_s0 + $0x688] sm:$0xff] }
  0xd2   :  { %1561 = vrot.lane.b32.xlu0 %v1370_v23, %s6073_s12  ;;  %v1129_v33 = vpop.permute.xlu0 %1128  ;;  %580 = vst.msk [vmem:[#allocation2 + $0x631] sm:$0xff] %vm272_vm0, %v163_v13  ;;  %577 = vst.msk [vmem:[#allocation2 + $0x619] sm:$0xff] %vm272_vm0, %v160_v14  ;;  %v1402_v23 = vld [vmem:[#allocation2 + $0x5f2] ss:$2 sm:$0xff] }
  0xd3   :  { %v1127_v26 = vpop.permute.xlu1 %1126  ;;  %1293 = vst.msk [vmem:[#allocation3 + $0xe0] sm:$0xff] %vm1264_vm3, %v1129_v33  ;;  %v226_v12 = vld [vmem:[%s8546_s0 + $0x690] sm:$0xff]  ;;  %v227_v13 = vld [vmem:[%s8546_s0 + $0x698] sm:$0xff]  ;;  %v224_v14 = vld [vmem:[%s8546_s0 + $0x680] sm:$0xff] }
  0xd4   :  { %1292 = vst.msk [vmem:[#allocation3 + $0xd8] sm:$0xff] %vm1264_vm3, %v1127_v26 }
  0xd5   :  { %1563 = vrot.lane.b32.xlu1 %v1372_v24, %s6073_s12  ;;  %586 = vst.msk [vmem:[#allocation2 + $0x671] sm:$0xff] %vm272_vm0, %v169_v19  ;;  %587 = vst.msk [vmem:[#allocation2 + $0x679] sm:$0xff] %vm272_vm0, %v170_v20  ;;  %v1404_v24 = vld [vmem:[#allocation2 + $0x602] ss:$2 sm:$0xff] }
  0xd6   :  { %1565 = vrot.lane.b32.xlu0 %v1374_v31, %s6073_s12  ;;  %v1133_v41 = vpop.permute.xlu0 %1132  ;;  %588 = vst.msk [vmem:[#allocation2 + $0x681] sm:$0xff] %vm272_vm0, %v171_v21  ;;  %585 = vst.msk [vmem:[#allocation2 + $0x669] sm:$0xff] %vm272_vm0, %v168_v22  ;;  %v1406_v31 = vld [vmem:[#allocation2 + $0x642] ss:$2 sm:$0xff]  ;;  %v235_v21 = vld [vmem:[%s8546_s0 + $0x6d8] sm:$0xff] }
  0xd7   :  { %v1131_v34 = vpop.permute.xlu1 %1130  ;;  %1295 = vst.msk [vmem:[#allocation3 + $0xf0] sm:$0xff] %vm1264_vm3, %v1133_v41  ;;  %v233_v19 = vld [vmem:[%s8546_s0 + $0x6c8] sm:$0xff]  ;;  %v234_v20 = vld [vmem:[%s8546_s0 + $0x6d0] sm:$0xff]  ;;  %v232_v22 = vld [vmem:[%s8546_s0 + $0x6c0] sm:$0xff] }
  0xd8   :  { %1294 = vst.msk [vmem:[#allocation3 + $0xe8] sm:$0xff] %vm1264_vm3, %v1131_v34 }
  0xd9   :  { %1567 = vrot.lane.b32.xlu1 %v1376_v32, %s6073_s12  ;;  %594 = vst.msk [vmem:[#allocation2 + $0x6c1] sm:$0xff] %vm272_vm0, %v177_v27  ;;  %595 = vst.msk [vmem:[#allocation2 + $0x6c9] sm:$0xff] %vm272_vm0, %v178_v28  ;;  %v1408_v32 = vld [vmem:[#allocation2 + $0x652] ss:$2 sm:$0xff]  ;;  %v241_v27 = vld [vmem:[%s8546_s0 + $0x708] sm:$0xff] }
  0xda   :  { %1569 = vrot.lane.b32.xlu0 %v1378_v39, %s6073_s12  ;;  %v1137_v49 = vpop.permute.xlu0 %1136  ;;  %596 = vst.msk [vmem:[#allocation2 + $0x6d1] sm:$0xff] %vm272_vm0, %v179_v29  ;;  %593 = vst.msk [vmem:[#allocation2 + $0x6b9] sm:$0xff] %vm272_vm0, %v176_v30  ;;  %v1410_v39 = vld [vmem:[#allocation2 + $0x692] ss:$2 sm:$0xff] }
  0xdb   :  { %v1135_v42 = vpop.permute.xlu1 %1134  ;;  %1297 = vst.msk [vmem:[#allocation3 + $0x100] sm:$0xff] %vm1264_vm3, %v1137_v49  ;;  %v242_v28 = vld [vmem:[%s8546_s0 + $0x710] sm:$0xff]  ;;  %v243_v29 = vld [vmem:[%s8546_s0 + $0x718] sm:$0xff]  ;;  %v240_v30 = vld [vmem:[%s8546_s0 + $0x700] sm:$0xff] }
  0xdc   :  { %1296 = vst.msk [vmem:[#allocation3 + $0xf8] sm:$0xff] %vm1264_vm3, %v1135_v42 }
  0xdd   :  { %1571 = vrot.lane.b32.xlu1 %v1380_v40, %s6073_s12  ;;  %602 = vst.msk [vmem:[#allocation2 + $0x711] sm:$0xff] %vm272_vm0, %v185_v35  ;;  %603 = vst.msk [vmem:[#allocation2 + $0x719] sm:$0xff] %vm272_vm0, %v186_v36  ;;  %v1412_v40 = vld [vmem:[#allocation2 + $0x6a2] ss:$2 sm:$0xff] }
  0xde   :  { %1573 = vrot.lane.b32.xlu0 %v1382_v47, %s6073_s12  ;;  %v1141_v57 = vpop.permute.xlu0 %1140  ;;  %604 = vst.msk [vmem:[#allocation2 + $0x721] sm:$0xff] %vm272_vm0, %v187_v37  ;;  %601 = vst.msk [vmem:[#allocation2 + $0x709] sm:$0xff] %vm272_vm0, %v184_v38  ;;  %v1414_v47 = vld [vmem:[#allocation2 + $0x6e2] ss:$2 sm:$0xff]  ;;  %v251_v37 = vld [vmem:[%s8546_s0 + $0x758] sm:$0xff] }
  0xdf   :  { %v1139_v50 = vpop.permute.xlu1 %1138  ;;  %1299 = vst.msk [vmem:[#allocation3 + $0x110] sm:$0xff] %vm1264_vm3, %v1141_v57  ;;  %v249_v35 = vld [vmem:[%s8546_s0 + $0x748] sm:$0xff]  ;;  %v250_v36 = vld [vmem:[%s8546_s0 + $0x750] sm:$0xff]  ;;  %v248_v38 = vld [vmem:[%s8546_s0 + $0x740] sm:$0xff] }
  0xe0   :  { %1298 = vst.msk [vmem:[#allocation3 + $0x108] sm:$0xff] %vm1264_vm3, %v1139_v50 }
  0xe1   :  { %1575 = vrot.lane.b32.xlu1 %v1384_v48, %s6073_s12  ;;  %610 = vst.msk [vmem:[#allocation2 + $0x761] sm:$0xff] %vm272_vm0, %v193_v43  ;;  %611 = vst.msk [vmem:[#allocation2 + $0x769] sm:$0xff] %vm272_vm0, %v194_v44  ;;  %v1416_v48 = vld [vmem:[#allocation2 + $0x6f2] ss:$2 sm:$0xff]  ;;  %v257_v43 = vld [vmem:[%s8546_s0 + $0x788] sm:$0xff] }
  0xe2   :  { %1577 = vrot.lane.b32.xlu0 %v1386_v55, %s6073_s12  ;;  %v1145_v1 = vpop.permute.xlu0 %1144  ;;  %612 = vst.msk [vmem:[#allocation2 + $0x771] sm:$0xff] %vm272_vm0, %v195_v45  ;;  %609 = vst.msk [vmem:[#allocation2 + $0x759] sm:$0xff] %vm272_vm0, %v192_v46  ;;  %v1418_v55 = vld [vmem:[#allocation2 + $0x732] ss:$2 sm:$0xff] }
  0xe3   :  { %v1143_v58 = vpop.permute.xlu1 %1142  ;;  %1301 = vst.msk [vmem:[#allocation3 + $0x120] sm:$0xff] %vm1264_vm3, %v1145_v1  ;;  %v258_v44 = vld [vmem:[%s8546_s0 + $0x790] sm:$0xff]  ;;  %v259_v45 = vld [vmem:[%s8546_s0 + $0x798] sm:$0xff]  ;;  %v256_v46 = vld [vmem:[%s8546_s0 + $0x780] sm:$0xff] }
  0xe4   :  { %1300 = vst.msk [vmem:[#allocation3 + $0x118] sm:$0xff] %vm1264_vm3, %v1143_v58 }
  0xe5   :  { %1579 = vrot.lane.b32.xlu1 %v1388_v56, %s6073_s12  ;;  %618 = vst.msk [vmem:[#allocation2 + $0x7b1] sm:$0xff] %vm272_vm0, %v201_v51  ;;  %619 = vst.msk [vmem:[#allocation2 + $0x7b9] sm:$0xff] %vm272_vm0, %v202_v52  ;;  %v1420_v56 = vld [vmem:[#allocation2 + $0x742] ss:$2 sm:$0xff] }
  0xe6   :  { %1581 = vrot.lane.b32.xlu0 %v1390_v63, %s6073_s12  ;;  %v1149_v9 = vpop.permute.xlu0 %1148  ;;  %620 = vst.msk [vmem:[#allocation2 + $0x7c1] sm:$0xff] %vm272_vm0, %v203_v53  ;;  %617 = vst.msk [vmem:[#allocation2 + $0x7a9] sm:$0xff] %vm272_vm0, %v200_v54  ;;  %v1422_v63 = vld [vmem:[#allocation2 + $0x782] ss:$2 sm:$0xff]  ;;  %v267_v53 = vld [vmem:[%s8546_s0 + $0x7d8] sm:$0xff] }
  0xe7   :  { %v1147_v2 = vpop.permute.xlu1 %1146  ;;  %1303 = vst.msk [vmem:[#allocation3 + $0x130] sm:$0xff] %vm1264_vm3, %v1149_v9  ;;  %v265_v51 = vld [vmem:[%s8546_s0 + $0x7c8] sm:$0xff]  ;;  %v266_v52 = vld [vmem:[%s8546_s0 + $0x7d0] sm:$0xff]  ;;  %v264_v54 = vld [vmem:[%s8546_s0 + $0x7c0] sm:$0xff] }
  0xe8   :  { %1302 = vst.msk [vmem:[#allocation3 + $0x128] sm:$0xff] %vm1264_vm3, %v1147_v2 }
  0xe9   :  { %1583 = vrot.lane.b32.xlu1 %v1392_v0, %s6073_s12  ;;  %626 = vst.msk [vmem:[#allocation2 + $0x801] sm:$0xff] %vm272_vm0, %v209_v59  ;;  %627 = vst.msk [vmem:[#allocation2 + $0x809] sm:$0xff] %vm272_vm0, %v210_v60  ;;  %v1424_v0 = vld [vmem:[#allocation2 + $0x792] ss:$2 sm:$0xff]  ;;  %v1454_v59 = vld [vmem:[#allocation2 + $0xa02] ss:$2 sm:$0xff] }
  0xea   :  { %1585 = vrot.lane.b32.xlu0 %v1394_v7, %s6073_s12  ;;  %v1153_v17 = vpop.permute.xlu0 %1152  ;;  %628 = vst.msk [vmem:[#allocation2 + $0x811] sm:$0xff] %vm272_vm0, %v211_v61  ;;  %625 = vst.msk [vmem:[#allocation2 + $0x7f9] sm:$0xff] %vm272_vm0, %v208_v62  ;;  %v1426_v7 = vld [vmem:[#allocation2 + $0x7d2] ss:$2 sm:$0xff] }
  0xeb   :  { %v1151_v10 = vpop.permute.xlu1 %1150  ;;  %1305 = vst.msk [vmem:[#allocation3 + $0x140] sm:$0xff] %vm1264_vm3, %v1153_v17  ;;  %v1456_v60 = vld [vmem:[#allocation2 + $0xa12] ss:$2 sm:$0xff] }
  0xec   :  { %1304 = vst.msk [vmem:[#allocation3 + $0x138] sm:$0xff] %vm1264_vm3, %v1151_v10 }
  0xed   :  { %1587 = vrot.lane.b32.xlu1 %v1396_v8, %s6073_s12  ;;  %634 = vst.msk [vmem:[#allocation2 + $0x851] sm:$0xff] %vm272_vm0, %v217_v3  ;;  %635 = vst.msk [vmem:[#allocation2 + $0x859] sm:$0xff] %vm272_vm0, %v218_v4  ;;  %v1428_v8 = vld [vmem:[#allocation2 + $0x7e2] ss:$2 sm:$0xff] }
  0xee   :  { %1589 = vrot.lane.b32.xlu0 %v1398_v15, %s6073_s12  ;;  %v1157_v25 = vpop.permute.xlu0 %1156  ;;  %636 = vst.msk [vmem:[#allocation2 + $0x861] sm:$0xff] %vm272_vm0, %v219_v5  ;;  %633 = vst.msk [vmem:[#allocation2 + $0x849] sm:$0xff] %vm272_vm0, %v216_v6  ;;  %v1430_v15 = vld [vmem:[#allocation2 + $0x822] ss:$2 sm:$0xff] }
  0xef   :  { %v1155_v18 = vpop.permute.xlu1 %1154  ;;  %1307 = vst.msk [vmem:[#allocation3 + $0x150] sm:$0xff] %vm1264_vm3, %v1157_v25  ;;  %v1784_v3 = vld [vmem:[#allocation2 + $0x88] ss:$2 sm:$0xff]  ;;  %v1782_v4 = vld [vmem:[#allocation2 + $0x78] ss:$2 sm:$0xff] }
  0xf0   :  { %1306 = vst.msk [vmem:[#allocation3 + $0x148] sm:$0xff] %vm1264_vm3, %v1155_v18 }
  0xf1   :  { %1591 = vrot.lane.b32.xlu1 %v1400_v16, %s6073_s12  ;;  %642 = vst.msk [vmem:[#allocation2 + $0x8a1] sm:$0xff] %vm272_vm0, %v225_v11  ;;  %643 = vst.msk [vmem:[#allocation2 + $0x8a9] sm:$0xff] %vm272_vm0, %v226_v12  ;;  %v1432_v16 = vld [vmem:[#allocation2 + $0x832] ss:$2 sm:$0xff] }
  0xf2   :  { %1593 = vrot.lane.b32.xlu0 %v1402_v23, %s6073_s12  ;;  %644 = vst.msk [vmem:[#allocation2 + $0x8b1] sm:$0xff] %vm272_vm0, %v227_v13  ;;  %641 = vst.msk [vmem:[#allocation2 + $0x899] sm:$0xff] %vm272_vm0, %v224_v14  ;;  %v1434_v23 = vld [vmem:[#allocation2 + $0x872] ss:$2 sm:$0xff] }
  0xf3   :  { %v1159_v26 = vpop.permute.xlu1 %1158  ;;  %650 = vst.msk [vmem:[#allocation2 + $0x8f1] sm:$0xff] %vm272_vm0, %v233_v19  ;;  %651 = vst.msk [vmem:[#allocation2 + $0x8f9] sm:$0xff] %vm272_vm0, %v234_v20  ;;  %v1792_v11 = vld [vmem:[#allocation2 + $0x128] ss:$2 sm:$0xff]  ;;  %v1790_v12 = vld [vmem:[#allocation2 + $0x118] ss:$2 sm:$0xff] }
  0xf4   :  { %1308 = vst.msk [vmem:[#allocation3 + $0x158] sm:$0xff] %vm1264_vm3, %v1159_v26  ;;  %v1161_v33 = vpop.permute.xlu0 %1160  ;;  %v1800_v19 = vld [vmem:[#allocation2 + $0x1c8] ss:$2 sm:$0xff]  ;;  %v1798_v20 = vld [vmem:[#allocation2 + $0x1b8] ss:$2 sm:$0xff] }
  0xf5   :  { %1595 = vrot.lane.b32.xlu1 %v1404_v24, %s6073_s12  ;;  %1309 = vst.msk [vmem:[#allocation3 + $0x160] sm:$0xff] %vm1264_vm3, %v1161_v33  ;;  %v1436_v24 = vld [vmem:[#allocation2 + $0x882] ss:$2 sm:$0xff] }
  0xf6   :  { %1597 = vrot.lane.b32.xlu0 %v1406_v31, %s6073_s12  ;;  %652 = vst.msk [vmem:[#allocation2 + $0x901] sm:$0xff] %vm272_vm0, %v235_v21  ;;  %649 = vst.msk [vmem:[#allocation2 + $0x8e9] sm:$0xff] %vm272_vm0, %v232_v22  ;;  %v1438_v31 = vld [vmem:[#allocation2 + $0x8c2] ss:$2 sm:$0xff] }
  0xf7   :  { %v1163_v34 = vpop.permute.xlu1 %1162  ;;  %658 = vst.msk [vmem:[#allocation2 + $0x941] sm:$0xff] %vm272_vm0, %v241_v27  ;;  %659 = vst.msk [vmem:[#allocation2 + $0x949] sm:$0xff] %vm272_vm0, %v242_v28  ;;  %v1808_v27 = vld [vmem:[#allocation2 + $0x268] ss:$2 sm:$0xff]  ;;  %v1806_v28 = vld [vmem:[#allocation2 + $0x258] ss:$2 sm:$0xff] }
  0xf8   :  { %1310 = vst.msk [vmem:[#allocation3 + $0x168] sm:$0xff] %vm1264_vm3, %v1163_v34  ;;  %v1165_v41 = vpop.permute.xlu0 %1164 }
  0xf9   :  { %1599 = vrot.lane.b32.xlu1 %v1408_v32, %s6073_s12  ;;  %1311 = vst.msk [vmem:[#allocation3 + $0x170] sm:$0xff] %vm1264_vm3, %v1165_v41  ;;  %v1440_v32 = vld [vmem:[#allocation2 + $0x8d2] ss:$2 sm:$0xff] }
  0xfa   :  { %1601 = vrot.lane.b32.xlu0 %v1410_v39, %s6073_s12  ;;  %660 = vst.msk [vmem:[#allocation2 + $0x951] sm:$0xff] %vm272_vm0, %v243_v29  ;;  %657 = vst.msk [vmem:[#allocation2 + $0x939] sm:$0xff] %vm272_vm0, %v240_v30  ;;  %v1442_v39 = vld [vmem:[#allocation2 + $0x912] ss:$2 sm:$0xff] }
  0xfb   :  { %v1167_v42 = vpop.permute.xlu1 %1166  ;;  %666 = vst.msk [vmem:[#allocation2 + $0x991] sm:$0xff] %vm272_vm0, %v249_v35  ;;  %667 = vst.msk [vmem:[#allocation2 + $0x999] sm:$0xff] %vm272_vm0, %v250_v36  ;;  %v1816_v35 = vld [vmem:[#allocation2 + $0x308] ss:$2 sm:$0xff]  ;;  %v1814_v36 = vld [vmem:[#allocation2 + $0x2f8] ss:$2 sm:$0xff] }
  0xfc   :  { %1312 = vst.msk [vmem:[#allocation3 + $0x178] sm:$0xff] %vm1264_vm3, %v1167_v42  ;;  %v1169_v49 = vpop.permute.xlu0 %1168 }
  0xfd   :  { %1603 = vrot.lane.b32.xlu1 %v1412_v40, %s6073_s12  ;;  %1313 = vst.msk [vmem:[#allocation3 + $0x180] sm:$0xff] %vm1264_vm3, %v1169_v49  ;;  %v1444_v40 = vld [vmem:[#allocation2 + $0x922] ss:$2 sm:$0xff] }
  0xfe   :  { %1605 = vrot.lane.b32.xlu0 %v1414_v47, %s6073_s12  ;;  %668 = vst.msk [vmem:[#allocation2 + $0x9a1] sm:$0xff] %vm272_vm0, %v251_v37  ;;  %665 = vst.msk [vmem:[#allocation2 + $0x989] sm:$0xff] %vm272_vm0, %v248_v38  ;;  %v1446_v47 = vld [vmem:[#allocation2 + $0x962] ss:$2 sm:$0xff] }
  0xff   :  { %v1171_v50 = vpop.permute.xlu1 %1170  ;;  %674 = vst.msk [vmem:[#allocation2 + $0x9e1] sm:$0xff] %vm272_vm0, %v257_v43  ;;  %675 = vst.msk [vmem:[#allocation2 + $0x9e9] sm:$0xff] %vm272_vm0, %v258_v44  ;;  %v1824_v43 = vld [vmem:[#allocation2 + $0x3a8] ss:$2 sm:$0xff]  ;;  %v1822_v44 = vld [vmem:[#allocation2 + $0x398] ss:$2 sm:$0xff] }
 0x100   :  { %1314 = vst.msk [vmem:[#allocation3 + $0x188] sm:$0xff] %vm1264_vm3, %v1171_v50  ;;  %v1173_v57 = vpop.permute.xlu0 %1172 }
 0x101   :  { %1607 = vrot.lane.b32.xlu1 %v1416_v48, %s6073_s12  ;;  %1315 = vst.msk [vmem:[#allocation3 + $0x190] sm:$0xff] %vm1264_vm3, %v1173_v57  ;;  %v1448_v48 = vld [vmem:[#allocation2 + $0x972] ss:$2 sm:$0xff] }
 0x102   :  { %1609 = vrot.lane.b32.xlu0 %v1418_v55, %s6073_s12  ;;  %676 = vst.msk [vmem:[#allocation2 + $0x9f1] sm:$0xff] %vm272_vm0, %v259_v45  ;;  %673 = vst.msk [vmem:[#allocation2 + $0x9d9] sm:$0xff] %vm272_vm0, %v256_v46  ;;  %v1450_v55 = vld [vmem:[#allocation2 + $0x9b2] ss:$2 sm:$0xff] }
 0x103   :  { %v1175_v58 = vpop.permute.xlu1 %1174  ;;  %682 = vst.msk [vmem:[#allocation2 + $0xa31] sm:$0xff] %vm272_vm0, %v265_v51  ;;  %683 = vst.msk [vmem:[#allocation2 + $0xa39] sm:$0xff] %vm272_vm0, %v266_v52  ;;  %v1832_v51 = vld [vmem:[#allocation2 + $0x448] ss:$2 sm:$0xff]  ;;  %v1830_v52 = vld [vmem:[#allocation2 + $0x438] ss:$2 sm:$0xff] }
 0x104   :  { %1316 = vst.msk [vmem:[#allocation3 + $0x198] sm:$0xff] %vm1264_vm3, %v1175_v58  ;;  %v1177_v1 = vpop.permute.xlu0 %1176 }
 0x105   :  { %1611 = vrot.lane.b32.xlu1 %v1420_v56, %s6073_s12  ;;  %1317 = vst.msk [vmem:[#allocation3 + $0x1a0] sm:$0xff] %vm1264_vm3, %v1177_v1  ;;  %v1452_v56 = vld [vmem:[#allocation2 + $0x9c2] ss:$2 sm:$0xff] }
 0x106   :  { %1613 = vrot.lane.b32.xlu0 %v1422_v63, %s6073_s12  ;;  %684 = vst.msk [vmem:[#allocation2 + $0xa41] sm:$0xff] %vm272_vm0, %v267_v53  ;;  %681 = vst.msk [vmem:[#allocation2 + $0xa29] sm:$0xff] %vm272_vm0, %v264_v54  ;;  %v1780_v63 = vld [vmem:[#allocation2 + $0x38] ss:$2 sm:$0xff] }
 0x107   :  { %v1179_v2 = vpop.permute.xlu1 %1178 }
 0x108   :  { %1318 = vst.msk [vmem:[#allocation3 + $0x1a8] sm:$0xff] %vm1264_vm3, %v1179_v2  ;;  %v1181_v9 = vpop.permute.xlu0 %1180 }
 0x109   :  { %1615 = vrot.lane.b32.xlu1 %v1424_v0, %s6073_s12  ;;  %1319 = vst.msk [vmem:[#allocation3 + $0x1b0] sm:$0xff] %vm1264_vm3, %v1181_v9  ;;  %v1778_v0 = vld [vmem:[#allocation2 + $0x28] ss:$2 sm:$0xff] }
 0x10a   :  { %1617 = vrot.lane.b32.xlu0 %v1426_v7, %s6073_s12  ;;  %v1788_v7 = vld [vmem:[#allocation2 + $0xd8] ss:$2 sm:$0xff] }
 0x10b   :  { %v1183_v10 = vpop.permute.xlu1 %1182 }
 0x10c   :  { %1320 = vst.msk [vmem:[#allocation3 + $0x1b8] sm:$0xff] %vm1264_vm3, %v1183_v10  ;;  %v1185_v17 = vpop.permute.xlu0 %1184 }
 0x10d   :  { %1619 = vrot.lane.b32.xlu1 %v1428_v8, %s6073_s12  ;;  %1321 = vst.msk [vmem:[#allocation3 + $0x1c0] sm:$0xff] %vm1264_vm3, %v1185_v17  ;;  %v1786_v8 = vld [vmem:[#allocation2 + $0xc8] ss:$2 sm:$0xff] }
 0x10e   :  { %1621 = vrot.lane.b32.xlu0 %v1430_v15, %s6073_s12  ;;  %v1796_v15 = vld [vmem:[#allocation2 + $0x178] ss:$2 sm:$0xff] }
 0x10f   :  { %v1187_v18 = vpop.permute.xlu1 %1186 }
 0x110   :  { %1322 = vst.msk [vmem:[#allocation3 + $0x1c8] sm:$0xff] %vm1264_vm3, %v1187_v18  ;;  %v1189_v25 = vpop.permute.xlu0 %1188 }
 0x111   :  { %1623 = vrot.lane.b32.xlu1 %v1432_v16, %s6073_s12  ;;  %1323 = vst.msk [vmem:[#allocation3 + $0x1d0] sm:$0xff] %vm1264_vm3, %v1189_v25  ;;  %v1794_v16 = vld [vmem:[#allocation2 + $0x168] ss:$2 sm:$0xff] }
 0x112   :  { %1625 = vrot.lane.b32.xlu0 %v1434_v23, %s6073_s12  ;;  %v1804_v23 = vld [vmem:[#allocation2 + $0x218] ss:$2 sm:$0xff] }
 0x113   :  { %v1191_v26 = vpop.permute.xlu1 %1190 }
 0x114   :  { %1324 = vst.msk [vmem:[#allocation3 + $0x1d8] sm:$0xff] %vm1264_vm3, %v1191_v26  ;;  %v1193_v33 = vpop.permute.xlu0 %1192 }
 0x115   :  { %1627 = vrot.lane.b32.xlu1 %v1436_v24, %s6073_s12  ;;  %1325 = vst.msk [vmem:[#allocation3 + $0x1e0] sm:$0xff] %vm1264_vm3, %v1193_v33  ;;  %v1802_v24 = vld [vmem:[#allocation2 + $0x208] ss:$2 sm:$0xff] }
 0x116   :  { %1629 = vrot.lane.b32.xlu0 %v1438_v31, %s6073_s12  ;;  %v1812_v31 = vld [vmem:[#allocation2 + $0x2b8] ss:$2 sm:$0xff] }
 0x117   :  { %v1195_v34 = vpop.permute.xlu1 %1194 }
 0x118   :  { %1326 = vst.msk [vmem:[#allocation3 + $0x1e8] sm:$0xff] %vm1264_vm3, %v1195_v34  ;;  %v1197_v41 = vpop.permute.xlu0 %1196 }
 0x119   :  { %1631 = vrot.lane.b32.xlu1 %v1440_v32, %s6073_s12  ;;  %1327 = vst.msk [vmem:[#allocation3 + $0x1f0] sm:$0xff] %vm1264_vm3, %v1197_v41  ;;  %v1810_v32 = vld [vmem:[#allocation2 + $0x2a8] ss:$2 sm:$0xff] }
 0x11a   :  { %1633 = vrot.lane.b32.xlu0 %v1442_v39, %s6073_s12  ;;  %v1820_v39 = vld [vmem:[#allocation2 + $0x358] ss:$2 sm:$0xff] }
 0x11b   :  { %v1199_v42 = vpop.permute.xlu1 %1198 }
 0x11c   :  { %1328 = vst.msk [vmem:[#allocation3 + $0x1f8] sm:$0xff] %vm1264_vm3, %v1199_v42  ;;  %v1522_v49 = vpop.permute.xlu0 %1521 }
 0x11d   :  { %1635 = vrot.lane.b32.xlu1 %v1444_v40, %s6073_s12  ;;  %1714 = vst.msk [vmem:[#allocation3] sm:$0xff] %vm1713_vm4, %v1522_v49  ;;  %v1818_v40 = vld [vmem:[#allocation2 + $0x348] ss:$2 sm:$0xff] }
 0x11e   :  { %1637 = vrot.lane.b32.xlu0 %v1446_v47, %s6073_s12  ;;  %v1828_v47 = vld [vmem:[#allocation2 + $0x3f8] ss:$2 sm:$0xff] }
 0x11f   :  { %v1524_v50 = vpop.permute.xlu1 %1523 }
 0x120   :  { %1715 = vst.msk [vmem:[#allocation3 + $0x8] sm:$0xff] %vm1713_vm4, %v1524_v50  ;;  %v1526_v57 = vpop.permute.xlu0 %1525 }
 0x121   :  { %1639 = vrot.lane.b32.xlu1 %v1448_v48, %s6073_s12  ;;  %1716 = vst.msk [vmem:[#allocation3 + $0x10] sm:$0xff] %vm1713_vm4, %v1526_v57  ;;  %v1826_v48 = vld [vmem:[#allocation2 + $0x3e8] ss:$2 sm:$0xff] }
 0x122   :  { %1641 = vrot.lane.b32.xlu0 %v1450_v55, %s6073_s12  ;;  %v1836_v55 = vld [vmem:[#allocation2 + $0x498] ss:$2 sm:$0xff] }
 0x123   :  { %v1528_v58 = vpop.permute.xlu1 %1527 }
 0x124   :  { %1717 = vst.msk [vmem:[#allocation3 + $0x18] sm:$0xff] %vm1713_vm4, %v1528_v58  ;;  %v1530_v61 = vpop.permute.xlu0 %1529 }
 0x125   :  { %1643 = vrot.lane.b32.xlu1 %v1452_v56, %s6073_s12  ;;  %1718 = vst.msk [vmem:[#allocation3 + $0x20] sm:$0xff] %vm1713_vm4, %v1530_v61  ;;  %v1834_v56 = vld [vmem:[#allocation2 + $0x488] ss:$2 sm:$0xff] }
 0x126   :  { %1645 = vrot.lane.b32.xlu0 %v1454_v59, %s6073_s12  ;;  %v1840_v59 = vld [vmem:[#allocation2 + $0x4e8] ss:$2 sm:$0xff] }
 0x127   :  { %v1532_v62 = vpop.permute.xlu1 %1531 }
 0x128   :  { %1719 = vst.msk [vmem:[#allocation3 + $0x28] sm:$0xff] %vm1713_vm4, %v1532_v62  ;;  %v1534_v1 = vpop.permute.xlu0 %1533 }
 0x129   :  { %1647 = vrot.lane.b32.xlu1 %v1456_v60, %s6073_s12  ;;  %1720 = vst.msk [vmem:[#allocation3 + $0x30] sm:$0xff] %vm1713_vm4, %v1534_v1  ;;  %v1838_v60 = vld [vmem:[#allocation2 + $0x4d8] ss:$2 sm:$0xff]  ;;  %s6075_s12 = smov 12  }
 0x12a   :  { %1969 = vrot.lane.b32.xlu0 %v1778_v0, %s6074_s13  ;;  %v1842_v0 = vld [vmem:[#allocation2 + $0x578] ss:$2 sm:$0xff] }
 0x12b   :  { %v1536_v2 = vpop.permute.xlu1 %1535 }
 0x12c   :  { %1721 = vst.msk [vmem:[#allocation3 + $0x38] sm:$0xff] %vm1713_vm4, %v1536_v2  ;;  %v1538_v5 = vpop.permute.xlu0 %1537 }
 0x12d   :  { %1971 = vrot.lane.b32.xlu1 %v1780_v63, %s6074_s13  ;;  %1722 = vst.msk [vmem:[#allocation3 + $0x40] sm:$0xff] %vm1713_vm4, %v1538_v5  ;;  %v1844_v63 = vld [vmem:[#allocation2 + $0x588] ss:$2 sm:$0xff] }
 0x12e   :  { %1973 = vrot.lane.b32.xlu0 %v1782_v4, %s6074_s13  ;;  %v1846_v4 = vld [vmem:[#allocation2 + $0x5c8] ss:$2 sm:$0xff] }
 0x12f   :  { %v1540_v6 = vpop.permute.xlu1 %1539 }
 0x130   :  { %1723 = vst.msk [vmem:[#allocation3 + $0x48] sm:$0xff] %vm1713_vm4, %v1540_v6  ;;  %v1542_v9 = vpop.permute.xlu0 %1541 }
 0x131   :  { %1975 = vrot.lane.b32.xlu1 %v1784_v3, %s6074_s13  ;;  %1724 = vst.msk [vmem:[#allocation3 + $0x50] sm:$0xff] %vm1713_vm4, %v1542_v9  ;;  %v1848_v3 = vld [vmem:[#allocation2 + $0x5d8] ss:$2 sm:$0xff] }
 0x132   :  { %1977 = vrot.lane.b32.xlu0 %v1786_v8, %s6074_s13  ;;  %v1850_v8 = vld [vmem:[#allocation2 + $0x618] ss:$2 sm:$0xff] }
 0x133   :  { %v1544_v10 = vpop.permute.xlu1 %1543 }
 0x134   :  { %1725 = vst.msk [vmem:[#allocation3 + $0x58] sm:$0xff] %vm1713_vm4, %v1544_v10  ;;  %v1546_v13 = vpop.permute.xlu0 %1545 }
 0x135   :  { %1979 = vrot.lane.b32.xlu1 %v1788_v7, %s6074_s13  ;;  %1726 = vst.msk [vmem:[#allocation3 + $0x60] sm:$0xff] %vm1713_vm4, %v1546_v13  ;;  %v1852_v7 = vld [vmem:[#allocation2 + $0x628] ss:$2 sm:$0xff] }
 0x136   :  { %1981 = vrot.lane.b32.xlu0 %v1790_v12, %s6074_s13  ;;  %v1854_v12 = vld [vmem:[#allocation2 + $0x668] ss:$2 sm:$0xff] }
 0x137   :  { %v1548_v14 = vpop.permute.xlu1 %1547 }
 0x138   :  { %1727 = vst.msk [vmem:[#allocation3 + $0x68] sm:$0xff] %vm1713_vm4, %v1548_v14  ;;  %v1550_v17 = vpop.permute.xlu0 %1549 }
 0x139   :  { %1983 = vrot.lane.b32.xlu1 %v1792_v11, %s6074_s13  ;;  %1728 = vst.msk [vmem:[#allocation3 + $0x70] sm:$0xff] %vm1713_vm4, %v1550_v17  ;;  %v1856_v11 = vld [vmem:[#allocation2 + $0x678] ss:$2 sm:$0xff] }
 0x13a   :  { %1985 = vrot.lane.b32.xlu0 %v1794_v16, %s6074_s13  ;;  %v1858_v16 = vld [vmem:[#allocation2 + $0x6b8] ss:$2 sm:$0xff] }
 0x13b   :  { %v1552_v18 = vpop.permute.xlu1 %1551 }
 0x13c   :  { %1729 = vst.msk [vmem:[#allocation3 + $0x78] sm:$0xff] %vm1713_vm4, %v1552_v18  ;;  %v1554_v21 = vpop.permute.xlu0 %1553 }
 0x13d   :  { %1987 = vrot.lane.b32.xlu1 %v1796_v15, %s6074_s13  ;;  %1730 = vst.msk [vmem:[#allocation3 + $0x80] sm:$0xff] %vm1713_vm4, %v1554_v21  ;;  %v1860_v15 = vld [vmem:[#allocation2 + $0x6c8] ss:$2 sm:$0xff] }
 0x13e   :  { %1989 = vrot.lane.b32.xlu0 %v1798_v20, %s6074_s13  ;;  %v1862_v20 = vld [vmem:[#allocation2 + $0x708] ss:$2 sm:$0xff] }
 0x13f   :  { %v1556_v22 = vpop.permute.xlu1 %1555 }
 0x140   :  { %1731 = vst.msk [vmem:[#allocation3 + $0x88] sm:$0xff] %vm1713_vm4, %v1556_v22  ;;  %v1558_v25 = vpop.permute.xlu0 %1557 }
 0x141   :  { %1991 = vrot.lane.b32.xlu1 %v1800_v19, %s6074_s13  ;;  %1732 = vst.msk [vmem:[#allocation3 + $0x90] sm:$0xff] %vm1713_vm4, %v1558_v25  ;;  %v1864_v19 = vld [vmem:[#allocation2 + $0x718] ss:$2 sm:$0xff] }
 0x142   :  { %1993 = vrot.lane.b32.xlu0 %v1802_v24, %s6074_s13  ;;  %v1866_v24 = vld [vmem:[#allocation2 + $0x758] ss:$2 sm:$0xff] }
 0x143   :  { %v1560_v26 = vpop.permute.xlu1 %1559 }
 0x144   :  { %1733 = vst.msk [vmem:[#allocation3 + $0x98] sm:$0xff] %vm1713_vm4, %v1560_v26  ;;  %v1562_v29 = vpop.permute.xlu0 %1561 }
 0x145   :  { %1995 = vrot.lane.b32.xlu1 %v1804_v23, %s6074_s13  ;;  %1734 = vst.msk [vmem:[#allocation3 + $0xa0] sm:$0xff] %vm1713_vm4, %v1562_v29  ;;  %v1868_v23 = vld [vmem:[#allocation2 + $0x768] ss:$2 sm:$0xff] }
 0x146   :  { %1997 = vrot.lane.b32.xlu0 %v1806_v28, %s6074_s13  ;;  %v1870_v28 = vld [vmem:[#allocation2 + $0x7a8] ss:$2 sm:$0xff] }
 0x147   :  { %v1564_v30 = vpop.permute.xlu1 %1563 }
 0x148   :  { %1735 = vst.msk [vmem:[#allocation3 + $0xa8] sm:$0xff] %vm1713_vm4, %v1564_v30  ;;  %v1566_v33 = vpop.permute.xlu0 %1565 }
 0x149   :  { %1999 = vrot.lane.b32.xlu1 %v1808_v27, %s6074_s13  ;;  %1736 = vst.msk [vmem:[#allocation3 + $0xb0] sm:$0xff] %vm1713_vm4, %v1566_v33  ;;  %v1872_v27 = vld [vmem:[#allocation2 + $0x7b8] ss:$2 sm:$0xff] }
 0x14a   :  { %2001 = vrot.lane.b32.xlu0 %v1810_v32, %s6074_s13  ;;  %v1874_v32 = vld [vmem:[#allocation2 + $0x7f8] ss:$2 sm:$0xff] }
 0x14b   :  { %v1568_v34 = vpop.permute.xlu1 %1567 }
 0x14c   :  { %1737 = vst.msk [vmem:[#allocation3 + $0xb8] sm:$0xff] %vm1713_vm4, %v1568_v34  ;;  %v1570_v37 = vpop.permute.xlu0 %1569 }
 0x14d   :  { %2003 = vrot.lane.b32.xlu1 %v1812_v31, %s6074_s13  ;;  %1738 = vst.msk [vmem:[#allocation3 + $0xc0] sm:$0xff] %vm1713_vm4, %v1570_v37  ;;  %v1876_v31 = vld [vmem:[#allocation2 + $0x808] ss:$2 sm:$0xff] }
 0x14e   :  { %2005 = vrot.lane.b32.xlu0 %v1814_v36, %s6074_s13  ;;  %v1878_v36 = vld [vmem:[#allocation2 + $0x848] ss:$2 sm:$0xff] }
 0x14f   :  { %v1572_v38 = vpop.permute.xlu1 %1571 }
 0x150   :  { %1739 = vst.msk [vmem:[#allocation3 + $0xc8] sm:$0xff] %vm1713_vm4, %v1572_v38  ;;  %v1574_v41 = vpop.permute.xlu0 %1573 }
 0x151   :  { %2007 = vrot.lane.b32.xlu1 %v1816_v35, %s6074_s13  ;;  %1740 = vst.msk [vmem:[#allocation3 + $0xd0] sm:$0xff] %vm1713_vm4, %v1574_v41  ;;  %v1880_v35 = vld [vmem:[#allocation2 + $0x858] ss:$2 sm:$0xff] }
 0x152   :  { %2009 = vrot.lane.b32.xlu0 %v1818_v40, %s6074_s13  ;;  %v1882_v40 = vld [vmem:[#allocation2 + $0x898] ss:$2 sm:$0xff] }
 0x153   :  { %v1576_v42 = vpop.permute.xlu1 %1575 }
 0x154   :  { %1741 = vst.msk [vmem:[#allocation3 + $0xd8] sm:$0xff] %vm1713_vm4, %v1576_v42  ;;  %v1578_v45 = vpop.permute.xlu0 %1577 }
 0x155   :  { %2011 = vrot.lane.b32.xlu1 %v1820_v39, %s6074_s13  ;;  %1742 = vst.msk [vmem:[#allocation3 + $0xe0] sm:$0xff] %vm1713_vm4, %v1578_v45  ;;  %v1884_v39 = vld [vmem:[#allocation2 + $0x8a8] ss:$2 sm:$0xff] }
 0x156   :  { %2013 = vrot.lane.b32.xlu0 %v1822_v44, %s6074_s13  ;;  %v1886_v44 = vld [vmem:[#allocation2 + $0x8e8] ss:$2 sm:$0xff] }
 0x157   :  { %v1580_v46 = vpop.permute.xlu1 %1579 }
 0x158   :  { %1743 = vst.msk [vmem:[#allocation3 + $0xe8] sm:$0xff] %vm1713_vm4, %v1580_v46  ;;  %v1582_v49 = vpop.permute.xlu0 %1581 }
 0x159   :  { %2015 = vrot.lane.b32.xlu1 %v1824_v43, %s6074_s13  ;;  %1744 = vst.msk [vmem:[#allocation3 + $0xf0] sm:$0xff] %vm1713_vm4, %v1582_v49  ;;  %v1888_v43 = vld [vmem:[#allocation2 + $0x8f8] ss:$2 sm:$0xff] }
 0x15a   :  { %2017 = vrot.lane.b32.xlu0 %v1826_v48, %s6074_s13  ;;  %v1890_v48 = vld [vmem:[#allocation2 + $0x938] ss:$2 sm:$0xff] }
 0x15b   :  { %v1584_v50 = vpop.permute.xlu1 %1583 }
 0x15c   :  { %1745 = vst.msk [vmem:[#allocation3 + $0xf8] sm:$0xff] %vm1713_vm4, %v1584_v50  ;;  %v1586_v53 = vpop.permute.xlu0 %1585 }
 0x15d   :  { %2019 = vrot.lane.b32.xlu1 %v1828_v47, %s6074_s13  ;;  %1746 = vst.msk [vmem:[#allocation3 + $0x100] sm:$0xff] %vm1713_vm4, %v1586_v53  ;;  %v1892_v47 = vld [vmem:[#allocation2 + $0x948] ss:$2 sm:$0xff] }
 0x15e   :  { %2021 = vrot.lane.b32.xlu0 %v1830_v52, %s6074_s13  ;;  %v1894_v52 = vld [vmem:[#allocation2 + $0x988] ss:$2 sm:$0xff] }
 0x15f   :  { %v1588_v54 = vpop.permute.xlu1 %1587 }
 0x160   :  { %1747 = vst.msk [vmem:[#allocation3 + $0x108] sm:$0xff] %vm1713_vm4, %v1588_v54  ;;  %v1590_v57 = vpop.permute.xlu0 %1589 }
 0x161   :  { %2023 = vrot.lane.b32.xlu1 %v1832_v51, %s6074_s13  ;;  %1748 = vst.msk [vmem:[#allocation3 + $0x110] sm:$0xff] %vm1713_vm4, %v1590_v57  ;;  %v1896_v51 = vld [vmem:[#allocation2 + $0x998] ss:$2 sm:$0xff] }
 0x162   :  { %2025 = vrot.lane.b32.xlu0 %v1834_v56, %s6074_s13  ;;  %v1898_v56 = vld [vmem:[#allocation2 + $0x9d8] ss:$2 sm:$0xff] }
 0x163   :  { %v1592_v58 = vpop.permute.xlu1 %1591 }
 0x164   :  { %1749 = vst.msk [vmem:[#allocation3 + $0x118] sm:$0xff] %vm1713_vm4, %v1592_v58  ;;  %v1594_v61 = vpop.permute.xlu0 %1593 }
 0x165   :  { %2027 = vrot.lane.b32.xlu1 %v1836_v55, %s6074_s13  ;;  %1750 = vst.msk [vmem:[#allocation3 + $0x120] sm:$0xff] %vm1713_vm4, %v1594_v61  ;;  %v1900_v55 = vld [vmem:[#allocation2 + $0x9e8] ss:$2 sm:$0xff] }
 0x166   :  { %2029 = vrot.lane.b32.xlu0 %v1838_v60, %s6074_s13  ;;  %v1902_v60 = vld [vmem:[#allocation2 + $0xa28] ss:$2 sm:$0xff] }
 0x167   :  { %v1596_v62 = vpop.permute.xlu1 %1595 }
 0x168   :  { %1751 = vst.msk [vmem:[#allocation3 + $0x128] sm:$0xff] %vm1713_vm4, %v1596_v62  ;;  %v1598_v1 = vpop.permute.xlu0 %1597 }
 0x169   :  { %2031 = vrot.lane.b32.xlu1 %v1840_v59, %s6074_s13  ;;  %1752 = vst.msk [vmem:[#allocation3 + $0x130] sm:$0xff] %vm1713_vm4, %v1598_v1  ;;  %v1904_v59 = vld [vmem:[#allocation2 + $0xa38] ss:$2 sm:$0xff] }
 0x16a   :  { %2033 = vrot.lane.b32.xlu0 %v1842_v0, %s6074_s13  ;;  %v2227_v0 = vld [vmem:[#allocation2 + $0x29] ss:$2 sm:$0xff] }
 0x16b   :  { %v1600_v2 = vpop.permute.xlu1 %1599 }
 0x16c   :  { %1753 = vst.msk [vmem:[#allocation3 + $0x138] sm:$0xff] %vm1713_vm4, %v1600_v2  ;;  %v1602_v5 = vpop.permute.xlu0 %1601 }
 0x16d   :  { %2035 = vrot.lane.b32.xlu1 %v1844_v63, %s6074_s13  ;;  %1754 = vst.msk [vmem:[#allocation3 + $0x140] sm:$0xff] %vm1713_vm4, %v1602_v5  ;;  %v2229_v63 = vld [vmem:[#allocation2 + $0x39] ss:$2 sm:$0xff] }
 0x16e   :  { %2037 = vrot.lane.b32.xlu0 %v1846_v4, %s6074_s13  ;;  %v2231_v4 = vld [vmem:[#allocation2 + $0x79] ss:$2 sm:$0xff] }
 0x16f   :  { %v1604_v6 = vpop.permute.xlu1 %1603 }
 0x170   :  { %1755 = vst.msk [vmem:[#allocation3 + $0x148] sm:$0xff] %vm1713_vm4, %v1604_v6  ;;  %v1606_v9 = vpop.permute.xlu0 %1605 }
 0x171   :  { %2039 = vrot.lane.b32.xlu1 %v1848_v3, %s6074_s13  ;;  %1756 = vst.msk [vmem:[#allocation3 + $0x150] sm:$0xff] %vm1713_vm4, %v1606_v9  ;;  %v2233_v3 = vld [vmem:[#allocation2 + $0x89] ss:$2 sm:$0xff] }
 0x172   :  { %2041 = vrot.lane.b32.xlu0 %v1850_v8, %s6074_s13  ;;  %v2235_v8 = vld [vmem:[#allocation2 + $0xc9] ss:$2 sm:$0xff] }
 0x173   :  { %v1608_v10 = vpop.permute.xlu1 %1607 }
 0x174   :  { %1757 = vst.msk [vmem:[#allocation3 + $0x158] sm:$0xff] %vm1713_vm4, %v1608_v10  ;;  %v1610_v13 = vpop.permute.xlu0 %1609 }
 0x175   :  { %2043 = vrot.lane.b32.xlu1 %v1852_v7, %s6074_s13  ;;  %1758 = vst.msk [vmem:[#allocation3 + $0x160] sm:$0xff] %vm1713_vm4, %v1610_v13  ;;  %v2237_v7 = vld [vmem:[#allocation2 + $0xd9] ss:$2 sm:$0xff] }
 0x176   :  { %2045 = vrot.lane.b32.xlu0 %v1854_v12, %s6074_s13  ;;  %v2239_v12 = vld [vmem:[#allocation2 + $0x119] ss:$2 sm:$0xff] }
 0x177   :  { %v1612_v14 = vpop.permute.xlu1 %1611 }
 0x178   :  { %1759 = vst.msk [vmem:[#allocation3 + $0x168] sm:$0xff] %vm1713_vm4, %v1612_v14  ;;  %v1614_v17 = vpop.permute.xlu0 %1613 }
 0x179   :  { %2047 = vrot.lane.b32.xlu1 %v1856_v11, %s6074_s13  ;;  %1760 = vst.msk [vmem:[#allocation3 + $0x170] sm:$0xff] %vm1713_vm4, %v1614_v17  ;;  %v2241_v11 = vld [vmem:[#allocation2 + $0x129] ss:$2 sm:$0xff] }
 0x17a   :  { %2049 = vrot.lane.b32.xlu0 %v1858_v16, %s6074_s13  ;;  %v2243_v16 = vld [vmem:[#allocation2 + $0x169] ss:$2 sm:$0xff] }
 0x17b   :  { %v1616_v18 = vpop.permute.xlu1 %1615 }
 0x17c   :  { %1761 = vst.msk [vmem:[#allocation3 + $0x178] sm:$0xff] %vm1713_vm4, %v1616_v18  ;;  %v1618_v21 = vpop.permute.xlu0 %1617 }
 0x17d   :  { %2051 = vrot.lane.b32.xlu1 %v1860_v15, %s6074_s13  ;;  %1762 = vst.msk [vmem:[#allocation3 + $0x180] sm:$0xff] %vm1713_vm4, %v1618_v21  ;;  %v2245_v15 = vld [vmem:[#allocation2 + $0x179] ss:$2 sm:$0xff] }
 0x17e   :  { %2053 = vrot.lane.b32.xlu0 %v1862_v20, %s6074_s13  ;;  %v2247_v20 = vld [vmem:[#allocation2 + $0x1b9] ss:$2 sm:$0xff] }
 0x17f   :  { %v1620_v22 = vpop.permute.xlu1 %1619 }
 0x180   :  { %1763 = vst.msk [vmem:[#allocation3 + $0x188] sm:$0xff] %vm1713_vm4, %v1620_v22  ;;  %v1622_v25 = vpop.permute.xlu0 %1621 }
 0x181   :  { %2055 = vrot.lane.b32.xlu1 %v1864_v19, %s6074_s13  ;;  %1764 = vst.msk [vmem:[#allocation3 + $0x190] sm:$0xff] %vm1713_vm4, %v1622_v25  ;;  %v2249_v19 = vld [vmem:[#allocation2 + $0x1c9] ss:$2 sm:$0xff] }
 0x182   :  { %2057 = vrot.lane.b32.xlu0 %v1866_v24, %s6074_s13  ;;  %v2251_v24 = vld [vmem:[#allocation2 + $0x209] ss:$2 sm:$0xff] }
 0x183   :  { %v1624_v26 = vpop.permute.xlu1 %1623 }
 0x184   :  { %1765 = vst.msk [vmem:[#allocation3 + $0x198] sm:$0xff] %vm1713_vm4, %v1624_v26  ;;  %v1626_v29 = vpop.permute.xlu0 %1625 }
 0x185   :  { %2059 = vrot.lane.b32.xlu1 %v1868_v23, %s6074_s13  ;;  %1766 = vst.msk [vmem:[#allocation3 + $0x1a0] sm:$0xff] %vm1713_vm4, %v1626_v29  ;;  %v2253_v23 = vld [vmem:[#allocation2 + $0x219] ss:$2 sm:$0xff] }
 0x186   :  { %2061 = vrot.lane.b32.xlu0 %v1870_v28, %s6074_s13  ;;  %v2255_v28 = vld [vmem:[#allocation2 + $0x259] ss:$2 sm:$0xff] }
 0x187   :  { %v1628_v30 = vpop.permute.xlu1 %1627 }
 0x188   :  { %1767 = vst.msk [vmem:[#allocation3 + $0x1a8] sm:$0xff] %vm1713_vm4, %v1628_v30  ;;  %v1630_v33 = vpop.permute.xlu0 %1629 }
 0x189   :  { %2063 = vrot.lane.b32.xlu1 %v1872_v27, %s6074_s13  ;;  %1768 = vst.msk [vmem:[#allocation3 + $0x1b0] sm:$0xff] %vm1713_vm4, %v1630_v33  ;;  %v2257_v27 = vld [vmem:[#allocation2 + $0x269] ss:$2 sm:$0xff] }
 0x18a   :  { %2065 = vrot.lane.b32.xlu0 %v1874_v32, %s6074_s13  ;;  %v2259_v32 = vld [vmem:[#allocation2 + $0x2a9] ss:$2 sm:$0xff] }
 0x18b   :  { %v1632_v34 = vpop.permute.xlu1 %1631 }
 0x18c   :  { %1769 = vst.msk [vmem:[#allocation3 + $0x1b8] sm:$0xff] %vm1713_vm4, %v1632_v34  ;;  %v1634_v37 = vpop.permute.xlu0 %1633 }
 0x18d   :  { %2067 = vrot.lane.b32.xlu1 %v1876_v31, %s6074_s13  ;;  %1770 = vst.msk [vmem:[#allocation3 + $0x1c0] sm:$0xff] %vm1713_vm4, %v1634_v37  ;;  %v2261_v31 = vld [vmem:[#allocation2 + $0x2b9] ss:$2 sm:$0xff] }
 0x18e   :  { %2069 = vrot.lane.b32.xlu0 %v1878_v36, %s6074_s13  ;;  %v2263_v36 = vld [vmem:[#allocation2 + $0x2f9] ss:$2 sm:$0xff] }
 0x18f   :  { %v1636_v38 = vpop.permute.xlu1 %1635 }
 0x190   :  { %1771 = vst.msk [vmem:[#allocation3 + $0x1c8] sm:$0xff] %vm1713_vm4, %v1636_v38  ;;  %v1638_v41 = vpop.permute.xlu0 %1637 }
 0x191   :  { %2071 = vrot.lane.b32.xlu1 %v1880_v35, %s6074_s13  ;;  %1772 = vst.msk [vmem:[#allocation3 + $0x1d0] sm:$0xff] %vm1713_vm4, %v1638_v41  ;;  %v2265_v35 = vld [vmem:[#allocation2 + $0x309] ss:$2 sm:$0xff] }
 0x192   :  { %2073 = vrot.lane.b32.xlu0 %v1882_v40, %s6074_s13  ;;  %v2267_v40 = vld [vmem:[#allocation2 + $0x349] ss:$2 sm:$0xff] }
 0x193   :  { %v1640_v42 = vpop.permute.xlu1 %1639 }
 0x194   :  { %1773 = vst.msk [vmem:[#allocation3 + $0x1d8] sm:$0xff] %vm1713_vm4, %v1640_v42  ;;  %v1642_v45 = vpop.permute.xlu0 %1641 }
 0x195   :  { %2075 = vrot.lane.b32.xlu1 %v1884_v39, %s6074_s13  ;;  %1774 = vst.msk [vmem:[#allocation3 + $0x1e0] sm:$0xff] %vm1713_vm4, %v1642_v45  ;;  %v2269_v39 = vld [vmem:[#allocation2 + $0x359] ss:$2 sm:$0xff] }
 0x196   :  { %2077 = vrot.lane.b32.xlu0 %v1886_v44, %s6074_s13  ;;  %v2271_v44 = vld [vmem:[#allocation2 + $0x399] ss:$2 sm:$0xff] }
 0x197   :  { %v1644_v46 = vpop.permute.xlu1 %1643 }
 0x198   :  { %1775 = vst.msk [vmem:[#allocation3 + $0x1e8] sm:$0xff] %vm1713_vm4, %v1644_v46  ;;  %v1646_v49 = vpop.permute.xlu0 %1645 }
 0x199   :  { %2079 = vrot.lane.b32.xlu1 %v1888_v43, %s6074_s13  ;;  %1776 = vst.msk [vmem:[#allocation3 + $0x1f0] sm:$0xff] %vm1713_vm4, %v1646_v49  ;;  %v2273_v43 = vld [vmem:[#allocation2 + $0x3a9] ss:$2 sm:$0xff] }
 0x19a   :  { %2081 = vrot.lane.b32.xlu0 %v1890_v48, %s6074_s13  ;;  %v2275_v48 = vld [vmem:[#allocation2 + $0x3e9] ss:$2 sm:$0xff] }
 0x19b   :  { %v1648_v50 = vpop.permute.xlu1 %1647 }
 0x19c   :  { %1777 = vst.msk [vmem:[#allocation3 + $0x1f8] sm:$0xff] %vm1713_vm4, %v1648_v50  ;;  %v1970_v54 = vpop.permute.xlu0 %1969 }
 0x19d   :  { %2083 = vrot.lane.b32.xlu1 %v1892_v47, %s6074_s13  ;;  %2162 = vst.msk [vmem:[#allocation3] sm:$0xff] %vm2161_vm5, %v1970_v54  ;;  %v2277_v47 = vld [vmem:[#allocation2 + $0x3f9] ss:$2 sm:$0xff] }
 0x19e   :  { %2085 = vrot.lane.b32.xlu0 %v1894_v52, %s6074_s13  ;;  %v2279_v52 = vld [vmem:[#allocation2 + $0x439] ss:$2 sm:$0xff] }
 0x19f   :  { %v1972_v53 = vpop.permute.xlu1 %1971 }
 0x1a0   :  { %2163 = vst.msk [vmem:[#allocation3 + $0x8] sm:$0xff] %vm2161_vm5, %v1972_v53  ;;  %v1974_v58 = vpop.permute.xlu0 %1973 }
 0x1a1   :  { %2087 = vrot.lane.b32.xlu1 %v1896_v51, %s6074_s13  ;;  %2164 = vst.msk [vmem:[#allocation3 + $0x10] sm:$0xff] %vm2161_vm5, %v1974_v58  ;;  %v2281_v51 = vld [vmem:[#allocation2 + $0x449] ss:$2 sm:$0xff] }
 0x1a2   :  { %2089 = vrot.lane.b32.xlu0 %v1898_v56, %s6074_s13  ;;  %v2283_v56 = vld [vmem:[#allocation2 + $0x489] ss:$2 sm:$0xff] }
 0x1a3   :  { %v1976_v57 = vpop.permute.xlu1 %1975 }
 0x1a4   :  { %2165 = vst.msk [vmem:[#allocation3 + $0x18] sm:$0xff] %vm2161_vm5, %v1976_v57  ;;  %v1978_v62 = vpop.permute.xlu0 %1977 }
 0x1a5   :  { %2091 = vrot.lane.b32.xlu1 %v1900_v55, %s6074_s13  ;;  %2166 = vst.msk [vmem:[#allocation3 + $0x20] sm:$0xff] %vm2161_vm5, %v1978_v62  ;;  %v2285_v55 = vld [vmem:[#allocation2 + $0x499] ss:$2 sm:$0xff] }
 0x1a6   :  { %2093 = vrot.lane.b32.xlu0 %v1902_v60, %s6074_s13  ;;  %v2287_v60 = vld [vmem:[#allocation2 + $0x4d9] ss:$2 sm:$0xff] }
 0x1a7   :  { %v1980_v61 = vpop.permute.xlu1 %1979 }
 0x1a8   :  { %2167 = vst.msk [vmem:[#allocation3 + $0x28] sm:$0xff] %vm2161_vm5, %v1980_v61  ;;  %v1982_v2 = vpop.permute.xlu0 %1981 }
 0x1a9   :  { %2095 = vrot.lane.b32.xlu1 %v1904_v59, %s6074_s13  ;;  %2168 = vst.msk [vmem:[#allocation3 + $0x30] sm:$0xff] %vm2161_vm5, %v1982_v2  ;;  %v2289_v59 = vld [vmem:[#allocation2 + $0x4e9] ss:$2 sm:$0xff] }
 0x1aa   :  { %2418 = vrot.lane.b32.xlu0 %v2227_v0, %s6075_s12  ;;  %v2291_v0 = vld [vmem:[#allocation2 + $0x579] ss:$2 sm:$0xff] }
 0x1ab   :  { %v1984_v1 = vpop.permute.xlu1 %1983 }
 0x1ac   :  { %2169 = vst.msk [vmem:[#allocation3 + $0x38] sm:$0xff] %vm2161_vm5, %v1984_v1  ;;  %v1986_v6 = vpop.permute.xlu0 %1985 }
 0x1ad   :  { %2420 = vrot.lane.b32.xlu1 %v2229_v63, %s6075_s12  ;;  %2170 = vst.msk [vmem:[#allocation3 + $0x40] sm:$0xff] %vm2161_vm5, %v1986_v6  ;;  %v2293_v63 = vld [vmem:[#allocation2 + $0x589] ss:$2 sm:$0xff] }
 0x1ae   :  { %2422 = vrot.lane.b32.xlu0 %v2231_v4, %s6075_s12  ;;  %v2295_v4 = vld [vmem:[#allocation2 + $0x5c9] ss:$2 sm:$0xff] }
 0x1af   :  { %v1988_v5 = vpop.permute.xlu1 %1987 }
 0x1b0   :  { %2171 = vst.msk [vmem:[#allocation3 + $0x48] sm:$0xff] %vm2161_vm5, %v1988_v5  ;;  %v1990_v10 = vpop.permute.xlu0 %1989 }
 0x1b1   :  { %2424 = vrot.lane.b32.xlu1 %v2233_v3, %s6075_s12  ;;  %2172 = vst.msk [vmem:[#allocation3 + $0x50] sm:$0xff] %vm2161_vm5, %v1990_v10  ;;  %v2297_v3 = vld [vmem:[#allocation2 + $0x5d9] ss:$2 sm:$0xff] }
 0x1b2   :  { %2426 = vrot.lane.b32.xlu0 %v2235_v8, %s6075_s12  ;;  %v2299_v8 = vld [vmem:[#allocation2 + $0x619] ss:$2 sm:$0xff] }
 0x1b3   :  { %v1992_v9 = vpop.permute.xlu1 %1991 }
 0x1b4   :  { %2173 = vst.msk [vmem:[#allocation3 + $0x58] sm:$0xff] %vm2161_vm5, %v1992_v9  ;;  %v1994_v14 = vpop.permute.xlu0 %1993 }
 0x1b5   :  { %2428 = vrot.lane.b32.xlu1 %v2237_v7, %s6075_s12  ;;  %2174 = vst.msk [vmem:[#allocation3 + $0x60] sm:$0xff] %vm2161_vm5, %v1994_v14  ;;  %v2301_v7 = vld [vmem:[#allocation2 + $0x629] ss:$2 sm:$0xff] }
 0x1b6   :  { %2430 = vrot.lane.b32.xlu0 %v2239_v12, %s6075_s12  ;;  %v2303_v12 = vld [vmem:[#allocation2 + $0x669] ss:$2 sm:$0xff] }
 0x1b7   :  { %v1996_v13 = vpop.permute.xlu1 %1995 }
 0x1b8   :  { %2175 = vst.msk [vmem:[#allocation3 + $0x68] sm:$0xff] %vm2161_vm5, %v1996_v13  ;;  %v1998_v18 = vpop.permute.xlu0 %1997 }
 0x1b9   :  { %2432 = vrot.lane.b32.xlu1 %v2241_v11, %s6075_s12  ;;  %2176 = vst.msk [vmem:[#allocation3 + $0x70] sm:$0xff] %vm2161_vm5, %v1998_v18  ;;  %v2305_v11 = vld [vmem:[#allocation2 + $0x679] ss:$2 sm:$0xff] }
 0x1ba   :  { %2434 = vrot.lane.b32.xlu0 %v2243_v16, %s6075_s12  ;;  %v2307_v16 = vld [vmem:[#allocation2 + $0x6b9] ss:$2 sm:$0xff] }
 0x1bb   :  { %v2000_v17 = vpop.permute.xlu1 %1999 }
 0x1bc   :  { %2177 = vst.msk [vmem:[#allocation3 + $0x78] sm:$0xff] %vm2161_vm5, %v2000_v17  ;;  %v2002_v22 = vpop.permute.xlu0 %2001 }
 0x1bd   :  { %2436 = vrot.lane.b32.xlu1 %v2245_v15, %s6075_s12  ;;  %2178 = vst.msk [vmem:[#allocation3 + $0x80] sm:$0xff] %vm2161_vm5, %v2002_v22  ;;  %v2309_v15 = vld [vmem:[#allocation2 + $0x6c9] ss:$2 sm:$0xff] }
 0x1be   :  { %2438 = vrot.lane.b32.xlu0 %v2247_v20, %s6075_s12  ;;  %v2311_v20 = vld [vmem:[#allocation2 + $0x709] ss:$2 sm:$0xff] }
 0x1bf   :  { %v2004_v21 = vpop.permute.xlu1 %2003 }
 0x1c0   :  { %2179 = vst.msk [vmem:[#allocation3 + $0x88] sm:$0xff] %vm2161_vm5, %v2004_v21  ;;  %v2006_v26 = vpop.permute.xlu0 %2005 }
 0x1c1   :  { %2440 = vrot.lane.b32.xlu1 %v2249_v19, %s6075_s12  ;;  %2180 = vst.msk [vmem:[#allocation3 + $0x90] sm:$0xff] %vm2161_vm5, %v2006_v26  ;;  %v2313_v19 = vld [vmem:[#allocation2 + $0x719] ss:$2 sm:$0xff] }
 0x1c2   :  { %2442 = vrot.lane.b32.xlu0 %v2251_v24, %s6075_s12  ;;  %v2315_v24 = vld [vmem:[#allocation2 + $0x759] ss:$2 sm:$0xff] }
 0x1c3   :  { %v2008_v25 = vpop.permute.xlu1 %2007 }
 0x1c4   :  { %2181 = vst.msk [vmem:[#allocation3 + $0x98] sm:$0xff] %vm2161_vm5, %v2008_v25  ;;  %v2010_v30 = vpop.permute.xlu0 %2009 }
 0x1c5   :  { %2444 = vrot.lane.b32.xlu1 %v2253_v23, %s6075_s12  ;;  %2182 = vst.msk [vmem:[#allocation3 + $0xa0] sm:$0xff] %vm2161_vm5, %v2010_v30  ;;  %v2317_v23 = vld [vmem:[#allocation2 + $0x769] ss:$2 sm:$0xff] }
 0x1c6   :  { %2446 = vrot.lane.b32.xlu0 %v2255_v28, %s6075_s12  ;;  %v2319_v28 = vld [vmem:[#allocation2 + $0x7a9] ss:$2 sm:$0xff] }
 0x1c7   :  { %v2012_v29 = vpop.permute.xlu1 %2011 }
 0x1c8   :  { %2183 = vst.msk [vmem:[#allocation3 + $0xa8] sm:$0xff] %vm2161_vm5, %v2012_v29  ;;  %v2014_v34 = vpop.permute.xlu0 %2013 }
 0x1c9   :  { %2448 = vrot.lane.b32.xlu1 %v2257_v27, %s6075_s12  ;;  %2184 = vst.msk [vmem:[#allocation3 + $0xb0] sm:$0xff] %vm2161_vm5, %v2014_v34  ;;  %v2321_v27 = vld [vmem:[#allocation2 + $0x7b9] ss:$2 sm:$0xff] }
 0x1ca   :  { %2450 = vrot.lane.b32.xlu0 %v2259_v32, %s6075_s12  ;;  %v2323_v32 = vld [vmem:[#allocation2 + $0x7f9] ss:$2 sm:$0xff] }
 0x1cb   :  { %v2016_v33 = vpop.permute.xlu1 %2015 }
 0x1cc   :  { %2185 = vst.msk [vmem:[#allocation3 + $0xb8] sm:$0xff] %vm2161_vm5, %v2016_v33  ;;  %v2018_v38 = vpop.permute.xlu0 %2017 }
 0x1cd   :  { %2452 = vrot.lane.b32.xlu1 %v2261_v31, %s6075_s12  ;;  %2186 = vst.msk [vmem:[#allocation3 + $0xc0] sm:$0xff] %vm2161_vm5, %v2018_v38  ;;  %v2325_v31 = vld [vmem:[#allocation2 + $0x809] ss:$2 sm:$0xff] }
 0x1ce   :  { %2454 = vrot.lane.b32.xlu0 %v2263_v36, %s6075_s12  ;;  %v2327_v36 = vld [vmem:[#allocation2 + $0x849] ss:$2 sm:$0xff] }
 0x1cf   :  { %v2020_v37 = vpop.permute.xlu1 %2019 }
 0x1d0   :  { %2187 = vst.msk [vmem:[#allocation3 + $0xc8] sm:$0xff] %vm2161_vm5, %v2020_v37  ;;  %v2022_v42 = vpop.permute.xlu0 %2021 }
 0x1d1   :  { %2456 = vrot.lane.b32.xlu1 %v2265_v35, %s6075_s12  ;;  %2188 = vst.msk [vmem:[#allocation3 + $0xd0] sm:$0xff] %vm2161_vm5, %v2022_v42  ;;  %v2329_v35 = vld [vmem:[#allocation2 + $0x859] ss:$2 sm:$0xff] }
 0x1d2   :  { %2458 = vrot.lane.b32.xlu0 %v2267_v40, %s6075_s12  ;;  %v2331_v40 = vld [vmem:[#allocation2 + $0x899] ss:$2 sm:$0xff] }
 0x1d3   :  { %v2024_v41 = vpop.permute.xlu1 %2023 }
 0x1d4   :  { %2189 = vst.msk [vmem:[#allocation3 + $0xd8] sm:$0xff] %vm2161_vm5, %v2024_v41  ;;  %v2026_v46 = vpop.permute.xlu0 %2025 }
 0x1d5   :  { %2460 = vrot.lane.b32.xlu1 %v2269_v39, %s6075_s12  ;;  %2190 = vst.msk [vmem:[#allocation3 + $0xe0] sm:$0xff] %vm2161_vm5, %v2026_v46  ;;  %v2333_v39 = vld [vmem:[#allocation2 + $0x8a9] ss:$2 sm:$0xff] }
 0x1d6   :  { %2462 = vrot.lane.b32.xlu0 %v2271_v44, %s6075_s12  ;;  %v2335_v44 = vld [vmem:[#allocation2 + $0x8e9] ss:$2 sm:$0xff] }
 0x1d7   :  { %v2028_v45 = vpop.permute.xlu1 %2027 }
 0x1d8   :  { %2191 = vst.msk [vmem:[#allocation3 + $0xe8] sm:$0xff] %vm2161_vm5, %v2028_v45  ;;  %v2030_v50 = vpop.permute.xlu0 %2029 }
 0x1d9   :  { %2464 = vrot.lane.b32.xlu1 %v2273_v43, %s6075_s12  ;;  %2192 = vst.msk [vmem:[#allocation3 + $0xf0] sm:$0xff] %vm2161_vm5, %v2030_v50  ;;  %v2337_v43 = vld [vmem:[#allocation2 + $0x8f9] ss:$2 sm:$0xff] }
 0x1da   :  { %2466 = vrot.lane.b32.xlu0 %v2275_v48, %s6075_s12  ;;  %v2339_v48 = vld [vmem:[#allocation2 + $0x939] ss:$2 sm:$0xff] }
 0x1db   :  { %v2032_v49 = vpop.permute.xlu1 %2031 }
 0x1dc   :  { %2193 = vst.msk [vmem:[#allocation3 + $0xf8] sm:$0xff] %vm2161_vm5, %v2032_v49  ;;  %v2034_v54 = vpop.permute.xlu0 %2033 }
 0x1dd   :  { %2468 = vrot.lane.b32.xlu1 %v2277_v47, %s6075_s12  ;;  %2194 = vst.msk [vmem:[#allocation3 + $0x100] sm:$0xff] %vm2161_vm5, %v2034_v54  ;;  %v2341_v47 = vld [vmem:[#allocation2 + $0x949] ss:$2 sm:$0xff] }
 0x1de   :  { %2470 = vrot.lane.b32.xlu0 %v2279_v52, %s6075_s12  ;;  %v2343_v52 = vld [vmem:[#allocation2 + $0x989] ss:$2 sm:$0xff] }
 0x1df   :  { %v2036_v53 = vpop.permute.xlu1 %2035 }
 0x1e0   :  { %2195 = vst.msk [vmem:[#allocation3 + $0x108] sm:$0xff] %vm2161_vm5, %v2036_v53  ;;  %v2038_v58 = vpop.permute.xlu0 %2037 }
 0x1e1   :  { %2472 = vrot.lane.b32.xlu1 %v2281_v51, %s6075_s12  ;;  %2196 = vst.msk [vmem:[#allocation3 + $0x110] sm:$0xff] %vm2161_vm5, %v2038_v58  ;;  %v2345_v51 = vld [vmem:[#allocation2 + $0x999] ss:$2 sm:$0xff] }
 0x1e2   :  { %2474 = vrot.lane.b32.xlu0 %v2283_v56, %s6075_s12  ;;  %v2347_v56 = vld [vmem:[#allocation2 + $0x9d9] ss:$2 sm:$0xff] }
 0x1e3   :  { %v2040_v57 = vpop.permute.xlu1 %2039 }
 0x1e4   :  { %2197 = vst.msk [vmem:[#allocation3 + $0x118] sm:$0xff] %vm2161_vm5, %v2040_v57  ;;  %v2042_v62 = vpop.permute.xlu0 %2041 }
 0x1e5   :  { %2476 = vrot.lane.b32.xlu1 %v2285_v55, %s6075_s12  ;;  %2198 = vst.msk [vmem:[#allocation3 + $0x120] sm:$0xff] %vm2161_vm5, %v2042_v62  ;;  %v2349_v55 = vld [vmem:[#allocation2 + $0x9e9] ss:$2 sm:$0xff] }
 0x1e6   :  { %2478 = vrot.lane.b32.xlu0 %v2287_v60, %s6075_s12  ;;  %v2351_v60 = vld [vmem:[#allocation2 + $0xa29] ss:$2 sm:$0xff] }
 0x1e7   :  { %v2044_v61 = vpop.permute.xlu1 %2043 }
 0x1e8   :  { %2199 = vst.msk [vmem:[#allocation3 + $0x128] sm:$0xff] %vm2161_vm5, %v2044_v61  ;;  %v2046_v2 = vpop.permute.xlu0 %2045 }
 0x1e9   :  { %2480 = vrot.lane.b32.xlu1 %v2289_v59, %s6075_s12  ;;  %2200 = vst.msk [vmem:[#allocation3 + $0x130] sm:$0xff] %vm2161_vm5, %v2046_v2  ;;  %v2353_v59 = vld [vmem:[#allocation2 + $0xa39] ss:$2 sm:$0xff] }
 0x1ea   :  { %2482 = vrot.lane.b32.xlu0 %v2291_v0, %s6075_s12  ;;  %v2676_v0 = vld [vmem:[#allocation2 + $0x2a] ss:$2 sm:$0xff] }
 0x1eb   :  { %v2048_v1 = vpop.permute.xlu1 %2047 }
 0x1ec   :  { %2201 = vst.msk [vmem:[#allocation3 + $0x138] sm:$0xff] %vm2161_vm5, %v2048_v1  ;;  %v2050_v6 = vpop.permute.xlu0 %2049 }
 0x1ed   :  { %2484 = vrot.lane.b32.xlu1 %v2293_v63, %s6075_s12  ;;  %2202 = vst.msk [vmem:[#allocation3 + $0x140] sm:$0xff] %vm2161_vm5, %v2050_v6  ;;  %v2678_v63 = vld [vmem:[#allocation2 + $0x3a] ss:$2 sm:$0xff] }
 0x1ee   :  { %2486 = vrot.lane.b32.xlu0 %v2295_v4, %s6075_s12  ;;  %v2680_v4 = vld [vmem:[#allocation2 + $0x7a] ss:$2 sm:$0xff] }
 0x1ef   :  { %v2052_v5 = vpop.permute.xlu1 %2051 }
 0x1f0   :  { %2203 = vst.msk [vmem:[#allocation3 + $0x148] sm:$0xff] %vm2161_vm5, %v2052_v5  ;;  %v2054_v10 = vpop.permute.xlu0 %2053 }
 0x1f1   :  { %2488 = vrot.lane.b32.xlu1 %v2297_v3, %s6075_s12  ;;  %2204 = vst.msk [vmem:[#allocation3 + $0x150] sm:$0xff] %vm2161_vm5, %v2054_v10  ;;  %v2682_v3 = vld [vmem:[#allocation2 + $0x8a] ss:$2 sm:$0xff] }
 0x1f2   :  { %2490 = vrot.lane.b32.xlu0 %v2299_v8, %s6075_s12  ;;  %v2684_v8 = vld [vmem:[#allocation2 + $0xca] ss:$2 sm:$0xff] }
 0x1f3   :  { %v2056_v9 = vpop.permute.xlu1 %2055 }
 0x1f4   :  { %2205 = vst.msk [vmem:[#allocation3 + $0x158] sm:$0xff] %vm2161_vm5, %v2056_v9  ;;  %v2058_v14 = vpop.permute.xlu0 %2057 }
 0x1f5   :  { %2492 = vrot.lane.b32.xlu1 %v2301_v7, %s6075_s12  ;;  %2206 = vst.msk [vmem:[#allocation3 + $0x160] sm:$0xff] %vm2161_vm5, %v2058_v14  ;;  %v2686_v7 = vld [vmem:[#allocation2 + $0xda] ss:$2 sm:$0xff] }
 0x1f6   :  { %2494 = vrot.lane.b32.xlu0 %v2303_v12, %s6075_s12  ;;  %v2688_v12 = vld [vmem:[#allocation2 + $0x11a] ss:$2 sm:$0xff] }
 0x1f7   :  { %v2060_v13 = vpop.permute.xlu1 %2059 }
 0x1f8   :  { %2207 = vst.msk [vmem:[#allocation3 + $0x168] sm:$0xff] %vm2161_vm5, %v2060_v13  ;;  %v2062_v18 = vpop.permute.xlu0 %2061 }
 0x1f9   :  { %2496 = vrot.lane.b32.xlu1 %v2305_v11, %s6075_s12  ;;  %2208 = vst.msk [vmem:[#allocation3 + $0x170] sm:$0xff] %vm2161_vm5, %v2062_v18  ;;  %v2690_v11 = vld [vmem:[#allocation2 + $0x12a] ss:$2 sm:$0xff] }
 0x1fa   :  { %2498 = vrot.lane.b32.xlu0 %v2307_v16, %s6075_s12  ;;  %v2692_v16 = vld [vmem:[#allocation2 + $0x16a] ss:$2 sm:$0xff] }
 0x1fb   :  { %v2064_v17 = vpop.permute.xlu1 %2063 }
 0x1fc   :  { %2209 = vst.msk [vmem:[#allocation3 + $0x178] sm:$0xff] %vm2161_vm5, %v2064_v17  ;;  %v2066_v22 = vpop.permute.xlu0 %2065 }
 0x1fd   :  { %2500 = vrot.lane.b32.xlu1 %v2309_v15, %s6075_s12  ;;  %2210 = vst.msk [vmem:[#allocation3 + $0x180] sm:$0xff] %vm2161_vm5, %v2066_v22  ;;  %v2694_v15 = vld [vmem:[#allocation2 + $0x17a] ss:$2 sm:$0xff] }
 0x1fe   :  { %2502 = vrot.lane.b32.xlu0 %v2311_v20, %s6075_s12  ;;  %v2696_v20 = vld [vmem:[#allocation2 + $0x1ba] ss:$2 sm:$0xff] }
 0x1ff   :  { %v2068_v21 = vpop.permute.xlu1 %2067 }
 0x200   :  { %2211 = vst.msk [vmem:[#allocation3 + $0x188] sm:$0xff] %vm2161_vm5, %v2068_v21  ;;  %v2070_v26 = vpop.permute.xlu0 %2069 }
 0x201   :  { %2504 = vrot.lane.b32.xlu1 %v2313_v19, %s6075_s12  ;;  %2212 = vst.msk [vmem:[#allocation3 + $0x190] sm:$0xff] %vm2161_vm5, %v2070_v26  ;;  %v2698_v19 = vld [vmem:[#allocation2 + $0x1ca] ss:$2 sm:$0xff] }
 0x202   :  { %2506 = vrot.lane.b32.xlu0 %v2315_v24, %s6075_s12  ;;  %v2700_v24 = vld [vmem:[#allocation2 + $0x20a] ss:$2 sm:$0xff] }
 0x203   :  { %v2072_v25 = vpop.permute.xlu1 %2071 }
 0x204   :  { %2213 = vst.msk [vmem:[#allocation3 + $0x198] sm:$0xff] %vm2161_vm5, %v2072_v25  ;;  %v2074_v30 = vpop.permute.xlu0 %2073 }
 0x205   :  { %2508 = vrot.lane.b32.xlu1 %v2317_v23, %s6075_s12  ;;  %2214 = vst.msk [vmem:[#allocation3 + $0x1a0] sm:$0xff] %vm2161_vm5, %v2074_v30  ;;  %v2702_v23 = vld [vmem:[#allocation2 + $0x21a] ss:$2 sm:$0xff] }
 0x206   :  { %2510 = vrot.lane.b32.xlu0 %v2319_v28, %s6075_s12  ;;  %v2704_v28 = vld [vmem:[#allocation2 + $0x25a] ss:$2 sm:$0xff] }
 0x207   :  { %v2076_v29 = vpop.permute.xlu1 %2075 }
 0x208   :  { %2215 = vst.msk [vmem:[#allocation3 + $0x1a8] sm:$0xff] %vm2161_vm5, %v2076_v29  ;;  %v2078_v34 = vpop.permute.xlu0 %2077 }
 0x209   :  { %2512 = vrot.lane.b32.xlu1 %v2321_v27, %s6075_s12  ;;  %2216 = vst.msk [vmem:[#allocation3 + $0x1b0] sm:$0xff] %vm2161_vm5, %v2078_v34  ;;  %v2706_v27 = vld [vmem:[#allocation2 + $0x26a] ss:$2 sm:$0xff] }
 0x20a   :  { %2514 = vrot.lane.b32.xlu0 %v2323_v32, %s6075_s12  ;;  %v2708_v32 = vld [vmem:[#allocation2 + $0x2aa] ss:$2 sm:$0xff] }
 0x20b   :  { %v2080_v33 = vpop.permute.xlu1 %2079 }
 0x20c   :  { %2217 = vst.msk [vmem:[#allocation3 + $0x1b8] sm:$0xff] %vm2161_vm5, %v2080_v33  ;;  %v2082_v38 = vpop.permute.xlu0 %2081 }
 0x20d   :  { %2516 = vrot.lane.b32.xlu1 %v2325_v31, %s6075_s12  ;;  %2218 = vst.msk [vmem:[#allocation3 + $0x1c0] sm:$0xff] %vm2161_vm5, %v2082_v38  ;;  %v2710_v31 = vld [vmem:[#allocation2 + $0x2ba] ss:$2 sm:$0xff] }
 0x20e   :  { %2518 = vrot.lane.b32.xlu0 %v2327_v36, %s6075_s12  ;;  %v2712_v36 = vld [vmem:[#allocation2 + $0x2fa] ss:$2 sm:$0xff] }
 0x20f   :  { %v2084_v37 = vpop.permute.xlu1 %2083 }
 0x210   :  { %2219 = vst.msk [vmem:[#allocation3 + $0x1c8] sm:$0xff] %vm2161_vm5, %v2084_v37  ;;  %v2086_v42 = vpop.permute.xlu0 %2085 }
 0x211   :  { %2520 = vrot.lane.b32.xlu1 %v2329_v35, %s6075_s12  ;;  %2220 = vst.msk [vmem:[#allocation3 + $0x1d0] sm:$0xff] %vm2161_vm5, %v2086_v42  ;;  %v2714_v35 = vld [vmem:[#allocation2 + $0x30a] ss:$2 sm:$0xff] }
 0x212   :  { %2522 = vrot.lane.b32.xlu0 %v2331_v40, %s6075_s12  ;;  %v2716_v40 = vld [vmem:[#allocation2 + $0x34a] ss:$2 sm:$0xff] }
 0x213   :  { %v2088_v41 = vpop.permute.xlu1 %2087 }
 0x214   :  { %2221 = vst.msk [vmem:[#allocation3 + $0x1d8] sm:$0xff] %vm2161_vm5, %v2088_v41  ;;  %v2090_v46 = vpop.permute.xlu0 %2089 }
 0x215   :  { %2524 = vrot.lane.b32.xlu1 %v2333_v39, %s6075_s12  ;;  %2222 = vst.msk [vmem:[#allocation3 + $0x1e0] sm:$0xff] %vm2161_vm5, %v2090_v46  ;;  %v2718_v39 = vld [vmem:[#allocation2 + $0x35a] ss:$2 sm:$0xff] }
 0x216   :  { %2526 = vrot.lane.b32.xlu0 %v2335_v44, %s6075_s12  ;;  %v2720_v44 = vld [vmem:[#allocation2 + $0x39a] ss:$2 sm:$0xff] }
 0x217   :  { %v2092_v45 = vpop.permute.xlu1 %2091 }
 0x218   :  { %2223 = vst.msk [vmem:[#allocation3 + $0x1e8] sm:$0xff] %vm2161_vm5, %v2092_v45  ;;  %v2094_v50 = vpop.permute.xlu0 %2093 }
 0x219   :  { %2528 = vrot.lane.b32.xlu1 %v2337_v43, %s6075_s12  ;;  %2224 = vst.msk [vmem:[#allocation3 + $0x1f0] sm:$0xff] %vm2161_vm5, %v2094_v50  ;;  %v2722_v43 = vld [vmem:[#allocation2 + $0x3aa] ss:$2 sm:$0xff] }
 0x21a   :  { %2530 = vrot.lane.b32.xlu0 %v2339_v48, %s6075_s12  ;;  %v2724_v48 = vld [vmem:[#allocation2 + $0x3ea] ss:$2 sm:$0xff] }
 0x21b   :  { %v2096_v49 = vpop.permute.xlu1 %2095 }
 0x21c   :  { %2225 = vst.msk [vmem:[#allocation3 + $0x1f8] sm:$0xff] %vm2161_vm5, %v2096_v49  ;;  %v2419_v54 = vpop.permute.xlu0 %2418 }
 0x21d   :  { %2532 = vrot.lane.b32.xlu1 %v2341_v47, %s6075_s12  ;;  %2611 = vst.msk [vmem:[#allocation3] sm:$0xff] %vm2610_vm6, %v2419_v54  ;;  %v2726_v47 = vld [vmem:[#allocation2 + $0x3fa] ss:$2 sm:$0xff] }
 0x21e   :  { %2534 = vrot.lane.b32.xlu0 %v2343_v52, %s6075_s12  ;;  %v2728_v52 = vld [vmem:[#allocation2 + $0x43a] ss:$2 sm:$0xff] }
 0x21f   :  { %v2421_v53 = vpop.permute.xlu1 %2420 }
 0x220   :  { %2612 = vst.msk [vmem:[#allocation3 + $0x8] sm:$0xff] %vm2610_vm6, %v2421_v53  ;;  %v2423_v58 = vpop.permute.xlu0 %2422 }
 0x221   :  { %2536 = vrot.lane.b32.xlu1 %v2345_v51, %s6075_s12  ;;  %2613 = vst.msk [vmem:[#allocation3 + $0x10] sm:$0xff] %vm2610_vm6, %v2423_v58  ;;  %v2730_v51 = vld [vmem:[#allocation2 + $0x44a] ss:$2 sm:$0xff] }
 0x222   :  { %2538 = vrot.lane.b32.xlu0 %v2347_v56, %s6075_s12  ;;  %v2732_v56 = vld [vmem:[#allocation2 + $0x48a] ss:$2 sm:$0xff] }
 0x223   :  { %v2425_v57 = vpop.permute.xlu1 %2424 }
 0x224   :  { %2614 = vst.msk [vmem:[#allocation3 + $0x18] sm:$0xff] %vm2610_vm6, %v2425_v57  ;;  %v2427_v62 = vpop.permute.xlu0 %2426 }
 0x225   :  { %2540 = vrot.lane.b32.xlu1 %v2349_v55, %s6075_s12  ;;  %2615 = vst.msk [vmem:[#allocation3 + $0x20] sm:$0xff] %vm2610_vm6, %v2427_v62  ;;  %v2734_v55 = vld [vmem:[#allocation2 + $0x49a] ss:$2 sm:$0xff] }
 0x226   :  { %2542 = vrot.lane.b32.xlu0 %v2351_v60, %s6075_s12  ;;  %v2736_v60 = vld [vmem:[#allocation2 + $0x4da] ss:$2 sm:$0xff] }
 0x227   :  { %v2429_v61 = vpop.permute.xlu1 %2428 }
 0x228   :  { %2616 = vst.msk [vmem:[#allocation3 + $0x28] sm:$0xff] %vm2610_vm6, %v2429_v61  ;;  %v2431_v2 = vpop.permute.xlu0 %2430 }
 0x229   :  { %2544 = vrot.lane.b32.xlu1 %v2353_v59, %s6075_s12  ;;  %2617 = vst.msk [vmem:[#allocation3 + $0x30] sm:$0xff] %vm2610_vm6, %v2431_v2  ;;  %v2738_v59 = vld [vmem:[#allocation2 + $0x4ea] ss:$2 sm:$0xff] }
 0x22a   :  { %2867 = vrot.lane.b32.xlu0 %v2676_v0, %s6076_s14  ;;  %v2740_v0 = vld [vmem:[#allocation2 + $0x57a] ss:$2 sm:$0xff] }
 0x22b   :  { %v2433_v1 = vpop.permute.xlu1 %2432 }
 0x22c   :  { %2618 = vst.msk [vmem:[#allocation3 + $0x38] sm:$0xff] %vm2610_vm6, %v2433_v1  ;;  %v2435_v6 = vpop.permute.xlu0 %2434 }
 0x22d   :  { %2869 = vrot.lane.b32.xlu1 %v2678_v63, %s6076_s14  ;;  %2619 = vst.msk [vmem:[#allocation3 + $0x40] sm:$0xff] %vm2610_vm6, %v2435_v6  ;;  %v2742_v63 = vld [vmem:[#allocation2 + $0x58a] ss:$2 sm:$0xff] }
 0x22e   :  { %2871 = vrot.lane.b32.xlu0 %v2680_v4, %s6076_s14  ;;  %v2744_v4 = vld [vmem:[#allocation2 + $0x5ca] ss:$2 sm:$0xff] }
 0x22f   :  { %v2437_v5 = vpop.permute.xlu1 %2436 }
 0x230   :  { %2620 = vst.msk [vmem:[#allocation3 + $0x48] sm:$0xff] %vm2610_vm6, %v2437_v5  ;;  %v2439_v10 = vpop.permute.xlu0 %2438 }
 0x231   :  { %2873 = vrot.lane.b32.xlu1 %v2682_v3, %s6076_s14  ;;  %2621 = vst.msk [vmem:[#allocation3 + $0x50] sm:$0xff] %vm2610_vm6, %v2439_v10  ;;  %v2746_v3 = vld [vmem:[#allocation2 + $0x5da] ss:$2 sm:$0xff] }
 0x232   :  { %2875 = vrot.lane.b32.xlu0 %v2684_v8, %s6076_s14  ;;  %v2748_v8 = vld [vmem:[#allocation2 + $0x61a] ss:$2 sm:$0xff] }
 0x233   :  { %v2441_v9 = vpop.permute.xlu1 %2440 }
 0x234   :  { %2622 = vst.msk [vmem:[#allocation3 + $0x58] sm:$0xff] %vm2610_vm6, %v2441_v9  ;;  %v2443_v14 = vpop.permute.xlu0 %2442 }
 0x235   :  { %2877 = vrot.lane.b32.xlu1 %v2686_v7, %s6076_s14  ;;  %2623 = vst.msk [vmem:[#allocation3 + $0x60] sm:$0xff] %vm2610_vm6, %v2443_v14  ;;  %v2750_v7 = vld [vmem:[#allocation2 + $0x62a] ss:$2 sm:$0xff] }
 0x236   :  { %2879 = vrot.lane.b32.xlu0 %v2688_v12, %s6076_s14  ;;  %v2752_v12 = vld [vmem:[#allocation2 + $0x66a] ss:$2 sm:$0xff] }
 0x237   :  { %v2445_v13 = vpop.permute.xlu1 %2444 }
 0x238   :  { %2624 = vst.msk [vmem:[#allocation3 + $0x68] sm:$0xff] %vm2610_vm6, %v2445_v13  ;;  %v2447_v18 = vpop.permute.xlu0 %2446 }
 0x239   :  { %2881 = vrot.lane.b32.xlu1 %v2690_v11, %s6076_s14  ;;  %2625 = vst.msk [vmem:[#allocation3 + $0x70] sm:$0xff] %vm2610_vm6, %v2447_v18  ;;  %v2754_v11 = vld [vmem:[#allocation2 + $0x67a] ss:$2 sm:$0xff] }
 0x23a   :  { %2883 = vrot.lane.b32.xlu0 %v2692_v16, %s6076_s14  ;;  %v2756_v16 = vld [vmem:[#allocation2 + $0x6ba] ss:$2 sm:$0xff] }
 0x23b   :  { %v2449_v17 = vpop.permute.xlu1 %2448 }
 0x23c   :  { %2626 = vst.msk [vmem:[#allocation3 + $0x78] sm:$0xff] %vm2610_vm6, %v2449_v17  ;;  %v2451_v22 = vpop.permute.xlu0 %2450 }
 0x23d   :  { %2885 = vrot.lane.b32.xlu1 %v2694_v15, %s6076_s14  ;;  %2627 = vst.msk [vmem:[#allocation3 + $0x80] sm:$0xff] %vm2610_vm6, %v2451_v22  ;;  %v2758_v15 = vld [vmem:[#allocation2 + $0x6ca] ss:$2 sm:$0xff] }
 0x23e   :  { %2887 = vrot.lane.b32.xlu0 %v2696_v20, %s6076_s14  ;;  %v2760_v20 = vld [vmem:[#allocation2 + $0x70a] ss:$2 sm:$0xff] }
 0x23f   :  { %v2453_v21 = vpop.permute.xlu1 %2452 }
 0x240   :  { %2628 = vst.msk [vmem:[#allocation3 + $0x88] sm:$0xff] %vm2610_vm6, %v2453_v21  ;;  %v2455_v26 = vpop.permute.xlu0 %2454 }
 0x241   :  { %2889 = vrot.lane.b32.xlu1 %v2698_v19, %s6076_s14  ;;  %2629 = vst.msk [vmem:[#allocation3 + $0x90] sm:$0xff] %vm2610_vm6, %v2455_v26  ;;  %v2762_v19 = vld [vmem:[#allocation2 + $0x71a] ss:$2 sm:$0xff] }
 0x242   :  { %2891 = vrot.lane.b32.xlu0 %v2700_v24, %s6076_s14  ;;  %v2764_v24 = vld [vmem:[#allocation2 + $0x75a] ss:$2 sm:$0xff] }
 0x243   :  { %v2457_v25 = vpop.permute.xlu1 %2456 }
 0x244   :  { %2630 = vst.msk [vmem:[#allocation3 + $0x98] sm:$0xff] %vm2610_vm6, %v2457_v25  ;;  %v2459_v30 = vpop.permute.xlu0 %2458 }
 0x245   :  { %2893 = vrot.lane.b32.xlu1 %v2702_v23, %s6076_s14  ;;  %2631 = vst.msk [vmem:[#allocation3 + $0xa0] sm:$0xff] %vm2610_vm6, %v2459_v30  ;;  %v2766_v23 = vld [vmem:[#allocation2 + $0x76a] ss:$2 sm:$0xff] }
 0x246   :  { %2895 = vrot.lane.b32.xlu0 %v2704_v28, %s6076_s14  ;;  %v2768_v28 = vld [vmem:[#allocation2 + $0x7aa] ss:$2 sm:$0xff] }
 0x247   :  { %v2461_v29 = vpop.permute.xlu1 %2460 }
 0x248   :  { %2632 = vst.msk [vmem:[#allocation3 + $0xa8] sm:$0xff] %vm2610_vm6, %v2461_v29  ;;  %v2463_v34 = vpop.permute.xlu0 %2462 }
 0x249   :  { %2897 = vrot.lane.b32.xlu1 %v2706_v27, %s6076_s14  ;;  %2633 = vst.msk [vmem:[#allocation3 + $0xb0] sm:$0xff] %vm2610_vm6, %v2463_v34  ;;  %v2770_v27 = vld [vmem:[#allocation2 + $0x7ba] ss:$2 sm:$0xff] }
 0x24a   :  { %2899 = vrot.lane.b32.xlu0 %v2708_v32, %s6076_s14  ;;  %v2772_v32 = vld [vmem:[#allocation2 + $0x7fa] ss:$2 sm:$0xff] }
 0x24b   :  { %v2465_v33 = vpop.permute.xlu1 %2464 }
 0x24c   :  { %2634 = vst.msk [vmem:[#allocation3 + $0xb8] sm:$0xff] %vm2610_vm6, %v2465_v33  ;;  %v2467_v38 = vpop.permute.xlu0 %2466 }
 0x24d   :  { %2901 = vrot.lane.b32.xlu1 %v2710_v31, %s6076_s14  ;;  %2635 = vst.msk [vmem:[#allocation3 + $0xc0] sm:$0xff] %vm2610_vm6, %v2467_v38  ;;  %v2774_v31 = vld [vmem:[#allocation2 + $0x80a] ss:$2 sm:$0xff] }
 0x24e   :  { %2903 = vrot.lane.b32.xlu0 %v2712_v36, %s6076_s14  ;;  %v2776_v36 = vld [vmem:[#allocation2 + $0x84a] ss:$2 sm:$0xff] }
 0x24f   :  { %v2469_v37 = vpop.permute.xlu1 %2468 }
 0x250   :  { %2636 = vst.msk [vmem:[#allocation3 + $0xc8] sm:$0xff] %vm2610_vm6, %v2469_v37  ;;  %v2471_v42 = vpop.permute.xlu0 %2470 }
 0x251   :  { %2905 = vrot.lane.b32.xlu1 %v2714_v35, %s6076_s14  ;;  %2637 = vst.msk [vmem:[#allocation3 + $0xd0] sm:$0xff] %vm2610_vm6, %v2471_v42  ;;  %v2778_v35 = vld [vmem:[#allocation2 + $0x85a] ss:$2 sm:$0xff] }
 0x252   :  { %2907 = vrot.lane.b32.xlu0 %v2716_v40, %s6076_s14  ;;  %v2780_v40 = vld [vmem:[#allocation2 + $0x89a] ss:$2 sm:$0xff] }
 0x253   :  { %v2473_v41 = vpop.permute.xlu1 %2472 }
 0x254   :  { %2638 = vst.msk [vmem:[#allocation3 + $0xd8] sm:$0xff] %vm2610_vm6, %v2473_v41  ;;  %v2475_v46 = vpop.permute.xlu0 %2474 }
 0x255   :  { %2909 = vrot.lane.b32.xlu1 %v2718_v39, %s6076_s14  ;;  %2639 = vst.msk [vmem:[#allocation3 + $0xe0] sm:$0xff] %vm2610_vm6, %v2475_v46  ;;  %v2782_v39 = vld [vmem:[#allocation2 + $0x8aa] ss:$2 sm:$0xff] }
 0x256   :  { %2911 = vrot.lane.b32.xlu0 %v2720_v44, %s6076_s14  ;;  %v2784_v44 = vld [vmem:[#allocation2 + $0x8ea] ss:$2 sm:$0xff] }
 0x257   :  { %v2477_v45 = vpop.permute.xlu1 %2476 }
 0x258   :  { %2640 = vst.msk [vmem:[#allocation3 + $0xe8] sm:$0xff] %vm2610_vm6, %v2477_v45  ;;  %v2479_v50 = vpop.permute.xlu0 %2478 }
 0x259   :  { %2913 = vrot.lane.b32.xlu1 %v2722_v43, %s6076_s14  ;;  %2641 = vst.msk [vmem:[#allocation3 + $0xf0] sm:$0xff] %vm2610_vm6, %v2479_v50  ;;  %v2786_v43 = vld [vmem:[#allocation2 + $0x8fa] ss:$2 sm:$0xff] }
 0x25a   :  { %2915 = vrot.lane.b32.xlu0 %v2724_v48, %s6076_s14  ;;  %v2788_v48 = vld [vmem:[#allocation2 + $0x93a] ss:$2 sm:$0xff] }
 0x25b   :  { %v2481_v49 = vpop.permute.xlu1 %2480 }
 0x25c   :  { %2642 = vst.msk [vmem:[#allocation3 + $0xf8] sm:$0xff] %vm2610_vm6, %v2481_v49  ;;  %v2483_v54 = vpop.permute.xlu0 %2482 }
 0x25d   :  { %2917 = vrot.lane.b32.xlu1 %v2726_v47, %s6076_s14  ;;  %2643 = vst.msk [vmem:[#allocation3 + $0x100] sm:$0xff] %vm2610_vm6, %v2483_v54  ;;  %v2790_v47 = vld [vmem:[#allocation2 + $0x94a] ss:$2 sm:$0xff] }
 0x25e   :  { %2919 = vrot.lane.b32.xlu0 %v2728_v52, %s6076_s14  ;;  %v2792_v52 = vld [vmem:[#allocation2 + $0x98a] ss:$2 sm:$0xff] }
 0x25f   :  { %v2485_v53 = vpop.permute.xlu1 %2484 }
 0x260   :  { %2644 = vst.msk [vmem:[#allocation3 + $0x108] sm:$0xff] %vm2610_vm6, %v2485_v53  ;;  %v2487_v58 = vpop.permute.xlu0 %2486 }
 0x261   :  { %2921 = vrot.lane.b32.xlu1 %v2730_v51, %s6076_s14  ;;  %2645 = vst.msk [vmem:[#allocation3 + $0x110] sm:$0xff] %vm2610_vm6, %v2487_v58  ;;  %v2794_v51 = vld [vmem:[#allocation2 + $0x99a] ss:$2 sm:$0xff] }
 0x262   :  { %2923 = vrot.lane.b32.xlu0 %v2732_v56, %s6076_s14  ;;  %v2796_v56 = vld [vmem:[#allocation2 + $0x9da] ss:$2 sm:$0xff] }
 0x263   :  { %v2489_v57 = vpop.permute.xlu1 %2488 }
 0x264   :  { %2646 = vst.msk [vmem:[#allocation3 + $0x118] sm:$0xff] %vm2610_vm6, %v2489_v57  ;;  %v2491_v62 = vpop.permute.xlu0 %2490 }
 0x265   :  { %2925 = vrot.lane.b32.xlu1 %v2734_v55, %s6076_s14  ;;  %2647 = vst.msk [vmem:[#allocation3 + $0x120] sm:$0xff] %vm2610_vm6, %v2491_v62  ;;  %v2798_v55 = vld [vmem:[#allocation2 + $0x9ea] ss:$2 sm:$0xff] }
 0x266   :  { %2927 = vrot.lane.b32.xlu0 %v2736_v60, %s6076_s14  ;;  %v2800_v60 = vld [vmem:[#allocation2 + $0xa2a] ss:$2 sm:$0xff] }
 0x267   :  { %v2493_v61 = vpop.permute.xlu1 %2492 }
 0x268   :  { %2648 = vst.msk [vmem:[#allocation3 + $0x128] sm:$0xff] %vm2610_vm6, %v2493_v61  ;;  %v2495_v2 = vpop.permute.xlu0 %2494 }
 0x269   :  { %2929 = vrot.lane.b32.xlu1 %v2738_v59, %s6076_s14  ;;  %2649 = vst.msk [vmem:[#allocation3 + $0x130] sm:$0xff] %vm2610_vm6, %v2495_v2  ;;  %v2802_v59 = vld [vmem:[#allocation2 + $0xa3a] ss:$2 sm:$0xff] }
 0x26a   :  { %2931 = vrot.lane.b32.xlu0 %v2740_v0, %s6076_s14  ;;  %v3125_v0 = vld [vmem:[#allocation2 + $0x50] ss:$2 sm:$0xff] }
 0x26b   :  { %v2497_v1 = vpop.permute.xlu1 %2496 }
 0x26c   :  { %2650 = vst.msk [vmem:[#allocation3 + $0x138] sm:$0xff] %vm2610_vm6, %v2497_v1  ;;  %v2499_v6 = vpop.permute.xlu0 %2498 }
 0x26d   :  { %2933 = vrot.lane.b32.xlu1 %v2742_v63, %s6076_s14  ;;  %2651 = vst.msk [vmem:[#allocation3 + $0x140] sm:$0xff] %vm2610_vm6, %v2499_v6  ;;  %v3127_v63 = vld [vmem:[#allocation2 + $0x60] ss:$2 sm:$0xff] }
 0x26e   :  { %2935 = vrot.lane.b32.xlu0 %v2744_v4, %s6076_s14  ;;  %v3129_v4 = vld [vmem:[#allocation2 + $0xa0] ss:$2 sm:$0xff] }
 0x26f   :  { %v2501_v5 = vpop.permute.xlu1 %2500 }
 0x270   :  { %2652 = vst.msk [vmem:[#allocation3 + $0x148] sm:$0xff] %vm2610_vm6, %v2501_v5  ;;  %v2503_v10 = vpop.permute.xlu0 %2502 }
 0x271   :  { %2937 = vrot.lane.b32.xlu1 %v2746_v3, %s6076_s14  ;;  %2653 = vst.msk [vmem:[#allocation3 + $0x150] sm:$0xff] %vm2610_vm6, %v2503_v10  ;;  %v3131_v3 = vld [vmem:[#allocation2 + $0xb0] ss:$2 sm:$0xff] }
 0x272   :  { %2939 = vrot.lane.b32.xlu0 %v2748_v8, %s6076_s14  ;;  %v3133_v8 = vld [vmem:[#allocation2 + $0xf0] ss:$2 sm:$0xff] }
 0x273   :  { %v2505_v9 = vpop.permute.xlu1 %2504 }
 0x274   :  { %2654 = vst.msk [vmem:[#allocation3 + $0x158] sm:$0xff] %vm2610_vm6, %v2505_v9  ;;  %v2507_v14 = vpop.permute.xlu0 %2506 }
 0x275   :  { %2941 = vrot.lane.b32.xlu1 %v2750_v7, %s6076_s14  ;;  %2655 = vst.msk [vmem:[#allocation3 + $0x160] sm:$0xff] %vm2610_vm6, %v2507_v14  ;;  %v3135_v7 = vld [vmem:[#allocation2 + $0x100] ss:$2 sm:$0xff] }
 0x276   :  { %2943 = vrot.lane.b32.xlu0 %v2752_v12, %s6076_s14  ;;  %v3137_v12 = vld [vmem:[#allocation2 + $0x140] ss:$2 sm:$0xff] }
 0x277   :  { %v2509_v13 = vpop.permute.xlu1 %2508 }
 0x278   :  { %2656 = vst.msk [vmem:[#allocation3 + $0x168] sm:$0xff] %vm2610_vm6, %v2509_v13  ;;  %v2511_v18 = vpop.permute.xlu0 %2510 }
 0x279   :  { %2945 = vrot.lane.b32.xlu1 %v2754_v11, %s6076_s14  ;;  %2657 = vst.msk [vmem:[#allocation3 + $0x170] sm:$0xff] %vm2610_vm6, %v2511_v18  ;;  %v3139_v11 = vld [vmem:[#allocation2 + $0x150] ss:$2 sm:$0xff] }
 0x27a   :  { %2947 = vrot.lane.b32.xlu0 %v2756_v16, %s6076_s14  ;;  %v3141_v16 = vld [vmem:[#allocation2 + $0x190] ss:$2 sm:$0xff] }
 0x27b   :  { %v2513_v17 = vpop.permute.xlu1 %2512 }
 0x27c   :  { %2658 = vst.msk [vmem:[#allocation3 + $0x178] sm:$0xff] %vm2610_vm6, %v2513_v17  ;;  %v2515_v22 = vpop.permute.xlu0 %2514 }
 0x27d   :  { %2949 = vrot.lane.b32.xlu1 %v2758_v15, %s6076_s14  ;;  %2659 = vst.msk [vmem:[#allocation3 + $0x180] sm:$0xff] %vm2610_vm6, %v2515_v22  ;;  %v3143_v15 = vld [vmem:[#allocation2 + $0x1a0] ss:$2 sm:$0xff] }
 0x27e   :  { %2951 = vrot.lane.b32.xlu0 %v2760_v20, %s6076_s14  ;;  %v3145_v20 = vld [vmem:[#allocation2 + $0x1e0] ss:$2 sm:$0xff] }
 0x27f   :  { %v2517_v21 = vpop.permute.xlu1 %2516 }
 0x280   :  { %2660 = vst.msk [vmem:[#allocation3 + $0x188] sm:$0xff] %vm2610_vm6, %v2517_v21  ;;  %v2519_v26 = vpop.permute.xlu0 %2518 }
 0x281   :  { %2953 = vrot.lane.b32.xlu1 %v2762_v19, %s6076_s14  ;;  %2661 = vst.msk [vmem:[#allocation3 + $0x190] sm:$0xff] %vm2610_vm6, %v2519_v26  ;;  %v3147_v19 = vld [vmem:[#allocation2 + $0x1f0] ss:$2 sm:$0xff] }
 0x282   :  { %2955 = vrot.lane.b32.xlu0 %v2764_v24, %s6076_s14  ;;  %v3149_v24 = vld [vmem:[#allocation2 + $0x230] ss:$2 sm:$0xff] }
 0x283   :  { %v2521_v25 = vpop.permute.xlu1 %2520 }
 0x284   :  { %2662 = vst.msk [vmem:[#allocation3 + $0x198] sm:$0xff] %vm2610_vm6, %v2521_v25  ;;  %v2523_v30 = vpop.permute.xlu0 %2522 }
 0x285   :  { %2957 = vrot.lane.b32.xlu1 %v2766_v23, %s6076_s14  ;;  %2663 = vst.msk [vmem:[#allocation3 + $0x1a0] sm:$0xff] %vm2610_vm6, %v2523_v30  ;;  %v3151_v23 = vld [vmem:[#allocation2 + $0x240] ss:$2 sm:$0xff] }
 0x286   :  { %2959 = vrot.lane.b32.xlu0 %v2768_v28, %s6076_s14  ;;  %v3153_v28 = vld [vmem:[#allocation2 + $0x280] ss:$2 sm:$0xff] }
 0x287   :  { %v2525_v29 = vpop.permute.xlu1 %2524 }
 0x288   :  { %2664 = vst.msk [vmem:[#allocation3 + $0x1a8] sm:$0xff] %vm2610_vm6, %v2525_v29  ;;  %v2527_v34 = vpop.permute.xlu0 %2526 }
 0x289   :  { %2961 = vrot.lane.b32.xlu1 %v2770_v27, %s6076_s14  ;;  %2665 = vst.msk [vmem:[#allocation3 + $0x1b0] sm:$0xff] %vm2610_vm6, %v2527_v34  ;;  %v3155_v27 = vld [vmem:[#allocation2 + $0x290] ss:$2 sm:$0xff] }
 0x28a   :  { %2963 = vrot.lane.b32.xlu0 %v2772_v32, %s6076_s14  ;;  %v3157_v32 = vld [vmem:[#allocation2 + $0x2d0] ss:$2 sm:$0xff] }
 0x28b   :  { %v2529_v33 = vpop.permute.xlu1 %2528 }
 0x28c   :  { %2666 = vst.msk [vmem:[#allocation3 + $0x1b8] sm:$0xff] %vm2610_vm6, %v2529_v33  ;;  %v2531_v38 = vpop.permute.xlu0 %2530 }
 0x28d   :  { %2965 = vrot.lane.b32.xlu1 %v2774_v31, %s6076_s14  ;;  %2667 = vst.msk [vmem:[#allocation3 + $0x1c0] sm:$0xff] %vm2610_vm6, %v2531_v38  ;;  %v3159_v31 = vld [vmem:[#allocation2 + $0x2e0] ss:$2 sm:$0xff] }
 0x28e   :  { %2967 = vrot.lane.b32.xlu0 %v2776_v36, %s6076_s14  ;;  %v3161_v36 = vld [vmem:[#allocation2 + $0x320] ss:$2 sm:$0xff] }
 0x28f   :  { %v2533_v37 = vpop.permute.xlu1 %2532 }
 0x290   :  { %2668 = vst.msk [vmem:[#allocation3 + $0x1c8] sm:$0xff] %vm2610_vm6, %v2533_v37  ;;  %v2535_v42 = vpop.permute.xlu0 %2534 }
 0x291   :  { %2969 = vrot.lane.b32.xlu1 %v2778_v35, %s6076_s14  ;;  %2669 = vst.msk [vmem:[#allocation3 + $0x1d0] sm:$0xff] %vm2610_vm6, %v2535_v42  ;;  %v3163_v35 = vld [vmem:[#allocation2 + $0x330] ss:$2 sm:$0xff] }
 0x292   :  { %2971 = vrot.lane.b32.xlu0 %v2780_v40, %s6076_s14  ;;  %v3165_v40 = vld [vmem:[#allocation2 + $0x370] ss:$2 sm:$0xff] }
 0x293   :  { %v2537_v41 = vpop.permute.xlu1 %2536 }
 0x294   :  { %2670 = vst.msk [vmem:[#allocation3 + $0x1d8] sm:$0xff] %vm2610_vm6, %v2537_v41  ;;  %v2539_v46 = vpop.permute.xlu0 %2538 }
 0x295   :  { %2973 = vrot.lane.b32.xlu1 %v2782_v39, %s6076_s14  ;;  %2671 = vst.msk [vmem:[#allocation3 + $0x1e0] sm:$0xff] %vm2610_vm6, %v2539_v46  ;;  %v3167_v39 = vld [vmem:[#allocation2 + $0x380] ss:$2 sm:$0xff] }
 0x296   :  { %2975 = vrot.lane.b32.xlu0 %v2784_v44, %s6076_s14  ;;  %v3169_v44 = vld [vmem:[#allocation2 + $0x3c0] ss:$2 sm:$0xff] }
 0x297   :  { %v2541_v45 = vpop.permute.xlu1 %2540 }
 0x298   :  { %2672 = vst.msk [vmem:[#allocation3 + $0x1e8] sm:$0xff] %vm2610_vm6, %v2541_v45  ;;  %v2543_v50 = vpop.permute.xlu0 %2542 }
 0x299   :  { %2977 = vrot.lane.b32.xlu1 %v2786_v43, %s6076_s14  ;;  %2673 = vst.msk [vmem:[#allocation3 + $0x1f0] sm:$0xff] %vm2610_vm6, %v2543_v50  ;;  %v3171_v43 = vld [vmem:[#allocation2 + $0x3d0] ss:$2 sm:$0xff] }
 0x29a   :  { %2979 = vrot.lane.b32.xlu0 %v2788_v48, %s6076_s14  ;;  %v3173_v48 = vld [vmem:[#allocation2 + $0x410] ss:$2 sm:$0xff] }
 0x29b   :  { %v2545_v49 = vpop.permute.xlu1 %2544 }
 0x29c   :  { %2674 = vst.msk [vmem:[#allocation3 + $0x1f8] sm:$0xff] %vm2610_vm6, %v2545_v49  ;;  %v2868_v54 = vpop.permute.xlu0 %2867 }
 0x29d   :  { %2981 = vrot.lane.b32.xlu1 %v2790_v47, %s6076_s14  ;;  %3060 = vst.msk [vmem:[#allocation3] sm:$0xff] %vm3059_vm7, %v2868_v54  ;;  %v3175_v47 = vld [vmem:[#allocation2 + $0x420] ss:$2 sm:$0xff] }
 0x29e   :  { %2983 = vrot.lane.b32.xlu0 %v2792_v52, %s6076_s14  ;;  %v3189_v52 = vld [vmem:[#allocation2 + $0x5a0] ss:$2 sm:$0xff] }
 0x29f   :  { %v2870_v53 = vpop.permute.xlu1 %2869 }
 0x2a0   :  { %3061 = vst.msk [vmem:[#allocation3 + $0x8] sm:$0xff] %vm3059_vm7, %v2870_v53  ;;  %v2872_v58 = vpop.permute.xlu0 %2871 }
 0x2a1   :  { %2985 = vrot.lane.b32.xlu1 %v2794_v51, %s6076_s14  ;;  %3062 = vst.msk [vmem:[#allocation3 + $0x10] sm:$0xff] %vm3059_vm7, %v2872_v58  ;;  %v3191_v51 = vld [vmem:[#allocation2 + $0x5b0] ss:$2 sm:$0xff] }
 0x2a2   :  { %2987 = vrot.lane.b32.xlu0 %v2796_v56, %s6076_s14  ;;  %v3193_v56 = vld [vmem:[#allocation2 + $0x5f0] ss:$2 sm:$0xff] }
 0x2a3   :  { %v2874_v57 = vpop.permute.xlu1 %2873 }
 0x2a4   :  { %3063 = vst.msk [vmem:[#allocation3 + $0x18] sm:$0xff] %vm3059_vm7, %v2874_v57  ;;  %v2876_v62 = vpop.permute.xlu0 %2875 }
 0x2a5   :  { %2989 = vrot.lane.b32.xlu1 %v2798_v55, %s6076_s14  ;;  %3064 = vst.msk [vmem:[#allocation3 + $0x20] sm:$0xff] %vm3059_vm7, %v2876_v62  ;;  %v3195_v55 = vld [vmem:[#allocation2 + $0x600] ss:$2 sm:$0xff] }
 0x2a6   :  { %2991 = vrot.lane.b32.xlu0 %v2800_v60, %s6076_s14  ;;  %v3574_v60 = vld [vmem:[#allocation2 + $0x51] ss:$2 sm:$0xff] }
 0x2a7   :  { %v2878_v61 = vpop.permute.xlu1 %2877 }
 0x2a8   :  { %3065 = vst.msk [vmem:[#allocation3 + $0x28] sm:$0xff] %vm3059_vm7, %v2878_v61  ;;  %v2880_v2 = vpop.permute.xlu0 %2879 }
 0x2a9   :  { %2993 = vrot.lane.b32.xlu1 %v2802_v59, %s6076_s14  ;;  %3066 = vst.msk [vmem:[#allocation3 + $0x30] sm:$0xff] %vm3059_vm7, %v2880_v2  ;;  %v3576_v59 = vld [vmem:[#allocation2 + $0x61] ss:$2 sm:$0xff] }
 0x2aa   :  { %3316 = vrot.lane.b32.xlu0 %v3125_v0, %s6077_s15  ;;  %v3638_v0 = vld [vmem:[#allocation2 + $0x5a1] ss:$2 sm:$0xff] }
 0x2ab   :  { %v2882_v1 = vpop.permute.xlu1 %2881 }
 0x2ac   :  { %3067 = vst.msk [vmem:[#allocation3 + $0x38] sm:$0xff] %vm3059_vm7, %v2882_v1  ;;  %v2884_v6 = vpop.permute.xlu0 %2883 }
 0x2ad   :  { %3318 = vrot.lane.b32.xlu1 %v3127_v63, %s6077_s15  ;;  %3068 = vst.msk [vmem:[#allocation3 + $0x40] sm:$0xff] %vm3059_vm7, %v2884_v6  ;;  %v3640_v63 = vld [vmem:[#allocation2 + $0x5b1] ss:$2 sm:$0xff] }
 0x2ae   :  { %3320 = vrot.lane.b32.xlu0 %v3129_v4, %s6077_s15  ;;  %v3578_v4 = vld [vmem:[#allocation2 + $0xa1] ss:$2 sm:$0xff] }
 0x2af   :  { %v2886_v5 = vpop.permute.xlu1 %2885 }
 0x2b0   :  { %3069 = vst.msk [vmem:[#allocation3 + $0x48] sm:$0xff] %vm3059_vm7, %v2886_v5  ;;  %v2888_v10 = vpop.permute.xlu0 %2887 }
 0x2b1   :  { %3322 = vrot.lane.b32.xlu1 %v3131_v3, %s6077_s15  ;;  %3070 = vst.msk [vmem:[#allocation3 + $0x50] sm:$0xff] %vm3059_vm7, %v2888_v10  ;;  %v3580_v3 = vld [vmem:[#allocation2 + $0xb1] ss:$2 sm:$0xff]  ;;  %v6079_v10 = vmov 65535  }
 0x2b2   :  { %3324 = vrot.lane.b32.xlu0 %v3133_v8, %s6077_s15  ;;  %v3642_v8 = vld [vmem:[#allocation2 + $0x5f1] ss:$2 sm:$0xff] }
 0x2b3   :  { %v2890_v9 = vpop.permute.xlu1 %2889 }
 0x2b4   :  { %3071 = vst.msk [vmem:[#allocation3 + $0x58] sm:$0xff] %vm3059_vm7, %v2890_v9  ;;  %v2892_v14 = vpop.permute.xlu0 %2891  ;;  %v6047_v9 = vld [vmem:[%s8547_s1 + $0x8] sm:$0x3f]  }
 0x2b5   :  { %3326 = vrot.lane.b32.xlu1 %v3135_v7, %s6077_s15  ;;  %3072 = vst.msk [vmem:[#allocation3 + $0x60] sm:$0xff] %vm3059_vm7, %v2892_v14  ;;  %v3644_v7 = vld [vmem:[#allocation2 + $0x601] ss:$2 sm:$0xff] }
 0x2b6   :  { %3328 = vrot.lane.b32.xlu0 %v3137_v12, %s6077_s15 }
 0x2b7   :  { %v2894_v13 = vpop.permute.xlu1 %2893 }
 0x2b8   :  { %3073 = vst.msk [vmem:[#allocation3 + $0x68] sm:$0xff] %vm3059_vm7, %v2894_v13  ;;  %v2896_v18 = vpop.permute.xlu0 %2895 }
 0x2b9   :  { %3330 = vrot.lane.b32.xlu1 %v3139_v11, %s6077_s15  ;;  %3074 = vst.msk [vmem:[#allocation3 + $0x70] sm:$0xff] %vm3059_vm7, %v2896_v18  ;;  %v4688_v11 = vsel %vm4686_vm8, 4294967295, %v6079_v10  ;;  %v3205_v10 = vld [vmem:[#allocation2 + $0x6e0] ss:$2 sm:$0xff] }
 0x2ba   :  { %3332 = vrot.lane.b32.xlu0 %v3141_v16, %s6077_s15  ;;  %v4689_v14 = vsel %vm4687_vm9, %v4688_v11, 0  ;;  %v4025_v16 = vld [vmem:[#allocation2 + $0x62] ss:$2 sm:$0xff] }
 0x2bb   :  { %v2898_v17 = vpop.permute.xlu1 %2897 }
 0x2bc   :  { %3075 = vst.msk [vmem:[#allocation3 + $0x78] sm:$0xff] %vm3059_vm7, %v2898_v17  ;;  %v2900_v22 = vpop.permute.xlu0 %2899  ;;  %v4023_v17 = vld [vmem:[#allocation2 + $0x52] ss:$2 sm:$0xff] }
 0x2bd   :  { %3334 = vrot.lane.b32.xlu1 %v3143_v15, %s6077_s15  ;;  %3076 = vst.msk [vmem:[#allocation3 + $0x80] sm:$0xff] %vm3059_vm7, %v2900_v22  ;;  %v4691_v15 = vand.u32 %v6047_v9, %v4689_v14  ;;  %v4087_v22 = vld [vmem:[#allocation2 + $0x5a2] ss:$2 sm:$0xff] }
 0x2be   :  { %3336 = vrot.lane.b32.xlu0 %v3145_v20, %s6077_s15  ;;  %v6048_v20 = vld [vmem:[%s8547_s1] sm:$0xff]   ;;  %v3207_v9 = vld [vmem:[#allocation2 + $0x6f0] ss:$2 sm:$0xff] }
 0x2bf   :  { %v2902_v21 = vpop.permute.xlu1 %2901  ;;  %5962 = vmatprep.subr.bf16.mxu0 %v4691_v15  ;;  %6030 = vmatprep.subr.bf16.mxu1 %v4691_v15  ;;  %v3209_v14 = vld [vmem:[#allocation2 + $0x730] ss:$2 sm:$0xff] }
 0x2c0   :  { %3077 = vst.msk [vmem:[#allocation3 + $0x88] sm:$0xff] %vm3059_vm7, %v2902_v21  ;;  %v2904_v26 = vpop.permute.xlu0 %2903  ;;  %5963 = vmatpush3.bf16.msra.mxu0 %v4691_v15  ;;  %6032 = vmatpush3.bf16.msra.mxu1 %v4691_v15  ;;  %v4089_v21 = vld [vmem:[#allocation2 + $0x5b2] ss:$2 sm:$0xff] }
 0x2c1   :  { %3338 = vrot.lane.b32.xlu1 %v3147_v19, %s6077_s15  ;;  %3078 = vst.msk [vmem:[#allocation3 + $0x90] sm:$0xff] %vm3059_vm7, %v2904_v26  ;;  %5964 = vmatprep.subr.bf16.mxu0 %v6048_v20  ;;  %v4027_v26 = vld [vmem:[#allocation2 + $0xa2] ss:$2 sm:$0xff] }
 0x2c2   :  { %3340 = vrot.lane.b32.xlu0 %v3149_v24, %s6077_s15  ;;  %6031 = vmatprep.subr.bf16.mxu1 %v6048_v20 }
 0x2c3   :  { %v2906_v25 = vpop.permute.xlu1 %2905 }
 0x2c4   :  { %3079 = vst.msk [vmem:[#allocation3 + $0x98] sm:$0xff] %vm3059_vm7, %v2906_v25  ;;  %v2908_v30 = vpop.permute.xlu0 %2907  ;;  %5965 = vmatpush3.bf16.msra.mxu0 %v6048_v20  ;;  %6033 = vmatpush3.bf16.msra.mxu1 %v6048_v20  ;;  %v4029_v25 = vld [vmem:[#allocation2 + $0xb2] ss:$2 sm:$0xff] }
 0x2c5   :  { %3342 = vrot.lane.b32.xlu1 %v3151_v23, %s6077_s15  ;;  %3080 = vst.msk [vmem:[#allocation3 + $0xa0] sm:$0xff] %vm3059_vm7, %v2908_v30  ;;  %v4091_v30 = vld [vmem:[#allocation2 + $0x5f2] ss:$2 sm:$0xff] }
 0x2c6   :  { %3344 = vrot.lane.b32.xlu0 %v3153_v28, %s6077_s15 }
 0x2c7   :  { %v2910_v29 = vpop.permute.xlu1 %2909 }
 0x2c8   :  { %3081 = vst.msk [vmem:[#allocation3 + $0xa8] sm:$0xff] %vm3059_vm7, %v2910_v29  ;;  %v2912_v34 = vpop.permute.xlu0 %2911  ;;  %v4093_v29 = vld [vmem:[#allocation2 + $0x602] ss:$2 sm:$0xff] }
 0x2c9   :  { %3346 = vrot.lane.b32.xlu1 %v3155_v27, %s6077_s15  ;;  %3082 = vst.msk [vmem:[#allocation3 + $0xb0] sm:$0xff] %vm3059_vm7, %v2912_v34  ;;  %v3197_v34 = vld [vmem:[#allocation2 + $0x640] ss:$2 sm:$0xff] }
 0x2ca   :  { %3348 = vrot.lane.b32.xlu0 %v3157_v32, %s6077_s15 }
 0x2cb   :  { %v2914_v33 = vpop.permute.xlu1 %2913 }
 0x2cc   :  { %3083 = vst.msk [vmem:[#allocation3 + $0xb8] sm:$0xff] %vm3059_vm7, %v2914_v33  ;;  %v2916_v38 = vpop.permute.xlu0 %2915  ;;  %v3199_v33 = vld [vmem:[#allocation2 + $0x650] ss:$2 sm:$0xff] }
 0x2cd   :  { %3350 = vrot.lane.b32.xlu1 %v3159_v31, %s6077_s15  ;;  %3084 = vst.msk [vmem:[#allocation3 + $0xc0] sm:$0xff] %vm3059_vm7, %v2916_v38  ;;  %v3201_v38 = vld [vmem:[#allocation2 + $0x690] ss:$2 sm:$0xff] }
 0x2ce   :  { %3352 = vrot.lane.b32.xlu0 %v3161_v36, %s6077_s15 }
 0x2cf   :  { %v2918_v37 = vpop.permute.xlu1 %2917 }
 0x2d0   :  { %3085 = vst.msk [vmem:[#allocation3 + $0xc8] sm:$0xff] %vm3059_vm7, %v2918_v37  ;;  %v2920_v42 = vpop.permute.xlu0 %2919  ;;  %v3203_v37 = vld [vmem:[#allocation2 + $0x6a0] ss:$2 sm:$0xff] }
 0x2d1   :  { %3354 = vrot.lane.b32.xlu1 %v3163_v35, %s6077_s15  ;;  %3086 = vst.msk [vmem:[#allocation3 + $0xd0] sm:$0xff] %vm3059_vm7, %v2920_v42  ;;  %v3582_v42 = vld [vmem:[#allocation2 + $0xf1] ss:$2 sm:$0xff] }
 0x2d2   :  { %3356 = vrot.lane.b32.xlu0 %v3165_v40, %s6077_s15 }
 0x2d3   :  { %v2922_v41 = vpop.permute.xlu1 %2921 }
 0x2d4   :  { %3087 = vst.msk [vmem:[#allocation3 + $0xd8] sm:$0xff] %vm3059_vm7, %v2922_v41  ;;  %v2924_v46 = vpop.permute.xlu0 %2923  ;;  %v3584_v41 = vld [vmem:[#allocation2 + $0x101] ss:$2 sm:$0xff] }
 0x2d5   :  { %3358 = vrot.lane.b32.xlu1 %v3167_v39, %s6077_s15  ;;  %3088 = vst.msk [vmem:[#allocation3 + $0xe0] sm:$0xff] %vm3059_vm7, %v2924_v46  ;;  %v3646_v46 = vld [vmem:[#allocation2 + $0x641] ss:$2 sm:$0xff] }
 0x2d6   :  { %3360 = vrot.lane.b32.xlu0 %v3169_v44, %s6077_s15 }
 0x2d7   :  { %v2926_v45 = vpop.permute.xlu1 %2925 }
 0x2d8   :  { %3089 = vst.msk [vmem:[#allocation3 + $0xe8] sm:$0xff] %vm3059_vm7, %v2926_v45  ;;  %v2928_v50 = vpop.permute.xlu0 %2927  ;;  %v3648_v45 = vld [vmem:[#allocation2 + $0x651] ss:$2 sm:$0xff] }
 0x2d9   :  { %3362 = vrot.lane.b32.xlu1 %v3171_v43, %s6077_s15  ;;  %3090 = vst.msk [vmem:[#allocation3 + $0xf0] sm:$0xff] %vm3059_vm7, %v2928_v50  ;;  %v3586_v50 = vld [vmem:[#allocation2 + $0x141] ss:$2 sm:$0xff] }
 0x2da   :  { %3364 = vrot.lane.b32.xlu0 %v3173_v48, %s6077_s15 }
 0x2db   :  { %v2930_v49 = vpop.permute.xlu1 %2929 }
 0x2dc   :  { %3091 = vst.msk [vmem:[#allocation3 + $0xf8] sm:$0xff] %vm3059_vm7, %v2930_v49  ;;  %v2932_v54 = vpop.permute.xlu0 %2931  ;;  %v3588_v49 = vld [vmem:[#allocation2 + $0x151] ss:$2 sm:$0xff] }
 0x2dd   :  { %3366 = vrot.lane.b32.xlu1 %v3175_v47, %s6077_s15  ;;  %3092 = vst.msk [vmem:[#allocation3 + $0x100] sm:$0xff] %vm3059_vm7, %v2932_v54  ;;  %v3650_v54 = vld [vmem:[#allocation2 + $0x691] ss:$2 sm:$0xff] }
 0x2de   :  { %3380 = vrot.lane.b32.xlu0 %v3189_v52, %s6077_s15 }
 0x2df   :  { %v2934_v53 = vpop.permute.xlu1 %2933 }
 0x2e0   :  { %3093 = vst.msk [vmem:[#allocation3 + $0x108] sm:$0xff] %vm3059_vm7, %v2934_v53  ;;  %v2936_v58 = vpop.permute.xlu0 %2935  ;;  %v3652_v53 = vld [vmem:[#allocation2 + $0x6a1] ss:$2 sm:$0xff] }
 0x2e1   :  { %3382 = vrot.lane.b32.xlu1 %v3191_v51, %s6077_s15  ;;  %3094 = vst.msk [vmem:[#allocation3 + $0x110] sm:$0xff] %vm3059_vm7, %v2936_v58  ;;  %v4031_v58 = vld [vmem:[#allocation2 + $0xf2] ss:$2 sm:$0xff] }
 0x2e2   :  { %3384 = vrot.lane.b32.xlu0 %v3193_v56, %s6077_s15 }
 0x2e3   :  { %v2938_v57 = vpop.permute.xlu1 %2937 }
 0x2e4   :  { %3095 = vst.msk [vmem:[#allocation3 + $0x118] sm:$0xff] %vm3059_vm7, %v2938_v57  ;;  %v2940_v62 = vpop.permute.xlu0 %2939  ;;  %v4033_v57 = vld [vmem:[#allocation2 + $0x102] ss:$2 sm:$0xff] }
 0x2e5   :  { %3386 = vrot.lane.b32.xlu1 %v3195_v55, %s6077_s15  ;;  %3096 = vst.msk [vmem:[#allocation3 + $0x120] sm:$0xff] %vm3059_vm7, %v2940_v62  ;;  %v4095_v62 = vld [vmem:[#allocation2 + $0x642] ss:$2 sm:$0xff] }
 0x2e6   :  { %3765 = vrot.lane.b32.xlu0 %v3574_v60, %s6078_s16 }
 0x2e7   :  { %v2942_v61 = vpop.permute.xlu1 %2941 }
 0x2e8   :  { %3097 = vst.msk [vmem:[#allocation3 + $0x128] sm:$0xff] %vm3059_vm7, %v2942_v61  ;;  %v2944_v2 = vpop.permute.xlu0 %2943  ;;  %v4097_v61 = vld [vmem:[#allocation2 + $0x652] ss:$2 sm:$0xff] }
 0x2e9   :  { %3767 = vrot.lane.b32.xlu1 %v3576_v59, %s6078_s16  ;;  %3098 = vst.msk [vmem:[#allocation3 + $0x130] sm:$0xff] %vm3059_vm7, %v2944_v2  ;;  %v4035_v2 = vld [vmem:[#allocation2 + $0x142] ss:$2 sm:$0xff] }
 0x2ea   :  { %3829 = vrot.lane.b32.xlu0 %v3638_v0, %s6078_s16 }
 0x2eb   :  { %v2946_v1 = vpop.permute.xlu1 %2945 }
 0x2ec   :  { %3099 = vst.msk [vmem:[#allocation3 + $0x138] sm:$0xff] %vm3059_vm7, %v2946_v1  ;;  %v2948_v6 = vpop.permute.xlu0 %2947  ;;  %v4037_v1 = vld [vmem:[#allocation2 + $0x152] ss:$2 sm:$0xff] }
 0x2ed   :  { %3831 = vrot.lane.b32.xlu1 %v3640_v63, %s6078_s16  ;;  %3100 = vst.msk [vmem:[#allocation3 + $0x140] sm:$0xff] %vm3059_vm7, %v2948_v6  ;;  %v4099_v6 = vld [vmem:[#allocation2 + $0x692] ss:$2 sm:$0xff] }
 0x2ee   :  { %3769 = vrot.lane.b32.xlu0 %v3578_v4, %s6078_s16 }
 0x2ef   :  { %v2950_v5 = vpop.permute.xlu1 %2949 }
 0x2f0   :  { %3101 = vst.msk [vmem:[#allocation3 + $0x148] sm:$0xff] %vm3059_vm7, %v2950_v5  ;;  %v2952_v13 = vpop.permute.xlu0 %2951  ;;  %v4101_v5 = vld [vmem:[#allocation2 + $0x6a2] ss:$2 sm:$0xff] }
 0x2f1   :  { %3771 = vrot.lane.b32.xlu1 %v3580_v3, %s6078_s16  ;;  %3102 = vst.msk [vmem:[#allocation3 + $0x150] sm:$0xff] %vm3059_vm7, %v2952_v13  ;;  %v3211_v13 = vld [vmem:[#allocation2 + $0x740] ss:$2 sm:$0xff] }
 0x2f2   :  { %3833 = vrot.lane.b32.xlu0 %v3642_v8, %s6078_s16 }
 0x2f3   :  { %v2954_v12 = vpop.permute.xlu1 %2953 }
 0x2f4   :  { %3103 = vst.msk [vmem:[#allocation3 + $0x158] sm:$0xff] %vm3059_vm7, %v2954_v12  ;;  %v2956_v19 = vpop.permute.xlu0 %2955 }
 0x2f5   :  { %3835 = vrot.lane.b32.xlu1 %v3644_v7, %s6078_s16  ;;  %3104 = vst.msk [vmem:[#allocation3 + $0x160] sm:$0xff] %vm3059_vm7, %v2956_v19 }
 0x2f6   :  { %4214 = vrot.lane.b32.xlu0 %v4023_v17, %s6080_s21  ;;  %v3592_v17 = vld [vmem:[#allocation2 + $0x1a1] ss:$2 sm:$0xff] }
 0x2f7   :  { %v2958_v18 = vpop.permute.xlu1 %2957 }
 0x2f8   :  { %3105 = vst.msk [vmem:[#allocation3 + $0x168] sm:$0xff] %vm3059_vm7, %v2958_v18  ;;  %v2960_v24 = vpop.permute.xlu0 %2959  ;;  %v3590_v18 = vld [vmem:[#allocation2 + $0x191] ss:$2 sm:$0xff] }
 0x2f9   :  { %4216 = vrot.lane.b32.xlu1 %v4025_v16, %s6080_s21  ;;  %3106 = vst.msk [vmem:[#allocation3 + $0x170] sm:$0xff] %vm3059_vm7, %v2960_v24 }
 0x2fa   :  { %4278 = vrot.lane.b32.xlu0 %v4087_v22, %s6080_s21  ;;  %v3654_v22 = vld [vmem:[#allocation2 + $0x6e1] ss:$2 sm:$0xff] }
 0x2fb   :  { %v2962_v23 = vpop.permute.xlu1 %2961 }
 0x2fc   :  { %3107 = vst.msk [vmem:[#allocation3 + $0x178] sm:$0xff] %vm3059_vm7, %v2962_v23  ;;  %v2964_v28 = vpop.permute.xlu0 %2963 }
 0x2fd   :  { %4280 = vrot.lane.b32.xlu1 %v4089_v21, %s6080_s21  ;;  %3108 = vst.msk [vmem:[#allocation3 + $0x180] sm:$0xff] %vm3059_vm7, %v2964_v28  ;;  %v3656_v21 = vld [vmem:[#allocation2 + $0x6f1] ss:$2 sm:$0xff] }
 0x2fe   :  { %4218 = vrot.lane.b32.xlu0 %v4027_v26, %s6080_s21  ;;  %v3594_v26 = vld [vmem:[#allocation2 + $0x1e1] ss:$2 sm:$0xff] }
 0x2ff   :  { %v2966_v27 = vpop.permute.xlu1 %2965 }
 0x300   :  { %3109 = vst.msk [vmem:[#allocation3 + $0x188] sm:$0xff] %vm3059_vm7, %v2966_v27  ;;  %v2968_v32 = vpop.permute.xlu0 %2967 }
 0x301   :  { %4220 = vrot.lane.b32.xlu1 %v4029_v25, %s6080_s21  ;;  %3110 = vst.msk [vmem:[#allocation3 + $0x190] sm:$0xff] %vm3059_vm7, %v2968_v32  ;;  %v3596_v25 = vld [vmem:[#allocation2 + $0x1f1] ss:$2 sm:$0xff] }
 0x302   :  { %4282 = vrot.lane.b32.xlu0 %v4091_v30, %s6080_s21  ;;  %v3658_v30 = vld [vmem:[#allocation2 + $0x731] ss:$2 sm:$0xff] }
 0x303   :  { %v2970_v31 = vpop.permute.xlu1 %2969 }
 0x304   :  { %3111 = vst.msk [vmem:[#allocation3 + $0x198] sm:$0xff] %vm3059_vm7, %v2970_v31  ;;  %v2972_v36 = vpop.permute.xlu0 %2971 }
 0x305   :  { %4284 = vrot.lane.b32.xlu1 %v4093_v29, %s6080_s21  ;;  %3112 = vst.msk [vmem:[#allocation3 + $0x1a0] sm:$0xff] %vm3059_vm7, %v2972_v36  ;;  %v3660_v29 = vld [vmem:[#allocation2 + $0x741] ss:$2 sm:$0xff] }
 0x306   :  { %3388 = vrot.lane.b32.xlu0 %v3197_v34, %s6077_s15  ;;  %v4039_v34 = vld [vmem:[#allocation2 + $0x192] ss:$2 sm:$0xff] }
 0x307   :  { %v2974_v35 = vpop.permute.xlu1 %2973 }
 0x308   :  { %3113 = vst.msk [vmem:[#allocation3 + $0x1a8] sm:$0xff] %vm3059_vm7, %v2974_v35  ;;  %v2976_v40 = vpop.permute.xlu0 %2975 }
 0x309   :  { %3390 = vrot.lane.b32.xlu1 %v3199_v33, %s6077_s15  ;;  %3114 = vst.msk [vmem:[#allocation3 + $0x1b0] sm:$0xff] %vm3059_vm7, %v2976_v40  ;;  %v4041_v33 = vld [vmem:[#allocation2 + $0x1a2] ss:$2 sm:$0xff] }
 0x30a   :  { %3392 = vrot.lane.b32.xlu0 %v3201_v38, %s6077_s15  ;;  %v4103_v38 = vld [vmem:[#allocation2 + $0x6e2] ss:$2 sm:$0xff] }
 0x30b   :  { %v2978_v39 = vpop.permute.xlu1 %2977 }
 0x30c   :  { %3115 = vst.msk [vmem:[#allocation3 + $0x1b8] sm:$0xff] %vm3059_vm7, %v2978_v39  ;;  %v2980_v44 = vpop.permute.xlu0 %2979 }
 0x30d   :  { %3394 = vrot.lane.b32.xlu1 %v3203_v37, %s6077_s15  ;;  %3116 = vst.msk [vmem:[#allocation3 + $0x1c0] sm:$0xff] %vm3059_vm7, %v2980_v44  ;;  %v4105_v37 = vld [vmem:[#allocation2 + $0x6f2] ss:$2 sm:$0xff] }
 0x30e   :  { %3773 = vrot.lane.b32.xlu0 %v3582_v42, %s6078_s16  ;;  %v4043_v42 = vld [vmem:[#allocation2 + $0x1e2] ss:$2 sm:$0xff] }
 0x30f   :  { %v2982_v43 = vpop.permute.xlu1 %2981 }
 0x310   :  { %3117 = vst.msk [vmem:[#allocation3 + $0x1c8] sm:$0xff] %vm3059_vm7, %v2982_v43  ;;  %v2984_v48 = vpop.permute.xlu0 %2983 }
 0x311   :  { %3775 = vrot.lane.b32.xlu1 %v3584_v41, %s6078_s16  ;;  %3118 = vst.msk [vmem:[#allocation3 + $0x1d0] sm:$0xff] %vm3059_vm7, %v2984_v48  ;;  %v4045_v41 = vld [vmem:[#allocation2 + $0x1f2] ss:$2 sm:$0xff] }
 0x312   :  { %3837 = vrot.lane.b32.xlu0 %v3646_v46, %s6078_s16  ;;  %v4107_v46 = vld [vmem:[#allocation2 + $0x732] ss:$2 sm:$0xff] }
 0x313   :  { %v2986_v47 = vpop.permute.xlu1 %2985 }
 0x314   :  { %3119 = vst.msk [vmem:[#allocation3 + $0x1d8] sm:$0xff] %vm3059_vm7, %v2986_v47  ;;  %v2988_v52 = vpop.permute.xlu0 %2987 }
 0x315   :  { %3839 = vrot.lane.b32.xlu1 %v3648_v45, %s6078_s16  ;;  %3120 = vst.msk [vmem:[#allocation3 + $0x1e0] sm:$0xff] %vm3059_vm7, %v2988_v52  ;;  %v4109_v45 = vld [vmem:[#allocation2 + $0x742] ss:$2 sm:$0xff] }
 0x316   :  { %3777 = vrot.lane.b32.xlu0 %v3586_v50, %s6078_s16  ;;  %v3213_v50 = vld [vmem:[#allocation2 + $0x780] ss:$2 sm:$0xff] }
 0x317   :  { %v2990_v51 = vpop.permute.xlu1 %2989 }
 0x318   :  { %3121 = vst.msk [vmem:[#allocation3 + $0x1e8] sm:$0xff] %vm3059_vm7, %v2990_v51  ;;  %v2992_v56 = vpop.permute.xlu0 %2991 }
 0x319   :  { %3779 = vrot.lane.b32.xlu1 %v3588_v49, %s6078_s16  ;;  %3122 = vst.msk [vmem:[#allocation3 + $0x1f0] sm:$0xff] %vm3059_vm7, %v2992_v56  ;;  %v3215_v49 = vld [vmem:[#allocation2 + $0x790] ss:$2 sm:$0xff] }
 0x31a   :  { %3841 = vrot.lane.b32.xlu0 %v3650_v54, %s6078_s16  ;;  %v3217_v54 = vld [vmem:[#allocation2 + $0x7d0] ss:$2 sm:$0xff] }
 0x31b   :  { %v2994_v55 = vpop.permute.xlu1 %2993 }
 0x31c   :  { %3123 = vst.msk [vmem:[#allocation3 + $0x1f8] sm:$0xff] %vm3059_vm7, %v2994_v55  ;;  %v3317_v60 = vpop.permute.xlu0 %3316 }
 0x31d   :  { %3843 = vrot.lane.b32.xlu1 %v3652_v53, %s6078_s16  ;;  %3509 = vst.msk [vmem:[#allocation3] sm:$0xff] %vm3508_vm10, %v3317_v60  ;;  %v3219_v53 = vld [vmem:[#allocation2 + $0x7e0] ss:$2 sm:$0xff] }
 0x31e   :  { %4222 = vrot.lane.b32.xlu0 %v4031_v58, %s6080_s21  ;;  %v3598_v58 = vld [vmem:[#allocation2 + $0x231] ss:$2 sm:$0xff] }
 0x31f   :  { %v3319_v59 = vpop.permute.xlu1 %3318 }
 0x320   :  { %3510 = vst.msk [vmem:[#allocation3 + $0x8] sm:$0xff] %vm3508_vm10, %v3319_v59  ;;  %v3321_v0 = vpop.permute.xlu0 %3320 }
 0x321   :  { %4224 = vrot.lane.b32.xlu1 %v4033_v57, %s6080_s21  ;;  %3511 = vst.msk [vmem:[#allocation3 + $0x10] sm:$0xff] %vm3508_vm10, %v3321_v0  ;;  %v3600_v57 = vld [vmem:[#allocation2 + $0x241] ss:$2 sm:$0xff] }
 0x322   :  { %4286 = vrot.lane.b32.xlu0 %v4095_v62, %s6080_s21  ;;  %v3662_v62 = vld [vmem:[#allocation2 + $0x781] ss:$2 sm:$0xff] }
 0x323   :  { %v3323_v63 = vpop.permute.xlu1 %3322 }
 0x324   :  { %3512 = vst.msk [vmem:[#allocation3 + $0x18] sm:$0xff] %vm3508_vm10, %v3323_v63  ;;  %v3325_v4 = vpop.permute.xlu0 %3324 }
 0x325   :  { %4288 = vrot.lane.b32.xlu1 %v4097_v61, %s6080_s21  ;;  %3513 = vst.msk [vmem:[#allocation3 + $0x20] sm:$0xff] %vm3508_vm10, %v3325_v4  ;;  %v3664_v61 = vld [vmem:[#allocation2 + $0x791] ss:$2 sm:$0xff] }
 0x326   :  { %4226 = vrot.lane.b32.xlu0 %v4035_v2, %s6080_s21  ;;  %v3602_v2 = vld [vmem:[#allocation2 + $0x281] ss:$2 sm:$0xff] }
 0x327   :  { %v3327_v3 = vpop.permute.xlu1 %3326 }
 0x328   :  { %3514 = vst.msk [vmem:[#allocation3 + $0x28] sm:$0xff] %vm3508_vm10, %v3327_v3  ;;  %v3329_v8 = vpop.permute.xlu0 %3328 }
 0x329   :  { %4228 = vrot.lane.b32.xlu1 %v4037_v1, %s6080_s21  ;;  %3515 = vst.msk [vmem:[#allocation3 + $0x30] sm:$0xff] %vm3508_vm10, %v3329_v8  ;;  %v3604_v1 = vld [vmem:[#allocation2 + $0x291] ss:$2 sm:$0xff] }
 0x32a   :  { %4290 = vrot.lane.b32.xlu0 %v4099_v6, %s6080_s21  ;;  %v3666_v6 = vld [vmem:[#allocation2 + $0x7d1] ss:$2 sm:$0xff] }
 0x32b   :  { %v3331_v7 = vpop.permute.xlu1 %3330 }
 0x32c   :  { %3516 = vst.msk [vmem:[#allocation3 + $0x38] sm:$0xff] %vm3508_vm10, %v3331_v7  ;;  %v3333_v12 = vpop.permute.xlu0 %3332 }
 0x32d   :  { %4292 = vrot.lane.b32.xlu1 %v4101_v5, %s6080_s21  ;;  %3517 = vst.msk [vmem:[#allocation3 + $0x40] sm:$0xff] %vm3508_vm10, %v3333_v12  ;;  %v3668_v5 = vld [vmem:[#allocation2 + $0x7e1] ss:$2 sm:$0xff] }
 0x32e   :  { %3396 = vrot.lane.b32.xlu0 %v3205_v10, %s6077_s15  ;;  %v4047_v10 = vld [vmem:[#allocation2 + $0x232] ss:$2 sm:$0xff] }
 0x32f   :  { %v3335_v11 = vpop.permute.xlu1 %3334 }
 0x330   :  { %3518 = vst.msk [vmem:[#allocation3 + $0x48] sm:$0xff] %vm3508_vm10, %v3335_v11  ;;  %v3337_v16 = vpop.permute.xlu0 %3336 }
 0x331   :  { %3398 = vrot.lane.b32.xlu1 %v3207_v9, %s6077_s15  ;;  %3519 = vst.msk [vmem:[#allocation3 + $0x50] sm:$0xff] %vm3508_vm10, %v3337_v16  ;;  %v4049_v9 = vld [vmem:[#allocation2 + $0x242] ss:$2 sm:$0xff] }
 0x332   :  { %3400 = vrot.lane.b32.xlu0 %v3209_v14, %s6077_s15  ;;  %v4111_v14 = vld [vmem:[#allocation2 + $0x782] ss:$2 sm:$0xff] }
 0x333   :  { %v3339_v15 = vpop.permute.xlu1 %3338 }
 0x334   :  { %3520 = vst.msk [vmem:[#allocation3 + $0x58] sm:$0xff] %vm3508_vm10, %v3339_v15  ;;  %v3341_v20 = vpop.permute.xlu0 %3340 }
 0x335   :  { %3402 = vrot.lane.b32.xlu1 %v3211_v13, %s6077_s15  ;;  %3521 = vst.msk [vmem:[#allocation3 + $0x60] sm:$0xff] %vm3508_vm10, %v3341_v20  ;;  %v4113_v13 = vld [vmem:[#allocation2 + $0x792] ss:$2 sm:$0xff] }
 0x336   :  { %3781 = vrot.lane.b32.xlu0 %v3590_v18, %s6078_s16  ;;  %v4053_v20 = vld [vmem:[#allocation2 + $0x292] ss:$2 sm:$0xff] }
 0x337   :  { %v3343_v19 = vpop.permute.xlu1 %3342 }
 0x338   :  { %3522 = vst.msk [vmem:[#allocation3 + $0x68] sm:$0xff] %vm3508_vm10, %v3343_v19  ;;  %v3345_v24 = vpop.permute.xlu0 %3344 }
 0x339   :  { %3783 = vrot.lane.b32.xlu1 %v3592_v17, %s6078_s16  ;;  %3523 = vst.msk [vmem:[#allocation3 + $0x70] sm:$0xff] %vm3508_vm10, %v3345_v24 }
 0x33a   :  { %3845 = vrot.lane.b32.xlu0 %v3654_v22, %s6078_s16 }
 0x33b   :  { %v3347_v23 = vpop.permute.xlu1 %3346 }
 0x33c   :  { %3524 = vst.msk [vmem:[#allocation3 + $0x78] sm:$0xff] %vm3508_vm10, %v3347_v23  ;;  %v3349_v28 = vpop.permute.xlu0 %3348 }
 0x33d   :  { %3847 = vrot.lane.b32.xlu1 %v3656_v21, %s6078_s16  ;;  %3525 = vst.msk [vmem:[#allocation3 + $0x80] sm:$0xff] %vm3508_vm10, %v3349_v28  ;;  %v4051_v21 = vld [vmem:[#allocation2 + $0x282] ss:$2 sm:$0xff]  ;;  %v4115_v28 = vld [vmem:[#allocation2 + $0x7d2] ss:$2 sm:$0xff] }
 0x33e   :  { %3785 = vrot.lane.b32.xlu0 %v3594_v26, %s6078_s16 }
 0x33f   :  { %v3351_v27 = vpop.permute.xlu1 %3350 }
 0x340   :  { %3526 = vst.msk [vmem:[#allocation3 + $0x88] sm:$0xff] %vm3508_vm10, %v3351_v27  ;;  %v3353_v32 = vpop.permute.xlu0 %3352  ;;  %v4117_v27 = vld [vmem:[#allocation2 + $0x7e2] ss:$2 sm:$0xff] }
 0x341   :  { %3787 = vrot.lane.b32.xlu1 %v3596_v25, %s6078_s16  ;;  %3527 = vst.msk [vmem:[#allocation3 + $0x90] sm:$0xff] %vm3508_vm10, %v3353_v32 }
 0x342   :  { %3849 = vrot.lane.b32.xlu0 %v3658_v30, %s6078_s16 }
 0x343   :  { %v3355_v31 = vpop.permute.xlu1 %3354 }
 0x344   :  { %3528 = vst.msk [vmem:[#allocation3 + $0x98] sm:$0xff] %vm3508_vm10, %v3355_v31  ;;  %v3357_v36 = vpop.permute.xlu0 %3356 }
 0x345   :  { %3851 = vrot.lane.b32.xlu1 %v3660_v29, %s6078_s16  ;;  %3529 = vst.msk [vmem:[#allocation3 + $0xa0] sm:$0xff] %vm3508_vm10, %v3357_v36  ;;  %v143_v36 = vld [vmem:[%s8546_s0 + $0x3f8] sm:$0xff] }
 0x346   :  { %4230 = vrot.lane.b32.xlu0 %v4039_v34, %s6080_s21  ;;  %v141_v34 = vld [vmem:[%s8546_s0 + $0x3e8] sm:$0xff]  ;;  %560 = vst.msk [vmem:[#allocation2 + $0x519] sm:$0xff] %vm272_vm0, %v143_v36 }
 0x347   :  { %v3359_v35 = vpop.permute.xlu1 %3358  ;;  %558 = vst.msk [vmem:[#allocation2 + $0x509] sm:$0xff] %vm272_vm0, %v141_v34 }
 0x348   :  { %3530 = vst.msk [vmem:[#allocation3 + $0xa8] sm:$0xff] %vm3508_vm10, %v3359_v35  ;;  %v3361_v40 = vpop.permute.xlu0 %3360  ;;  %v142_v35 = vld [vmem:[%s8546_s0 + $0x3f0] sm:$0xff] }
 0x349   :  { %4232 = vrot.lane.b32.xlu1 %v4041_v33, %s6080_s21  ;;  %3531 = vst.msk [vmem:[#allocation3 + $0xb0] sm:$0xff] %vm3508_vm10, %v3361_v40 }
 0x34a   :  { %4294 = vrot.lane.b32.xlu0 %v4103_v38, %s6080_s21  ;;  %v3221_v38 = vld [vmem:[#allocation2 + $0x820] ss:$2 sm:$0xff]  ;;  %559 = vst.msk [vmem:[#allocation2 + $0x511] sm:$0xff] %vm272_vm0, %v142_v35 }
 0x34b   :  { %v3363_v39 = vpop.permute.xlu1 %3362 }
 0x34c   :  { %3532 = vst.msk [vmem:[#allocation3 + $0xb8] sm:$0xff] %vm3508_vm10, %v3363_v39  ;;  %v3365_v44 = vpop.permute.xlu0 %3364  ;;  %v140_v39 = vld [vmem:[%s8546_s0 + $0x3e0] sm:$0xff] }
 0x34d   :  { %4296 = vrot.lane.b32.xlu1 %v4105_v37, %s6080_s21  ;;  %3533 = vst.msk [vmem:[#allocation3 + $0xc0] sm:$0xff] %vm3508_vm10, %v3365_v44  ;;  %v3223_v37 = vld [vmem:[#allocation2 + $0x830] ss:$2 sm:$0xff] }
 0x34e   :  { %4234 = vrot.lane.b32.xlu0 %v4043_v42, %s6080_s21  ;;  %557 = vst.msk [vmem:[#allocation2 + $0x501] sm:$0xff] %vm272_vm0, %v140_v39 }
 0x34f   :  { %v3367_v43 = vpop.permute.xlu1 %3366 }
 0x350   :  { %3534 = vst.msk [vmem:[#allocation3 + $0xc8] sm:$0xff] %vm3508_vm10, %v3367_v43  ;;  %v3381_v48 = vpop.permute.xlu0 %3380 }
 0x351   :  { %4236 = vrot.lane.b32.xlu1 %v4045_v41, %s6080_s21  ;;  %3541 = vst.msk [vmem:[#allocation3 + $0x100] sm:$0xff] %vm3508_vm10, %v3381_v48  ;;  %v3227_v48 = vld [vmem:[#allocation2 + $0x880] ss:$2 sm:$0xff] }
 0x352   :  { %4298 = vrot.lane.b32.xlu0 %v4107_v46, %s6080_s21  ;;  %v270_v46 = vld [vmem:[%s8546_s0 + $0x7f0] sm:$0xff] }
 0x353   :  { %v3383_v47 = vpop.permute.xlu1 %3382  ;;  %687 = vst.msk [vmem:[#allocation2 + $0xa61] sm:$0xff] %vm272_vm0, %v270_v46  ;;  %v3678_v46 = vld [vmem:[#allocation2 + $0x8c1] ss:$2 sm:$0xff] }
 0x354   :  { %3542 = vst.msk [vmem:[#allocation3 + $0x108] sm:$0xff] %vm3508_vm10, %v3383_v47  ;;  %v3385_v52 = vpop.permute.xlu0 %3384  ;;  %v271_v47 = vld [vmem:[%s8546_s0 + $0x7f8] sm:$0xff] }
 0x355   :  { %4300 = vrot.lane.b32.xlu1 %v4109_v45, %s6080_s21  ;;  %3543 = vst.msk [vmem:[#allocation3 + $0x110] sm:$0xff] %vm3508_vm10, %v3385_v52  ;;  %v269_v45 = vld [vmem:[%s8546_s0 + $0x7e8] sm:$0xff] }
 0x356   :  { %3404 = vrot.lane.b32.xlu0 %v3213_v50, %s6077_s15  ;;  %686 = vst.msk [vmem:[#allocation2 + $0xa59] sm:$0xff] %vm272_vm0, %v269_v45  ;;  %688 = vst.msk [vmem:[#allocation2 + $0xa69] sm:$0xff] %vm272_vm0, %v271_v47  ;;  %v268_v50 = vld [vmem:[%s8546_s0 + $0x7e0] sm:$0xff]  ;;  %v3680_v45 = vld [vmem:[#allocation2 + $0x8d1] ss:$2 sm:$0xff] }
 0x357   :  { %v3387_v51 = vpop.permute.xlu1 %3386  ;;  %685 = vst.msk [vmem:[#allocation2 + $0xa51] sm:$0xff] %vm272_vm0, %v268_v50  ;;  %v3618_v50 = vld [vmem:[#allocation2 + $0x3c1] ss:$2 sm:$0xff] }
 0x358   :  { %3544 = vst.msk [vmem:[#allocation3 + $0x118] sm:$0xff] %vm3508_vm10, %v3387_v51  ;;  %v3766_v56 = vpop.permute.xlu0 %3765 }
 0x359   :  { %3406 = vrot.lane.b32.xlu1 %v3215_v49, %s6077_s15  ;;  %3958 = vst.msk [vmem:[#allocation3] sm:$0xff] %vm3957_vm11, %v3766_v56  ;;  %v3225_v49 = vld [vmem:[#allocation2 + $0x870] ss:$2 sm:$0xff] }
 0x35a   :  { %3408 = vrot.lane.b32.xlu0 %v3217_v54, %s6077_s15  ;;  %v3606_v54 = vld [vmem:[#allocation2 + $0x2d1] ss:$2 sm:$0xff] }
 0x35b   :  { %v3768_v55 = vpop.permute.xlu1 %3767 }
 0x35c   :  { %3959 = vst.msk [vmem:[#allocation3 + $0x8] sm:$0xff] %vm3957_vm11, %v3768_v55  ;;  %v3830_v60 = vpop.permute.xlu0 %3829 }
 0x35d   :  { %3410 = vrot.lane.b32.xlu1 %v3219_v53, %s6077_s15  ;;  %3990 = vst.msk [vmem:[#allocation3 + $0x100] sm:$0xff] %vm3957_vm11, %v3830_v60  ;;  %v3608_v53 = vld [vmem:[#allocation2 + $0x2e1] ss:$2 sm:$0xff] }
 0x35e   :  { %3789 = vrot.lane.b32.xlu0 %v3598_v58, %s6078_s16  ;;  %v3670_v58 = vld [vmem:[#allocation2 + $0x821] ss:$2 sm:$0xff] }
 0x35f   :  { %v3832_v59 = vpop.permute.xlu1 %3831 }
 0x360   :  { %3991 = vst.msk [vmem:[#allocation3 + $0x108] sm:$0xff] %vm3957_vm11, %v3832_v59  ;;  %v3770_v0 = vpop.permute.xlu0 %3769 }
 0x361   :  { %3791 = vrot.lane.b32.xlu1 %v3600_v57, %s6078_s16  ;;  %3960 = vst.msk [vmem:[#allocation3 + $0x10] sm:$0xff] %vm3957_vm11, %v3770_v0  ;;  %v3672_v57 = vld [vmem:[#allocation2 + $0x831] ss:$2 sm:$0xff] }
 0x362   :  { %3853 = vrot.lane.b32.xlu0 %v3662_v62, %s6078_s16  ;;  %v3610_v62 = vld [vmem:[#allocation2 + $0x321] ss:$2 sm:$0xff] }
 0x363   :  { %v3772_v63 = vpop.permute.xlu1 %3771 }
 0x364   :  { %3961 = vst.msk [vmem:[#allocation3 + $0x18] sm:$0xff] %vm3957_vm11, %v3772_v63  ;;  %v3834_v4 = vpop.permute.xlu0 %3833 }
 0x365   :  { %3855 = vrot.lane.b32.xlu1 %v3664_v61, %s6078_s16  ;;  %3992 = vst.msk [vmem:[#allocation3 + $0x110] sm:$0xff] %vm3957_vm11, %v3834_v4  ;;  %v3612_v61 = vld [vmem:[#allocation2 + $0x331] ss:$2 sm:$0xff] }
 0x366   :  { %3793 = vrot.lane.b32.xlu0 %v3602_v2, %s6078_s16  ;;  %v3674_v2 = vld [vmem:[#allocation2 + $0x871] ss:$2 sm:$0xff] }
 0x367   :  { %v3836_v3 = vpop.permute.xlu1 %3835 }
 0x368   :  { %3993 = vst.msk [vmem:[#allocation3 + $0x118] sm:$0xff] %vm3957_vm11, %v3836_v3  ;;  %v4215_v8 = vpop.permute.xlu0 %4214 }
 0x369   :  { %3795 = vrot.lane.b32.xlu1 %v3604_v1, %s6078_s16  ;;  %4407 = vst.msk [vmem:[#allocation3] sm:$0xff] %vm4406_vm12, %v4215_v8  ;;  %v3676_v1 = vld [vmem:[#allocation2 + $0x881] ss:$2 sm:$0xff] }
 0x36a   :  { %3857 = vrot.lane.b32.xlu0 %v3666_v6, %s6078_s16  ;;  %v4055_v6 = vld [vmem:[#allocation2 + $0x2d2] ss:$2 sm:$0xff] }
 0x36b   :  { %v4217_v7 = vpop.permute.xlu1 %4216 }
 0x36c   :  { %4408 = vst.msk [vmem:[#allocation3 + $0x8] sm:$0xff] %vm4406_vm12, %v4217_v7  ;;  %v4279_v12 = vpop.permute.xlu0 %4278 }
 0x36d   :  { %3859 = vrot.lane.b32.xlu1 %v3668_v5, %s6078_s16  ;;  %4439 = vst.msk [vmem:[#allocation3 + $0x100] sm:$0xff] %vm4406_vm12, %v4279_v12  ;;  %v4057_v5 = vld [vmem:[#allocation2 + $0x2e2] ss:$2 sm:$0xff] }
 0x36e   :  { %4238 = vrot.lane.b32.xlu0 %v4047_v10, %s6080_s21  ;;  %v4119_v10 = vld [vmem:[#allocation2 + $0x822] ss:$2 sm:$0xff] }
 0x36f   :  { %v4281_v11 = vpop.permute.xlu1 %4280 }
 0x370   :  { %4440 = vst.msk [vmem:[#allocation3 + $0x108] sm:$0xff] %vm4406_vm12, %v4281_v11  ;;  %v4219_v16 = vpop.permute.xlu0 %4218  ;;  %v4471_v17 = vld [vmem:[#allocation3] sm:$0xff] }
 0x371   :  { %4240 = vrot.lane.b32.xlu1 %v4049_v9, %s6080_s21  ;;  %4409 = vst.msk [vmem:[#allocation3 + $0x10] sm:$0xff] %vm4406_vm12, %v4219_v16  ;;  %v4121_v9 = vld [vmem:[#allocation2 + $0x832] ss:$2 sm:$0xff] }
 0x372   :  { %4302 = vrot.lane.b32.xlu0 %v4111_v14, %s6080_s21  ;;  %v4061_v16 = vld [vmem:[#allocation2 + $0x332] ss:$2 sm:$0xff] }
 0x373   :  { %v4221_v15 = vpop.permute.xlu1 %4220  ;;  %v4472_v18 = vld [vmem:[#allocation3 + $0x8] sm:$0xff] }
 0x374   :  { %4410 = vst.msk [vmem:[#allocation3 + $0x18] sm:$0xff] %vm4406_vm12, %v4221_v15  ;;  %v4535_v19 = vpack.c.bf16 %v4472_v18, %v4471_v17  ;;  %v4283_v23 = vpop.permute.xlu0 %4282  ;;  %v4503_v24 = vld [vmem:[#allocation3 + $0x100] sm:$0xff] }
 0x375   :  { %4304 = vrot.lane.b32.xlu1 %v4113_v13, %s6080_s21  ;;  %4441 = vst.msk [vmem:[#allocation3 + $0x110] sm:$0xff] %vm4406_vm12, %v4283_v23  ;;  %v4059_v17 = vld [vmem:[#allocation2 + $0x322] ss:$2 sm:$0xff] }
 0x376   :  { %5966 = vmatprep.mubr.msk.bf16.mxu0 %vm4589_vm13, %v4535_v19  ;;  %4242 = vrot.lane.b32.xlu0 %v4051_v21, %s6080_s21  ;;  %v4125_v23 = vld [vmem:[#allocation2 + $0x882] ss:$2 sm:$0xff] }
 0x377   :  { %v4285_v22 = vpop.permute.xlu1 %4284  ;;  %v4504_v25 = vld [vmem:[#allocation3 + $0x108] sm:$0xff] }
 0x378   :  { %4442 = vst.msk [vmem:[#allocation3 + $0x118] sm:$0xff] %vm4406_vm12, %v4285_v22  ;;  %v4551_v26 = vpack.c.bf16 %v4504_v25, %v4503_v24  ;;  %v3389_v30 = vpop.permute.xlu0 %3388  ;;  %v4473_v31 = vld [vmem:[#allocation3 + $0x10] sm:$0xff] }
 0x379   :  { %4244 = vrot.lane.b32.xlu1 %v4053_v20, %s6080_s21  ;;  %3545 = vst.msk [vmem:[#allocation3 + $0x120] sm:$0xff] %vm3508_vm10, %v3389_v30  ;;  %v4123_v24 = vld [vmem:[#allocation2 + $0x872] ss:$2 sm:$0xff] }
 0x37a   :  { %5998 = vmatprep.mubr.msk.bf16.mxu1 %vm4589_vm13, %v4551_v26  ;;  %4306 = vrot.lane.b32.xlu0 %v4115_v28, %s6080_s21  ;;  %v3231_v30 = vld [vmem:[#allocation2 + $0x8d0] ss:$2 sm:$0xff] }
 0x37b   :  { %v3391_v29 = vpop.permute.xlu1 %3390  ;;  %v4474_v32 = vld [vmem:[#allocation3 + $0x18] sm:$0xff] }
 0x37c   :  { %3546 = vst.msk [vmem:[#allocation3 + $0x128] sm:$0xff] %vm3508_vm10, %v3391_v29  ;;  %v4536_v33 = vpack.c.bf16 %v4474_v32, %v4473_v31  ;;  %v3393_v41 = vpop.permute.xlu0 %3392  ;;  %v4505_v42 = vld [vmem:[#allocation3 + $0x110] sm:$0xff]  ;;  %v3229_v31 = vld [vmem:[#allocation2 + $0x8c0] ss:$2 sm:$0xff] }
 0x37d   :  { %4308 = vrot.lane.b32.xlu1 %v4117_v27, %s6080_s21  ;;  %3547 = vst.msk [vmem:[#allocation3 + $0x130] sm:$0xff] %vm3508_vm10, %v3393_v41  ;;  %v3616_v41 = vld [vmem:[#allocation2 + $0x381] ss:$2 sm:$0xff] }
 0x37e   :  { %5967 = vmatmul.mubr.msk.bf16.vlgmr.msra.gmra.mxu0 %vm4589_vm13, %v4536_v33  ;;  %3412 = vrot.lane.b32.xlu0 %v3221_v38, %s6077_s15  ;;  %v3233_v38 = vld [vmem:[#allocation2 + $0x910] ss:$2 sm:$0xff] }
 0x37f   :  { %v3395_v40 = vpop.permute.xlu1 %3394  ;;  %v4506_v43 = vld [vmem:[#allocation3 + $0x118] sm:$0xff] }
 0x380   :  { %3548 = vst.msk [vmem:[#allocation3 + $0x138] sm:$0xff] %vm3508_vm10, %v3395_v40  ;;  %v4552_v44 = vpack.c.bf16 %v4506_v43, %v4505_v42  ;;  %v3774_v52 = vpop.permute.xlu0 %3773  ;;  %v3614_v42 = vld [vmem:[#allocation2 + $0x371] ss:$2 sm:$0xff] }
 0x381   :  { %3414 = vrot.lane.b32.xlu1 %v3223_v37, %s6077_s15  ;;  %3962 = vst.msk [vmem:[#allocation3 + $0x20] sm:$0xff] %vm3957_vm11, %v3774_v52  ;;  %v3235_v37 = vld [vmem:[#allocation2 + $0x920] ss:$2 sm:$0xff] }
 0x382   :  { %5999 = vmatmul.mubr.msk.bf16.vlgmr.msra.gmra.mxu1 %vm4589_vm13, %v4552_v44  ;;  %3416 = vrot.lane.b32.xlu0 %v3225_v49, %s6077_s15  ;;  %v3620_v49 = vld [vmem:[#allocation2 + $0x3d1] ss:$2 sm:$0xff] }
 0x383   :  { %v3776_v51 = vpop.permute.xlu1 %3775 }
 0x384   :  { %3963 = vst.msk [vmem:[#allocation3 + $0x28] sm:$0xff] %vm3957_vm11, %v3776_v51  ;;  %v3838_v56 = vpop.permute.xlu0 %3837 }
 0x385   :  { %3418 = vrot.lane.b32.xlu1 %v3227_v48, %s6077_s15  ;;  %3994 = vst.msk [vmem:[#allocation3 + $0x120] sm:$0xff] %vm3957_vm11, %v3838_v56 }
 0x386   :  { %3797 = vrot.lane.b32.xlu0 %v3606_v54, %s6078_s16  ;;  %v3682_v54 = vld [vmem:[#allocation2 + $0x911] ss:$2 sm:$0xff] }
 0x387   :  { %v3840_v55 = vpop.permute.xlu1 %3839 }
 0x388   :  { %3995 = vst.msk [vmem:[#allocation3 + $0x128] sm:$0xff] %vm3957_vm11, %v3840_v55  ;;  %v3778_v60 = vpop.permute.xlu0 %3777 }
 0x389   :  { %3799 = vrot.lane.b32.xlu1 %v3608_v53, %s6078_s16  ;;  %3964 = vst.msk [vmem:[#allocation3 + $0x30] sm:$0xff] %vm3957_vm11, %v3778_v60  ;;  %v3684_v53 = vld [vmem:[#allocation2 + $0x921] ss:$2 sm:$0xff] }
 0x38a   :  { %3861 = vrot.lane.b32.xlu0 %v3670_v58, %s6078_s16  ;;  %v4063_v58 = vld [vmem:[#allocation2 + $0x372] ss:$2 sm:$0xff] }
 0x38b   :  { %v3780_v59 = vpop.permute.xlu1 %3779 }
 0x38c   :  { %3965 = vst.msk [vmem:[#allocation3 + $0x38] sm:$0xff] %vm3957_vm11, %v3780_v59  ;;  %v3842_v0 = vpop.permute.xlu0 %3841 }
 0x38d   :  { %3863 = vrot.lane.b32.xlu1 %v3672_v57, %s6078_s16  ;;  %3996 = vst.msk [vmem:[#allocation3 + $0x130] sm:$0xff] %vm3957_vm11, %v3842_v0  ;;  %v4065_v57 = vld [vmem:[#allocation2 + $0x382] ss:$2 sm:$0xff] }
 0x38e   :  { %3801 = vrot.lane.b32.xlu0 %v3610_v62, %s6078_s16  ;;  %v4127_v62 = vld [vmem:[#allocation2 + $0x8c2] ss:$2 sm:$0xff] }
 0x38f   :  { %v3844_v63 = vpop.permute.xlu1 %3843 }
 0x390   :  { %3997 = vst.msk [vmem:[#allocation3 + $0x138] sm:$0xff] %vm3957_vm11, %v3844_v63  ;;  %v4223_v4 = vpop.permute.xlu0 %4222 }
 0x391   :  { %3803 = vrot.lane.b32.xlu1 %v3612_v61, %s6078_s16  ;;  %4411 = vst.msk [vmem:[#allocation3 + $0x20] sm:$0xff] %vm4406_vm12, %v4223_v4  ;;  %v4129_v61 = vld [vmem:[#allocation2 + $0x8d2] ss:$2 sm:$0xff] }
 0x392   :  { %3865 = vrot.lane.b32.xlu0 %v3674_v2, %s6078_s16  ;;  %v4069_v4 = vld [vmem:[#allocation2 + $0x3d2] ss:$2 sm:$0xff] }
 0x393   :  { %v4225_v3 = vpop.permute.xlu1 %4224 }
 0x394   :  { %4412 = vst.msk [vmem:[#allocation3 + $0x28] sm:$0xff] %vm4406_vm12, %v4225_v3  ;;  %v4287_v8 = vpop.permute.xlu0 %4286 }
 0x395   :  { %3867 = vrot.lane.b32.xlu1 %v3676_v1, %s6078_s16  ;;  %4443 = vst.msk [vmem:[#allocation3 + $0x120] sm:$0xff] %vm4406_vm12, %v4287_v8 }
 0x396   :  { %4246 = vrot.lane.b32.xlu0 %v4055_v6, %s6080_s21 }
 0x397   :  { %v4289_v7 = vpop.permute.xlu1 %4288 }
 0x398   :  { %4444 = vst.msk [vmem:[#allocation3 + $0x128] sm:$0xff] %vm4406_vm12, %v4289_v7  ;;  %v4227_v12 = vpop.permute.xlu0 %4226  ;;  %v4475_v13 = vld [vmem:[#allocation3 + $0x20] sm:$0xff] }
 0x399   :  { %4248 = vrot.lane.b32.xlu1 %v4057_v5, %s6080_s21  ;;  %4413 = vst.msk [vmem:[#allocation3 + $0x30] sm:$0xff] %vm4406_vm12, %v4227_v12  ;;  %v4067_v5 = vld [vmem:[#allocation2 + $0x3c2] ss:$2 sm:$0xff]  ;;  %v4131_v12 = vld [vmem:[#allocation2 + $0x912] ss:$2 sm:$0xff] }
 0x39a   :  { %4310 = vrot.lane.b32.xlu0 %v4119_v10, %s6080_s21 }
 0x39b   :  { %v4229_v11 = vpop.permute.xlu1 %4228  ;;  %v4476_v14 = vld [vmem:[#allocation3 + $0x28] sm:$0xff] }
 0x39c   :  { %4414 = vst.msk [vmem:[#allocation3 + $0x38] sm:$0xff] %vm4406_vm12, %v4229_v11  ;;  %v4537_v15 = vpack.c.bf16 %v4476_v14, %v4475_v13  ;;  %v4291_v19 = vpop.permute.xlu0 %4290  ;;  %v4507_v20 = vld [vmem:[#allocation3 + $0x120] sm:$0xff] }
 0x39d   :  { %4312 = vrot.lane.b32.xlu1 %v4121_v9, %s6080_s21  ;;  %4445 = vst.msk [vmem:[#allocation3 + $0x130] sm:$0xff] %vm4406_vm12, %v4291_v19  ;;  %v4133_v11 = vld [vmem:[#allocation2 + $0x922] ss:$2 sm:$0xff] }
 0x39e   :  { %5970 = vmatprep.mubr.msk.bf16.mxu0 %vm4589_vm13, %v4537_v15  ;;  %4250 = vrot.lane.b32.xlu0 %v4059_v17, %s6080_s21  ;;  %v3237_v19 = vld [vmem:[#allocation2 + $0x960] ss:$2 sm:$0xff] }
 0x39f   :  { %v4293_v18 = vpop.permute.xlu1 %4292  ;;  %v4508_v21 = vld [vmem:[#allocation3 + $0x128] sm:$0xff] }
 0x3a0   :  { %4446 = vst.msk [vmem:[#allocation3 + $0x138] sm:$0xff] %vm4406_vm12, %v4293_v18  ;;  %v4553_v22 = vpack.c.bf16 %v4508_v21, %v4507_v20  ;;  %v3397_v26 = vpop.permute.xlu0 %3396  ;;  %v4477_v27 = vld [vmem:[#allocation3 + $0x30] sm:$0xff] }
 0x3a1   :  { %4252 = vrot.lane.b32.xlu1 %v4061_v16, %s6080_s21  ;;  %3549 = vst.msk [vmem:[#allocation3 + $0x140] sm:$0xff] %vm3508_vm10, %v3397_v26  ;;  %v3239_v18 = vld [vmem:[#allocation2 + $0x970] ss:$2 sm:$0xff]  ;;  %v3177_v26 = vld [vmem:[#allocation2 + $0x460] ss:$2 sm:$0xff] }
 0x3a2   :  { %6002 = vmatprep.mubr.msk.bf16.mxu1 %vm4589_vm13, %v4553_v22  ;;  %4314 = vrot.lane.b32.xlu0 %v4123_v24, %s6080_s21 }
 0x3a3   :  { %v3399_v25 = vpop.permute.xlu1 %3398  ;;  %v4478_v28 = vld [vmem:[#allocation3 + $0x38] sm:$0xff] }
 0x3a4   :  { %3550 = vst.msk [vmem:[#allocation3 + $0x148] sm:$0xff] %vm3508_vm10, %v3399_v25  ;;  %v4538_v29 = vpack.c.bf16 %v4478_v28, %v4477_v27  ;;  %v3401_v33 = vpop.permute.xlu0 %3400  ;;  %v4509_v34 = vld [vmem:[#allocation3 + $0x130] sm:$0xff] }
 0x3a5   :  { %4316 = vrot.lane.b32.xlu1 %v4125_v23, %s6080_s21  ;;  %3551 = vst.msk [vmem:[#allocation3 + $0x150] sm:$0xff] %vm3508_vm10, %v3401_v33  ;;  %v3179_v25 = vld [vmem:[#allocation2 + $0x470] ss:$2 sm:$0xff]  ;;  %v3624_v33 = vld [vmem:[#allocation2 + $0x421] ss:$2 sm:$0xff] }
 0x3a6   :  { %5971 = vmatmul.mubr.msk.bf16.gmra.mxu0 %vm4589_vm13, %v4538_v29  ;;  %3420 = vrot.lane.b32.xlu0 %v3229_v31, %s6077_s15  ;;  %v3243_v29 = vld [vmem:[#allocation2 + $0x9c0] ss:$2 sm:$0xff] }
 0x3a7   :  { %v3403_v32 = vpop.permute.xlu1 %3402  ;;  %v4510_v35 = vld [vmem:[#allocation3 + $0x138] sm:$0xff] }
 0x3a8   :  { %3552 = vst.msk [vmem:[#allocation3 + $0x158] sm:$0xff] %vm3508_vm10, %v3403_v32  ;;  %v4554_v36 = vpack.c.bf16 %v4510_v35, %v4509_v34  ;;  %v3782_v40 = vpop.permute.xlu0 %3781  ;;  %v3622_v34 = vld [vmem:[#allocation2 + $0x411] ss:$2 sm:$0xff] }
 0x3a9   :  { %3422 = vrot.lane.b32.xlu1 %v3231_v30, %s6077_s15  ;;  %3966 = vst.msk [vmem:[#allocation3 + $0x40] sm:$0xff] %vm3957_vm11, %v3782_v40  ;;  %v3241_v30 = vld [vmem:[#allocation2 + $0x9b0] ss:$2 sm:$0xff] }
 0x3aa   :  { %6003 = vmatmul.mubr.msk.bf16.gmra.mxu1 %vm4589_vm13, %v4554_v36  ;;  %3424 = vrot.lane.b32.xlu0 %v3233_v38, %s6077_s15  ;;  %v3686_v38 = vld [vmem:[#allocation2 + $0x961] ss:$2 sm:$0xff] }
 0x3ab   :  { %v3784_v39 = vpop.permute.xlu1 %3783 }
 0x3ac   :  { %3967 = vst.msk [vmem:[#allocation3 + $0x48] sm:$0xff] %vm3957_vm11, %v3784_v39  ;;  %v3846_v44 = vpop.permute.xlu0 %3845 }
 0x3ad   :  { %3426 = vrot.lane.b32.xlu1 %v3235_v37, %s6077_s15  ;;  %3998 = vst.msk [vmem:[#allocation3 + $0x140] sm:$0xff] %vm3957_vm11, %v3846_v44  ;;  %v3688_v37 = vld [vmem:[#allocation2 + $0x971] ss:$2 sm:$0xff] }
 0x3ae   :  { %3805 = vrot.lane.b32.xlu0 %v3614_v42, %s6078_s16  ;;  %v3626_v42 = vld [vmem:[#allocation2 + $0x461] ss:$2 sm:$0xff] }
 0x3af   :  { %v3848_v43 = vpop.permute.xlu1 %3847 }
 0x3b0   :  { %3999 = vst.msk [vmem:[#allocation3 + $0x148] sm:$0xff] %vm3957_vm11, %v3848_v43  ;;  %v3786_v48 = vpop.permute.xlu0 %3785 }
 0x3b1   :  { %3807 = vrot.lane.b32.xlu1 %v3616_v41, %s6078_s16  ;;  %3968 = vst.msk [vmem:[#allocation3 + $0x50] sm:$0xff] %vm3957_vm11, %v3786_v48  ;;  %v3628_v41 = vld [vmem:[#allocation2 + $0x471] ss:$2 sm:$0xff] }
 0x3b2   :  { %3869 = vrot.lane.b32.xlu0 %v3678_v46, %s6078_s16  ;;  %v3690_v46 = vld [vmem:[#allocation2 + $0x9b1] ss:$2 sm:$0xff] }
 0x3b3   :  { %v3788_v47 = vpop.permute.xlu1 %3787 }
 0x3b4   :  { %3969 = vst.msk [vmem:[#allocation3 + $0x58] sm:$0xff] %vm3957_vm11, %v3788_v47  ;;  %v3850_v52 = vpop.permute.xlu0 %3849 }
 0x3b5   :  { %3871 = vrot.lane.b32.xlu1 %v3680_v45, %s6078_s16  ;;  %4000 = vst.msk [vmem:[#allocation3 + $0x150] sm:$0xff] %vm3957_vm11, %v3850_v52  ;;  %v3692_v45 = vld [vmem:[#allocation2 + $0x9c1] ss:$2 sm:$0xff] }
 0x3b6   :  { %3809 = vrot.lane.b32.xlu0 %v3618_v50, %s6078_s16  ;;  %v4071_v50 = vld [vmem:[#allocation2 + $0x412] ss:$2 sm:$0xff] }
 0x3b7   :  { %v3852_v51 = vpop.permute.xlu1 %3851 }
 0x3b8   :  { %4001 = vst.msk [vmem:[#allocation3 + $0x158] sm:$0xff] %vm3957_vm11, %v3852_v51  ;;  %v4231_v56 = vpop.permute.xlu0 %4230 }
 0x3b9   :  { %3811 = vrot.lane.b32.xlu1 %v3620_v49, %s6078_s16  ;;  %4415 = vst.msk [vmem:[#allocation3 + $0x40] sm:$0xff] %vm4406_vm12, %v4231_v56  ;;  %v4073_v49 = vld [vmem:[#allocation2 + $0x422] ss:$2 sm:$0xff]  ;;  %v4137_v56 = vld [vmem:[#allocation2 + $0x972] ss:$2 sm:$0xff] }
 0x3ba   :  { %3873 = vrot.lane.b32.xlu0 %v3682_v54, %s6078_s16 }
 0x3bb   :  { %v4233_v55 = vpop.permute.xlu1 %4232 }
 0x3bc   :  { %4416 = vst.msk [vmem:[#allocation3 + $0x48] sm:$0xff] %vm4406_vm12, %v4233_v55  ;;  %v4295_v60 = vpop.permute.xlu0 %4294 }
 0x3bd   :  { %3875 = vrot.lane.b32.xlu1 %v3684_v53, %s6078_s16  ;;  %4447 = vst.msk [vmem:[#allocation3 + $0x140] sm:$0xff] %vm4406_vm12, %v4295_v60 }
 0x3be   :  { %4254 = vrot.lane.b32.xlu0 %v4063_v58, %s6080_s21 }
 0x3bf   :  { %v4297_v59 = vpop.permute.xlu1 %4296 }
 0x3c0   :  { %4448 = vst.msk [vmem:[#allocation3 + $0x148] sm:$0xff] %vm4406_vm12, %v4297_v59  ;;  %v4235_v0 = vpop.permute.xlu0 %4234  ;;  %v4479_v1 = vld [vmem:[#allocation3 + $0x40] sm:$0xff] }
 0x3c1   :  { %4256 = vrot.lane.b32.xlu1 %v4065_v57, %s6080_s21  ;;  %4417 = vst.msk [vmem:[#allocation3 + $0x50] sm:$0xff] %vm4406_vm12, %v4235_v0  ;;  %v4135_v57 = vld [vmem:[#allocation2 + $0x962] ss:$2 sm:$0xff] }
 0x3c2   :  { %4318 = vrot.lane.b32.xlu0 %v4127_v62, %s6080_s21  ;;  %v4075_v0 = vld [vmem:[#allocation2 + $0x462] ss:$2 sm:$0xff] }
 0x3c3   :  { %v4237_v63 = vpop.permute.xlu1 %4236  ;;  %v4480_v2 = vld [vmem:[#allocation3 + $0x48] sm:$0xff] }
 0x3c4   :  { %4418 = vst.msk [vmem:[#allocation3 + $0x58] sm:$0xff] %vm4406_vm12, %v4237_v63  ;;  %v4539_v3 = vpack.c.bf16 %v4480_v2, %v4479_v1  ;;  %v4299_v7 = vpop.permute.xlu0 %4298  ;;  %v4511_v8 = vld [vmem:[#allocation3 + $0x140] sm:$0xff] }
 0x3c5   :  { %4320 = vrot.lane.b32.xlu1 %v4129_v61, %s6080_s21  ;;  %4449 = vst.msk [vmem:[#allocation3 + $0x150] sm:$0xff] %vm4406_vm12, %v4299_v7  ;;  %v4077_v63 = vld [vmem:[#allocation2 + $0x472] ss:$2 sm:$0xff] }
 0x3c6   :  { %5974 = vmatprep.mubr.msk.bf16.mxu0 %vm4589_vm13, %v4539_v3  ;;  %4258 = vrot.lane.b32.xlu0 %v4067_v5, %s6080_s21  ;;  %v4139_v7 = vld [vmem:[#allocation2 + $0x9b2] ss:$2 sm:$0xff] }
 0x3c7   :  { %v4301_v6 = vpop.permute.xlu1 %4300  ;;  %v4512_v9 = vld [vmem:[#allocation3 + $0x148] sm:$0xff] }
 0x3c8   :  { %4450 = vst.msk [vmem:[#allocation3 + $0x158] sm:$0xff] %vm4406_vm12, %v4301_v6  ;;  %v4555_v10 = vpack.c.bf16 %v4512_v9, %v4511_v8  ;;  %v3405_v14 = vpop.permute.xlu0 %3404  ;;  %v4481_v15 = vld [vmem:[#allocation3 + $0x50] sm:$0xff] }
 0x3c9   :  { %4260 = vrot.lane.b32.xlu1 %v4069_v4, %s6080_s21  ;;  %3553 = vst.msk [vmem:[#allocation3 + $0x160] sm:$0xff] %vm3508_vm10, %v3405_v14  ;;  %v4141_v6 = vld [vmem:[#allocation2 + $0x9c2] ss:$2 sm:$0xff] }
 0x3ca   :  { %6006 = vmatprep.mubr.msk.bf16.mxu1 %vm4589_vm13, %v4555_v10  ;;  %4322 = vrot.lane.b32.xlu0 %v4131_v12, %s6080_s21  ;;  %v3181_v14 = vld [vmem:[#allocation2 + $0x4b0] ss:$2 sm:$0xff] }
 0x3cb   :  { %v3407_v13 = vpop.permute.xlu1 %3406  ;;  %v4482_v16 = vld [vmem:[#allocation3 + $0x58] sm:$0xff] }
 0x3cc   :  { %3554 = vst.msk [vmem:[#allocation3 + $0x168] sm:$0xff] %vm3508_vm10, %v3407_v13  ;;  %v4540_v17 = vpack.c.bf16 %v4482_v16, %v4481_v15  ;;  %v3409_v21 = vpop.permute.xlu0 %3408  ;;  %v4513_v22 = vld [vmem:[#allocation3 + $0x150] sm:$0xff]  ;;  %v3183_v13 = vld [vmem:[#allocation2 + $0x4c0] ss:$2 sm:$0xff] }
 0x3cd   :  { %4324 = vrot.lane.b32.xlu1 %v4133_v11, %s6080_s21  ;;  %3555 = vst.msk [vmem:[#allocation3 + $0x170] sm:$0xff] %vm3508_vm10, %v3409_v21  ;;  %v3187_v21 = vld [vmem:[#allocation2 + $0x510] ss:$2 sm:$0xff] }
 0x3ce   :  { %5975 = vmatmul.mubr.msk.bf16.gmra.mxu0 %vm4589_vm13, %v4540_v17  ;;  %3428 = vrot.lane.b32.xlu0 %v3237_v19, %s6077_s15  ;;  %v3247_v17 = vld [vmem:[#allocation2 + $0xa10] ss:$2 sm:$0xff] }
 0x3cf   :  { %v3411_v20 = vpop.permute.xlu1 %3410  ;;  %v4514_v23 = vld [vmem:[#allocation3 + $0x158] sm:$0xff] }
 0x3d0   :  { %3556 = vst.msk [vmem:[#allocation3 + $0x178] sm:$0xff] %vm3508_vm10, %v3411_v20  ;;  %v4556_v24 = vpack.c.bf16 %v4514_v23, %v4513_v22  ;;  %v3790_v28 = vpop.permute.xlu0 %3789  ;;  %v3185_v22 = vld [vmem:[#allocation2 + $0x500] ss:$2 sm:$0xff] }
 0x3d1   :  { %3430 = vrot.lane.b32.xlu1 %v3239_v18, %s6077_s15  ;;  %3970 = vst.msk [vmem:[#allocation3 + $0x60] sm:$0xff] %vm3957_vm11, %v3790_v28  ;;  %v3245_v18 = vld [vmem:[#allocation2 + $0xa00] ss:$2 sm:$0xff] }
 0x3d2   :  { %6007 = vmatmul.mubr.msk.bf16.gmra.mxu1 %vm4589_vm13, %v4556_v24  ;;  %3368 = vrot.lane.b32.xlu0 %v3177_v26, %s6077_s15  ;;  %v3249_v26 = vld [vmem:[#allocation2 + $0xa50] ss:$2 sm:$0xff] }
 0x3d3   :  { %v3792_v27 = vpop.permute.xlu1 %3791 }
 0x3d4   :  { %3971 = vst.msk [vmem:[#allocation3 + $0x68] sm:$0xff] %vm3957_vm11, %v3792_v27  ;;  %v3854_v32 = vpop.permute.xlu0 %3853 }
 0x3d5   :  { %3370 = vrot.lane.b32.xlu1 %v3179_v25, %s6077_s15  ;;  %4002 = vst.msk [vmem:[#allocation3 + $0x160] sm:$0xff] %vm3957_vm11, %v3854_v32  ;;  %v3251_v25 = vld [vmem:[#allocation2 + $0xa60] ss:$2 sm:$0xff] }
 0x3d6   :  { %3432 = vrot.lane.b32.xlu0 %v3241_v30, %s6077_s15  ;;  %v3630_v30 = vld [vmem:[#allocation2 + $0x4b1] ss:$2 sm:$0xff] }
 0x3d7   :  { %v3856_v31 = vpop.permute.xlu1 %3855 }
 0x3d8   :  { %4003 = vst.msk [vmem:[#allocation3 + $0x168] sm:$0xff] %vm3957_vm11, %v3856_v31  ;;  %v3794_v36 = vpop.permute.xlu0 %3793 }
 0x3d9   :  { %3434 = vrot.lane.b32.xlu1 %v3243_v29, %s6077_s15  ;;  %3972 = vst.msk [vmem:[#allocation3 + $0x70] sm:$0xff] %vm3957_vm11, %v3794_v36  ;;  %v3632_v29 = vld [vmem:[#allocation2 + $0x4c1] ss:$2 sm:$0xff] }
 0x3da   :  { %3813 = vrot.lane.b32.xlu0 %v3622_v34, %s6078_s16  ;;  %v3694_v34 = vld [vmem:[#allocation2 + $0xa01] ss:$2 sm:$0xff] }
 0x3db   :  { %v3796_v35 = vpop.permute.xlu1 %3795 }
 0x3dc   :  { %3973 = vst.msk [vmem:[#allocation3 + $0x78] sm:$0xff] %vm3957_vm11, %v3796_v35  ;;  %v3858_v40 = vpop.permute.xlu0 %3857 }
 0x3dd   :  { %3815 = vrot.lane.b32.xlu1 %v3624_v33, %s6078_s16  ;;  %4004 = vst.msk [vmem:[#allocation3 + $0x170] sm:$0xff] %vm3957_vm11, %v3858_v40  ;;  %v3696_v33 = vld [vmem:[#allocation2 + $0xa11] ss:$2 sm:$0xff] }
 0x3de   :  { %3877 = vrot.lane.b32.xlu0 %v3686_v38, %s6078_s16  ;;  %v3634_v38 = vld [vmem:[#allocation2 + $0x501] ss:$2 sm:$0xff] }
 0x3df   :  { %v3860_v39 = vpop.permute.xlu1 %3859 }
 0x3e0   :  { %4005 = vst.msk [vmem:[#allocation3 + $0x178] sm:$0xff] %vm3957_vm11, %v3860_v39  ;;  %v4239_v44 = vpop.permute.xlu0 %4238 }
 0x3e1   :  { %3879 = vrot.lane.b32.xlu1 %v3688_v37, %s6078_s16  ;;  %4419 = vst.msk [vmem:[#allocation3 + $0x60] sm:$0xff] %vm4406_vm12, %v4239_v44  ;;  %v3636_v37 = vld [vmem:[#allocation2 + $0x511] ss:$2 sm:$0xff]  ;;  %v3700_v44 = vld [vmem:[#allocation2 + $0xa61] ss:$2 sm:$0xff] }
 0x3e2   :  { %3817 = vrot.lane.b32.xlu0 %v3626_v42, %s6078_s16 }
 0x3e3   :  { %v4241_v43 = vpop.permute.xlu1 %4240 }
 0x3e4   :  { %4420 = vst.msk [vmem:[#allocation3 + $0x68] sm:$0xff] %vm4406_vm12, %v4241_v43  ;;  %v4303_v48 = vpop.permute.xlu0 %4302 }
 0x3e5   :  { %3819 = vrot.lane.b32.xlu1 %v3628_v41, %s6078_s16  ;;  %4451 = vst.msk [vmem:[#allocation3 + $0x160] sm:$0xff] %vm4406_vm12, %v4303_v48 }
 0x3e6   :  { %3881 = vrot.lane.b32.xlu0 %v3690_v46, %s6078_s16 }
 0x3e7   :  { %v4305_v47 = vpop.permute.xlu1 %4304 }
 0x3e8   :  { %4452 = vst.msk [vmem:[#allocation3 + $0x168] sm:$0xff] %vm4406_vm12, %v4305_v47  ;;  %v4243_v52 = vpop.permute.xlu0 %4242  ;;  %v4483_v53 = vld [vmem:[#allocation3 + $0x60] sm:$0xff] }
 0x3e9   :  { %3883 = vrot.lane.b32.xlu1 %v3692_v45, %s6078_s16  ;;  %4421 = vst.msk [vmem:[#allocation3 + $0x70] sm:$0xff] %vm4406_vm12, %v4243_v52  ;;  %v3698_v45 = vld [vmem:[#allocation2 + $0xa51] ss:$2 sm:$0xff]  ;;  %v4079_v52 = vld [vmem:[#allocation2 + $0x4b2] ss:$2 sm:$0xff] }
 0x3ea   :  { %4262 = vrot.lane.b32.xlu0 %v4071_v50, %s6080_s21 }
 0x3eb   :  { %v4245_v51 = vpop.permute.xlu1 %4244  ;;  %v4484_v54 = vld [vmem:[#allocation3 + $0x68] sm:$0xff] }
 0x3ec   :  { %4422 = vst.msk [vmem:[#allocation3 + $0x78] sm:$0xff] %vm4406_vm12, %v4245_v51  ;;  %v4541_v55 = vpack.c.bf16 %v4484_v54, %v4483_v53  ;;  %v4307_v59 = vpop.permute.xlu0 %4306  ;;  %v4515_v60 = vld [vmem:[#allocation3 + $0x160] sm:$0xff] }
 0x3ed   :  { %4264 = vrot.lane.b32.xlu1 %v4073_v49, %s6080_s21  ;;  %4453 = vst.msk [vmem:[#allocation3 + $0x170] sm:$0xff] %vm4406_vm12, %v4307_v59  ;;  %v4081_v51 = vld [vmem:[#allocation2 + $0x4c2] ss:$2 sm:$0xff] }
 0x3ee   :  { %5978 = vmatprep.mubr.msk.bf16.mxu0 %vm4589_vm13, %v4541_v55  ;;  %4326 = vrot.lane.b32.xlu0 %v4135_v57, %s6080_s21  ;;  %v4143_v59 = vld [vmem:[#allocation2 + $0xa02] ss:$2 sm:$0xff] }
 0x3ef   :  { %v4309_v58 = vpop.permute.xlu1 %4308  ;;  %v4516_v61 = vld [vmem:[#allocation3 + $0x168] sm:$0xff] }
 0x3f0   :  { %4454 = vst.msk [vmem:[#allocation3 + $0x178] sm:$0xff] %vm4406_vm12, %v4309_v58  ;;  %v4557_v62 = vpack.c.bf16 %v4516_v61, %v4515_v60  ;;  %v3413_v2 = vpop.permute.xlu0 %3412  ;;  %v4485_v3 = vld [vmem:[#allocation3 + $0x70] sm:$0xff] }
 0x3f1   :  { %4328 = vrot.lane.b32.xlu1 %v4137_v56, %s6080_s21  ;;  %3557 = vst.msk [vmem:[#allocation3 + $0x180] sm:$0xff] %vm3508_vm10, %v3413_v2  ;;  %v4145_v58 = vld [vmem:[#allocation2 + $0xa12] ss:$2 sm:$0xff]  ;;  %v4083_v2 = vld [vmem:[#allocation2 + $0x502] ss:$2 sm:$0xff] }
 0x3f2   :  { %6010 = vmatprep.mubr.msk.bf16.mxu1 %vm4589_vm13, %v4557_v62  ;;  %4266 = vrot.lane.b32.xlu0 %v4075_v0, %s6080_s21 }
 0x3f3   :  { %v3415_v1 = vpop.permute.xlu1 %3414  ;;  %v4486_v4 = vld [vmem:[#allocation3 + $0x78] sm:$0xff] }
 0x3f4   :  { %3558 = vst.msk [vmem:[#allocation3 + $0x188] sm:$0xff] %vm3508_vm10, %v3415_v1  ;;  %v4542_v5 = vpack.c.bf16 %v4486_v4, %v4485_v3  ;;  %v3417_v9 = vpop.permute.xlu0 %3416  ;;  %v4517_v10 = vld [vmem:[#allocation3 + $0x170] sm:$0xff] }
 0x3f5   :  { %4268 = vrot.lane.b32.xlu1 %v4077_v63, %s6080_s21  ;;  %3559 = vst.msk [vmem:[#allocation3 + $0x190] sm:$0xff] %vm3508_vm10, %v3417_v9  ;;  %v4085_v1 = vld [vmem:[#allocation2 + $0x512] ss:$2 sm:$0xff] }
 0x3f6   :  { %5979 = vmatmul.mubr.msk.bf16.gmra.mxu0 %vm4589_vm13, %v4542_v5  ;;  %4330 = vrot.lane.b32.xlu0 %v4139_v7, %s6080_s21  ;;  %v4149_v5 = vld [vmem:[#allocation2 + $0xa62] ss:$2 sm:$0xff] }
 0x3f7   :  { %v3419_v8 = vpop.permute.xlu1 %3418  ;;  %v4518_v11 = vld [vmem:[#allocation3 + $0x178] sm:$0xff] }
 0x3f8   :  { %3560 = vst.msk [vmem:[#allocation3 + $0x198] sm:$0xff] %vm3508_vm10, %v3419_v8  ;;  %v4558_v12 = vpack.c.bf16 %v4518_v11, %v4517_v10  ;;  %v3798_v16 = vpop.permute.xlu0 %3797 }
 0x3f9   :  { %4332 = vrot.lane.b32.xlu1 %v4141_v6, %s6080_s21  ;;  %3974 = vst.msk [vmem:[#allocation3 + $0x80] sm:$0xff] %vm3957_vm11, %v3798_v16  ;;  %v4147_v6 = vld [vmem:[#allocation2 + $0xa52] ss:$2 sm:$0xff] }
 0x3fa   :  { %6011 = vmatmul.mubr.msk.bf16.gmra.mxu1 %vm4589_vm13, %v4558_v12  ;;  %3372 = vrot.lane.b32.xlu0 %v3181_v14, %s6077_s15 }
 0x3fb   :  { %v3800_v15 = vpop.permute.xlu1 %3799 }
 0x3fc   :  { %3975 = vst.msk [vmem:[#allocation3 + $0x88] sm:$0xff] %vm3957_vm11, %v3800_v15  ;;  %v3862_v20 = vpop.permute.xlu0 %3861 }
 0x3fd   :  { %3374 = vrot.lane.b32.xlu1 %v3183_v13, %s6077_s15  ;;  %4006 = vst.msk [vmem:[#allocation3 + $0x180] sm:$0xff] %vm3957_vm11, %v3862_v20 }
 0x3fe   :  { %3436 = vrot.lane.b32.xlu0 %v3245_v18, %s6077_s15 }
 0x3ff   :  { %v3864_v19 = vpop.permute.xlu1 %3863 }
 0x400   :  { %4007 = vst.msk [vmem:[#allocation3 + $0x188] sm:$0xff] %vm3957_vm11, %v3864_v19  ;;  %v3802_v24 = vpop.permute.xlu0 %3801 }
 0x401   :  { %3438 = vrot.lane.b32.xlu1 %v3247_v17, %s6077_s15  ;;  %3976 = vst.msk [vmem:[#allocation3 + $0x90] sm:$0xff] %vm3957_vm11, %v3802_v24 }
 0x402   :  { %3376 = vrot.lane.b32.xlu0 %v3185_v22, %s6077_s15 }
 0x403   :  { %v3804_v23 = vpop.permute.xlu1 %3803 }
 0x404   :  { %3977 = vst.msk [vmem:[#allocation3 + $0x98] sm:$0xff] %vm3957_vm11, %v3804_v23  ;;  %v3866_v28 = vpop.permute.xlu0 %3865 }
 0x405   :  { %3378 = vrot.lane.b32.xlu1 %v3187_v21, %s6077_s15  ;;  %4008 = vst.msk [vmem:[#allocation3 + $0x190] sm:$0xff] %vm3957_vm11, %v3866_v28  ;;  %v8353_v21 = vld [vmem:[%s8548_s2] ss:$0 sm:$0xff]  ;;  %s6081_s2 = smov [#allocation4]  }
 0x406   :  { %3440 = vrot.lane.b32.xlu0 %v3249_v26, %s6077_s15  ;;  %s5372_s11 = sshll.u32 %s6081_s2, 4  ;;  %s5373_s11 = int_to_ptr.vmem [resolvable:$true] %s5372_s11 }
 0x407   :  { %v3868_v27 = vpop.permute.xlu1 %3867  ;;  %s6049_s13 = scalar_lea.vmem %s5373_s11, 4096  ;;  %p6054_p1 = scmp.lt.s32.totalorder %s5373_s11, %s5373_s11 }
 0x408   :  { %4009 = vst.msk [vmem:[#allocation3 + $0x198] sm:$0xff] %vm3957_vm11, %v3868_v27  ;;  %v4247_v32 = vpop.permute.xlu0 %4246  ;;  %p6050_p0 = scmp.ne.s32.totalorder %s5373_s11, %s6049_s13  ;;  %p6055_p2 = scmp.lt.s32.totalorder %s6049_s13, %s6049_s13 }
 0x409   :  { %3442 = vrot.lane.b32.xlu1 %v3251_v25, %s6077_s15  ;;  %4423 = vst.msk [vmem:[#allocation3 + $0x80] sm:$0xff] %vm4406_vm12, %v4247_v32 }
 0x40a   :  { %3821 = vrot.lane.b32.xlu0 %v3630_v30, %s6078_s16  ;;  %p6056_p3 = por %p6055_p2, %p6054_p1 }
 0x40b   :  { %v4249_v31 = vpop.permute.xlu1 %4248 }
 0x40c   :  { %4424 = vst.msk [vmem:[#allocation3 + $0x88] sm:$0xff] %vm4406_vm12, %v4249_v31  ;;  %v4311_v36 = vpop.permute.xlu0 %4310  ;;  %p6057_p4 = pnand %p6056_p3, %p6050_p0 }
 0x40d   :  { %3823 = vrot.lane.b32.xlu1 %v3632_v29, %s6078_s16  ;;  %4455 = vst.msk [vmem:[#allocation3 + $0x180] sm:$0xff] %vm4406_vm12, %v4311_v36 }
 0x40e   :  { %3885 = vrot.lane.b32.xlu0 %v3694_v34, %s6078_s16 }
 0x40f   :  { %v4313_v35 = vpop.permute.xlu1 %4312 }
 0x410   :  { %4456 = vst.msk [vmem:[#allocation3 + $0x188] sm:$0xff] %vm4406_vm12, %v4313_v35  ;;  %v4251_v40 = vpop.permute.xlu0 %4250  ;;  %v4487_v41 = vld [vmem:[#allocation3 + $0x80] sm:$0xff] }
 0x411   :  { %3887 = vrot.lane.b32.xlu1 %v3696_v33, %s6078_s16  ;;  %4425 = vst.msk [vmem:[#allocation3 + $0x90] sm:$0xff] %vm4406_vm12, %v4251_v40 }
 0x412   :  { %3825 = vrot.lane.b32.xlu0 %v3634_v38, %s6078_s16 }
 0x413   :  { %v4253_v39 = vpop.permute.xlu1 %4252  ;;  %v4488_v42 = vld [vmem:[#allocation3 + $0x88] sm:$0xff] }
 0x414   :  { %4426 = vst.msk [vmem:[#allocation3 + $0x98] sm:$0xff] %vm4406_vm12, %v4253_v39  ;;  %v4543_v43 = vpack.c.bf16 %v4488_v42, %v4487_v41  ;;  %v4315_v47 = vpop.permute.xlu0 %4314  ;;  %v4519_v48 = vld [vmem:[#allocation3 + $0x180] sm:$0xff] }
 0x415   :  { %3827 = vrot.lane.b32.xlu1 %v3636_v37, %s6078_s16  ;;  %4457 = vst.msk [vmem:[#allocation3 + $0x190] sm:$0xff] %vm4406_vm12, %v4315_v47 }
 0x416   :  { %5982 = vmatprep.mubr.msk.bf16.mxu0 %vm4589_vm13, %v4543_v43  ;;  %3889 = vrot.lane.b32.xlu0 %v3698_v45, %s6078_s16 }
 0x417   :  { %v4317_v46 = vpop.permute.xlu1 %4316  ;;  %v4520_v49 = vld [vmem:[#allocation3 + $0x188] sm:$0xff] }
 0x418   :  { %4458 = vst.msk [vmem:[#allocation3 + $0x198] sm:$0xff] %vm4406_vm12, %v4317_v46  ;;  %v4559_v50 = vpack.c.bf16 %v4520_v49, %v4519_v48  ;;  %v3421_v54 = vpop.permute.xlu0 %3420  ;;  %v4489_v55 = vld [vmem:[#allocation3 + $0x90] sm:$0xff] }
 0x419   :  { %3891 = vrot.lane.b32.xlu1 %v3700_v44, %s6078_s16  ;;  %3561 = vst.msk [vmem:[#allocation3 + $0x1a0] sm:$0xff] %vm3508_vm10, %v3421_v54 }
 0x41a   :  { %6014 = vmatprep.mubr.msk.bf16.mxu1 %vm4589_vm13, %v4559_v50  ;;  %4270 = vrot.lane.b32.xlu0 %v4079_v52, %s6080_s21 }
 0x41b   :  { %v3423_v53 = vpop.permute.xlu1 %3422  ;;  %v4490_v56 = vld [vmem:[#allocation3 + $0x98] sm:$0xff] }
 0x41c   :  { %3562 = vst.msk [vmem:[#allocation3 + $0x1a8] sm:$0xff] %vm3508_vm10, %v3423_v53  ;;  %v4544_v57 = vpack.c.bf16 %v4490_v56, %v4489_v55  ;;  %v3425_v61 = vpop.permute.xlu0 %3424  ;;  %v4521_v62 = vld [vmem:[#allocation3 + $0x190] sm:$0xff] }
 0x41d   :  { %4272 = vrot.lane.b32.xlu1 %v4081_v51, %s6080_s21  ;;  %3563 = vst.msk [vmem:[#allocation3 + $0x1b0] sm:$0xff] %vm3508_vm10, %v3425_v61 }
 0x41e   :  { %5983 = vmatmul.mubr.msk.bf16.gmra.mxu0 %vm4589_vm13, %v4544_v57  ;;  %4334 = vrot.lane.b32.xlu0 %v4143_v59, %s6080_s21 }
 0x41f   :  { %v3427_v60 = vpop.permute.xlu1 %3426  ;;  %v4522_v63 = vld [vmem:[#allocation3 + $0x198] sm:$0xff] }
 0x420   :  { %3564 = vst.msk [vmem:[#allocation3 + $0x1b8] sm:$0xff] %vm3508_vm10, %v3427_v60  ;;  %v4560_v0 = vpack.c.bf16 %v4522_v63, %v4521_v62  ;;  %v3806_v4 = vpop.permute.xlu0 %3805 }
 0x421   :  { %4336 = vrot.lane.b32.xlu1 %v4145_v58, %s6080_s21  ;;  %3978 = vst.msk [vmem:[#allocation3 + $0xa0] sm:$0xff] %vm3957_vm11, %v3806_v4 }
 0x422   :  { %6015 = vmatmul.mubr.msk.bf16.gmra.mxu1 %vm4589_vm13, %v4560_v0  ;;  %4274 = vrot.lane.b32.xlu0 %v4083_v2, %s6080_s21 }
 0x423   :  { %v3808_v3 = vpop.permute.xlu1 %3807 }
 0x424   :  { %3979 = vst.msk [vmem:[#allocation3 + $0xa8] sm:$0xff] %vm3957_vm11, %v3808_v3  ;;  %v3870_v8 = vpop.permute.xlu0 %3869 }
 0x425   :  { %4276 = vrot.lane.b32.xlu1 %v4085_v1, %s6080_s21  ;;  %4010 = vst.msk [vmem:[#allocation3 + $0x1a0] sm:$0xff] %vm3957_vm11, %v3870_v8 }
 0x426   :  { %4338 = vrot.lane.b32.xlu0 %v4147_v6, %s6080_s21 }
 0x427   :  { %v3872_v7 = vpop.permute.xlu1 %3871 }
 0x428   :  { %4011 = vst.msk [vmem:[#allocation3 + $0x1a8] sm:$0xff] %vm3957_vm11, %v3872_v7  ;;  %v3810_v10 = vpop.permute.xlu0 %3809 }
 0x429   :  { %4340 = vrot.lane.b32.xlu1 %v4149_v5, %s6080_s21  ;;  %3980 = vst.msk [vmem:[#allocation3 + $0xb0] sm:$0xff] %vm3957_vm11, %v3810_v10 }
 0x42b   :  { %v3812_v9 = vpop.permute.xlu1 %3811 }
 0x42c   :  { %3981 = vst.msk [vmem:[#allocation3 + $0xb8] sm:$0xff] %vm3957_vm11, %v3812_v9  ;;  %v3874_v12 = vpop.permute.xlu0 %3873 }
 0x42d   :  { %4012 = vst.msk [vmem:[#allocation3 + $0x1b0] sm:$0xff] %vm3957_vm11, %v3874_v12 }
 0x42f   :  { %v3876_v11 = vpop.permute.xlu1 %3875 }
 0x430   :  { %4013 = vst.msk [vmem:[#allocation3 + $0x1b8] sm:$0xff] %vm3957_vm11, %v3876_v11  ;;  %v4255_v14 = vpop.permute.xlu0 %4254 }
 0x431   :  { %4427 = vst.msk [vmem:[#allocation3 + $0xa0] sm:$0xff] %vm4406_vm12, %v4255_v14 }
 0x433   :  { %v4257_v13 = vpop.permute.xlu1 %4256 }
 0x434   :  { %4428 = vst.msk [vmem:[#allocation3 + $0xa8] sm:$0xff] %vm4406_vm12, %v4257_v13  ;;  %v4319_v16 = vpop.permute.xlu0 %4318 }
 0x435   :  { %4459 = vst.msk [vmem:[#allocation3 + $0x1a0] sm:$0xff] %vm4406_vm12, %v4319_v16 }
 0x437   :  { %v4321_v15 = vpop.permute.xlu1 %4320 }
 0x438   :  { %4460 = vst.msk [vmem:[#allocation3 + $0x1a8] sm:$0xff] %vm4406_vm12, %v4321_v15  ;;  %v4259_v18 = vpop.permute.xlu0 %4258  ;;  %v4491_v19 = vld [vmem:[#allocation3 + $0xa0] sm:$0xff] }
 0x439   :  { %4429 = vst.msk [vmem:[#allocation3 + $0xb0] sm:$0xff] %vm4406_vm12, %v4259_v18 }
 0x43b   :  { %v4261_v17 = vpop.permute.xlu1 %4260  ;;  %v4492_v20 = vld [vmem:[#allocation3 + $0xa8] sm:$0xff] }
 0x43c   :  { %4430 = vst.msk [vmem:[#allocation3 + $0xb8] sm:$0xff] %vm4406_vm12, %v4261_v17  ;;  %v4545_v22 = vpack.c.bf16 %v4492_v20, %v4491_v19  ;;  %v4323_v26 = vpop.permute.xlu0 %4322  ;;  %v4523_v27 = vld [vmem:[#allocation3 + $0x1a0] sm:$0xff] }
 0x43d   :  { %4461 = vst.msk [vmem:[#allocation3 + $0x1b0] sm:$0xff] %vm4406_vm12, %v4323_v26 }
 0x43e   :  { %v5968_v23 = vpop.f32.mrf.mxu0  ;;  %5986 = vmatprep.mubr.msk.bf16.mxu0 %vm4589_vm13, %v4545_v22 }
 0x43f   :  { %v4736_v24 = vadd.f32 %v5968_v23, %v8353_v21  ;;  %v4325_v25 = vpop.permute.xlu1 %4324  ;;  %v4524_v28 = vld [vmem:[#allocation3 + $0x1a8] sm:$0xff] }
 0x440   :  { %4462 = vst.msk [vmem:[#allocation3 + $0x1b8] sm:$0xff] %vm4406_vm12, %v4325_v25  ;;  %v4727_v29 = vpop.f32.mrf.mxu0  ;;  %v4561_v30 = vpack.c.bf16 %v4524_v28, %v4523_v27  ;;  %v3429_v40 = vpop.permute.xlu0 %3428  ;;  %v4493_v41 = vld [vmem:[#allocation3 + $0xb0] sm:$0xff] }
 0x441   :  { %v4984_v31 = vmax.f32 %v4736_v24, 0.0  ;;  %v4728_v32 = vadd.f32 %v8353_v21, %v4727_v29  ;;  %3565 = vst.msk [vmem:[#allocation3 + $0x1c0] sm:$0xff] %vm3508_vm10, %v3429_v40 }
 0x442   :  { %v5969_v33 = vpop.f32.mrf.mxu0  ;;  %v6000_v34 = vpop.f32.mrf.mxu1  ;;  %6018 = vmatprep.mubr.msk.bf16.mxu1 %vm4589_vm13, %v4561_v30 }
 0x443   :  { %v5866_v35 = vpack.c.bf16 %v4984_v31, %v4984_v31  ;;  %v4982_v36 = vmax.f32 %v4728_v32, 0.0  ;;  %v4739_v37 = vadd.f32 %v5969_v33, %v8353_v21  ;;  %v4864_v38 = vadd.f32 %v6000_v34, %v8353_v21  ;;  %v3431_v39 = vpop.permute.xlu1 %3430  ;;  %v4494_v42 = vld [vmem:[#allocation3 + $0xb8] sm:$0xff] }
 0x444   :  { %3566 = vst.msk [vmem:[#allocation3 + $0x1c8] sm:$0xff] %vm3508_vm10, %v3431_v39  ;;  %v4730_v43 = vpop.f32.mrf.mxu0  ;;  %v4855_v44 = vpop.f32.mrf.mxu1  ;;  %v4546_v45 = vpack.c.bf16 %v4494_v42, %v4493_v41  ;;  %v4525_v58 = vld [vmem:[#allocation3 + $0x1b0] sm:$0xff] }
 0x445   :  { %5305 = vst.msk [vmem:[#allocation4 + $0x8] sm:$0xf] %vm5302_vm14, %v5866_v35  ;;  %v5864_v46 = vpack.c.bf16 %v4982_v36, %v4982_v36  ;;  %v4985_v47 = vmax.f32 %v4739_v37, 0.0  ;;  %v5016_v48 = vmax.f32 %v4864_v38, 0.0  ;;  %v4731_v49 = vadd.f32 %v8353_v21, %v4730_v43  ;;  %v3369_v57 = vpop.permute.xlu0 %3368 }
 0x446   :  { %v4856_v50 = vadd.f32 %v8353_v21, %v4855_v44  ;;  %5987 = vmatmul.mubr.msk.bf16.gmra.mxu0 %vm4589_vm13, %v4546_v45  ;;  %v6001_v51 = vpop.f32.mrf.mxu1  ;;  %3535 = vst.msk [vmem:[#allocation3 + $0xd0] sm:$0xff] %vm3508_vm10, %v3369_v57 }
 0x447   :  { %5303 = vst.msk [vmem:[#allocation4] sm:$0xf] %vm5302_vm14, %v5864_v46  ;;  %v5867_v52 = vpack.c.bf16 %v4985_v47, %v4985_v47  ;;  %v5898_v53 = vpack.c.bf16 %v5016_v48, %v5016_v48  ;;  %v4983_v54 = vmax.f32 %v4731_v49, 0.0  ;;  %v4867_v55 = vadd.f32 %v6001_v51, %v8353_v21  ;;  %v3371_v56 = vpop.permute.xlu1 %3370  ;;  %v4526_v59 = vld [vmem:[#allocation3 + $0x1b8] sm:$0xff] }
 0x448   :  { %v5014_v60 = vmax.f32 %v4856_v50, 0.0  ;;  %3536 = vst.msk [vmem:[#allocation3 + $0xd8] sm:$0xff] %vm3508_vm10, %v3371_v56  ;;  %v4858_v61 = vpop.f32.mrf.mxu1  ;;  %v4562_v62 = vpack.c.bf16 %v4526_v59, %v4525_v58 }
 0x449   :  { %5306 = vst.msk [vmem:[#allocation4 + $0xc] sm:$0xf] %vm5302_vm14, %v5867_v52  ;;  %5337 = vst.msk [vmem:[#allocation4 + $0x88] sm:$0xf] %vm5302_vm14, %v5898_v53  ;;  %v5865_v63 = vpack.c.bf16 %v4983_v54, %v4983_v54  ;;  %v5017_v0 = vmax.f32 %v4867_v55, 0.0  ;;  %v4859_v1 = vadd.f32 %v8353_v21, %v4858_v61  ;;  %v3433_v6 = vpop.permute.xlu0 %3432 }
 0x44a   :  { %v5896_v2 = vpack.c.bf16 %v5014_v60, %v5014_v60  ;;  %6019 = vmatmul.mubr.msk.bf16.gmra.mxu1 %vm4589_vm13, %v4562_v62  ;;  %3567 = vst.msk [vmem:[#allocation3 + $0x1d0] sm:$0xff] %vm3508_vm10, %v3433_v6 }
 0x44b   :  { %5304 = vst.msk [vmem:[#allocation4 + $0x4] sm:$0xf] %vm5302_vm14, %v5865_v63  ;;  %v5899_v3 = vpack.c.bf16 %v5017_v0, %v5017_v0  ;;  %v5015_v4 = vmax.f32 %v4859_v1, 0.0  ;;  %v3435_v5 = vpop.permute.xlu1 %3434 }
 0x44c   :  { %5335 = vst.msk [vmem:[#allocation4 + $0x80] sm:$0xf] %vm5302_vm14, %v5896_v2 }
 0x44d   :  { %3568 = vst.msk [vmem:[#allocation3 + $0x1d8] sm:$0xff] %vm3508_vm10, %v3435_v5  ;;  %v5897_v7 = vpack.c.bf16 %v5015_v4, %v5015_v4  ;;  %v3814_v9 = vpop.permute.xlu0 %3813 }
 0x44e   :  { %5338 = vst.msk [vmem:[#allocation4 + $0x8c] sm:$0xf] %vm5302_vm14, %v5899_v3 }
 0x44f   :  { %5336 = vst.msk [vmem:[#allocation4 + $0x84] sm:$0xf] %vm5302_vm14, %v5897_v7  ;;  %v3816_v8 = vpop.permute.xlu1 %3815 }
 0x450   :  { %3983 = vst.msk [vmem:[#allocation3 + $0xc8] sm:$0xff] %vm3957_vm11, %v3816_v8  ;;  %3982 = vst.msk [vmem:[#allocation3 + $0xc0] sm:$0xff] %vm3957_vm11, %v3814_v9 }
 0x451   :  { %v3878_v11 = vpop.permute.xlu0 %3877 }
 0x452   :  { %4014 = vst.msk [vmem:[#allocation3 + $0x1c0] sm:$0xff] %vm3957_vm11, %v3878_v11 }
 0x453   :  { %v3880_v10 = vpop.permute.xlu1 %3879 }
 0x454   :  { %4015 = vst.msk [vmem:[#allocation3 + $0x1c8] sm:$0xff] %vm3957_vm11, %v3880_v10 }
 0x455   :  { %v3818_v13 = vpop.permute.xlu0 %3817 }
 0x456   :  { %3984 = vst.msk [vmem:[#allocation3 + $0xd0] sm:$0xff] %vm3957_vm11, %v3818_v13 }
 0x457   :  { %v3820_v12 = vpop.permute.xlu1 %3819 }
 0x458   :  { %3985 = vst.msk [vmem:[#allocation3 + $0xd8] sm:$0xff] %vm3957_vm11, %v3820_v12 }
 0x459   :  { %v3882_v15 = vpop.permute.xlu0 %3881 }
 0x45a   :  { %4016 = vst.msk [vmem:[#allocation3 + $0x1d0] sm:$0xff] %vm3957_vm11, %v3882_v15 }
 0x45b   :  { %v3884_v14 = vpop.permute.xlu1 %3883 }
 0x45c   :  { %4017 = vst.msk [vmem:[#allocation3 + $0x1d8] sm:$0xff] %vm3957_vm11, %v3884_v14 }
 0x45d   :  { %v4263_v17 = vpop.permute.xlu0 %4262 }
 0x45e   :  { %4431 = vst.msk [vmem:[#allocation3 + $0xc0] sm:$0xff] %vm4406_vm12, %v4263_v17 }
 0x45f   :  { %v4265_v16 = vpop.permute.xlu1 %4264 }
 0x460   :  { %4432 = vst.msk [vmem:[#allocation3 + $0xc8] sm:$0xff] %vm4406_vm12, %v4265_v16 }
 0x461   :  { %v4327_v19 = vpop.permute.xlu0 %4326 }
 0x462   :  { %4463 = vst.msk [vmem:[#allocation3 + $0x1c0] sm:$0xff] %vm4406_vm12, %v4327_v19 }
 0x463   :  { %v4329_v18 = vpop.permute.xlu1 %4328 }
 0x464   :  { %4464 = vst.msk [vmem:[#allocation3 + $0x1c8] sm:$0xff] %vm4406_vm12, %v4329_v18 }
 0x465   :  { %v4267_v24 = vpop.permute.xlu0 %4266  ;;  %v4495_v25 = vld [vmem:[#allocation3 + $0xc0] sm:$0xff] }
 0x466   :  { %v5972_v20 = vpop.f32.mrf.mxu0  ;;  %4433 = vst.msk [vmem:[#allocation3 + $0xd0] sm:$0xff] %vm4406_vm12, %v4267_v24 }
 0x467   :  { %v4752_v22 = vadd.f32 %v5972_v20, %v8353_v21  ;;  %v4269_v23 = vpop.permute.xlu1 %4268  ;;  %v4496_v26 = vld [vmem:[#allocation3 + $0xc8] sm:$0xff] }
 0x468   :  { %4434 = vst.msk [vmem:[#allocation3 + $0xd8] sm:$0xff] %vm4406_vm12, %v4269_v23  ;;  %v4743_v27 = vpop.f32.mrf.mxu0  ;;  %v4547_v28 = vpack.c.bf16 %v4496_v26, %v4495_v25 }
 0x469   :  { %v4988_v29 = vmax.f32 %v4752_v22, 0.0  ;;  %v4744_v30 = vadd.f32 %v8353_v21, %v4743_v27  ;;  %v4331_v38 = vpop.permute.xlu0 %4330  ;;  %v4527_v39 = vld [vmem:[#allocation3 + $0x1c0] sm:$0xff] }
 0x46a   :  { %v5973_v31 = vpop.f32.mrf.mxu0  ;;  %5990 = vmatprep.mubr.msk.bf16.mxu0 %vm4589_vm13, %v4547_v28  ;;  %v6004_v32 = vpop.f32.mrf.mxu1  ;;  %4465 = vst.msk [vmem:[#allocation3 + $0x1d0] sm:$0xff] %vm4406_vm12, %v4331_v38 }
 0x46b   :  { %v5870_v33 = vpack.c.bf16 %v4988_v29, %v4988_v29  ;;  %v4986_v34 = vmax.f32 %v4744_v30, 0.0  ;;  %v4755_v35 = vadd.f32 %v5973_v31, %v8353_v21  ;;  %v4880_v36 = vadd.f32 %v6004_v32, %v8353_v21  ;;  %v4333_v37 = vpop.permute.xlu1 %4332  ;;  %v4528_v40 = vld [vmem:[#allocation3 + $0x1c8] sm:$0xff] }
 0x46c   :  { %4466 = vst.msk [vmem:[#allocation3 + $0x1d8] sm:$0xff] %vm4406_vm12, %v4333_v37  ;;  %v4746_v41 = vpop.f32.mrf.mxu0  ;;  %v4871_v42 = vpop.f32.mrf.mxu1  ;;  %v4563_v43 = vpack.c.bf16 %v4528_v40, %v4527_v39 }
 0x46d   :  { %5309 = vst.msk [vmem:[#allocation4 + $0x18] sm:$0xf] %vm5302_vm14, %v5870_v33  ;;  %v5868_v44 = vpack.c.bf16 %v4986_v34, %v4986_v34  ;;  %v4989_v45 = vmax.f32 %v4755_v35, 0.0  ;;  %v5020_v46 = vmax.f32 %v4880_v36, 0.0  ;;  %v4747_v47 = vadd.f32 %v8353_v21, %v4746_v41  ;;  %v3373_v55 = vpop.permute.xlu0 %3372  ;;  %v4497_v56 = vld [vmem:[#allocation3 + $0xd0] sm:$0xff] }
 0x46e   :  { %v4872_v48 = vadd.f32 %v8353_v21, %v4871_v42  ;;  %v6005_v49 = vpop.f32.mrf.mxu1  ;;  %6022 = vmatprep.mubr.msk.bf16.mxu1 %vm4589_vm13, %v4563_v43  ;;  %3537 = vst.msk [vmem:[#allocation3 + $0xe0] sm:$0xff] %vm3508_vm10, %v3373_v55 }
 0x46f   :  { %5307 = vst.msk [vmem:[#allocation4 + $0x10] sm:$0xf] %vm5302_vm14, %v5868_v44  ;;  %v5871_v50 = vpack.c.bf16 %v4989_v45, %v4989_v45  ;;  %v5902_v51 = vpack.c.bf16 %v5020_v46, %v5020_v46  ;;  %v4987_v52 = vmax.f32 %v4747_v47, 0.0  ;;  %v4883_v53 = vadd.f32 %v6005_v49, %v8353_v21  ;;  %v3375_v54 = vpop.permute.xlu1 %3374  ;;  %v4498_v57 = vld [vmem:[#allocation3 + $0xd8] sm:$0xff] }
 0x470   :  { %v5018_v58 = vmax.f32 %v4872_v48, 0.0  ;;  %3538 = vst.msk [vmem:[#allocation3 + $0xe8] sm:$0xff] %vm3508_vm10, %v3375_v54  ;;  %v4874_v59 = vpop.f32.mrf.mxu1  ;;  %v4548_v60 = vpack.c.bf16 %v4498_v57, %v4497_v56 }
 0x471   :  { %5310 = vst.msk [vmem:[#allocation4 + $0x1c] sm:$0xf] %vm5302_vm14, %v5871_v50  ;;  %5341 = vst.msk [vmem:[#allocation4 + $0x98] sm:$0xf] %vm5302_vm14, %v5902_v51  ;;  %v5869_v61 = vpack.c.bf16 %v4987_v52, %v4987_v52  ;;  %v5021_v62 = vmax.f32 %v4883_v53, 0.0  ;;  %v4875_v63 = vadd.f32 %v8353_v21, %v4874_v59  ;;  %v3437_v4 = vpop.permute.xlu0 %3436  ;;  %v4529_v5 = vld [vmem:[#allocation3 + $0x1d0] sm:$0xff] }
 0x472   :  { %v5900_v0 = vpack.c.bf16 %v5018_v58, %v5018_v58  ;;  %5991 = vmatmul.mubr.msk.bf16.gmra.mxu0 %vm4589_vm13, %v4548_v60  ;;  %3569 = vst.msk [vmem:[#allocation3 + $0x1e0] sm:$0xff] %vm3508_vm10, %v3437_v4 }
 0x473   :  { %5308 = vst.msk [vmem:[#allocation4 + $0x14] sm:$0xf] %vm5302_vm14, %v5869_v61  ;;  %v5903_v1 = vpack.c.bf16 %v5021_v62, %v5021_v62  ;;  %v5019_v2 = vmax.f32 %v4875_v63, 0.0  ;;  %v3439_v3 = vpop.permute.xlu1 %3438  ;;  %v4530_v6 = vld [vmem:[#allocation3 + $0x1d8] sm:$0xff] }
 0x474   :  { %5339 = vst.msk [vmem:[#allocation4 + $0x90] sm:$0xf] %vm5302_vm14, %v5900_v0  ;;  %v4564_v7 = vpack.c.bf16 %v4530_v6, %v4529_v5 }
 0x475   :  { %3570 = vst.msk [vmem:[#allocation3 + $0x1e8] sm:$0xff] %vm3508_vm10, %v3439_v3  ;;  %v5901_v8 = vpack.c.bf16 %v5019_v2, %v5019_v2  ;;  %v3377_v10 = vpop.permute.xlu0 %3376 }
 0x476   :  { %5342 = vst.msk [vmem:[#allocation4 + $0x9c] sm:$0xf] %vm5302_vm14, %v5903_v1  ;;  %6023 = vmatmul.mubr.msk.bf16.gmra.mxu1 %vm4589_vm13, %v4564_v7 }
 0x477   :  { %5340 = vst.msk [vmem:[#allocation4 + $0x94] sm:$0xf] %vm5302_vm14, %v5901_v8  ;;  %v3379_v9 = vpop.permute.xlu1 %3378 }
 0x478   :  { %3540 = vst.msk [vmem:[#allocation3 + $0xf8] sm:$0xff] %vm3508_vm10, %v3379_v9  ;;  %3539 = vst.msk [vmem:[#allocation3 + $0xf0] sm:$0xff] %vm3508_vm10, %v3377_v10 }
 0x479   :  { %v3441_v12 = vpop.permute.xlu0 %3440 }
 0x47a   :  { %3571 = vst.msk [vmem:[#allocation3 + $0x1f0] sm:$0xff] %vm3508_vm10, %v3441_v12 }
 0x47b   :  { %v3443_v11 = vpop.permute.xlu1 %3442 }
 0x47c   :  { %3572 = vst.msk [vmem:[#allocation3 + $0x1f8] sm:$0xff] %vm3508_vm10, %v3443_v11 }
 0x47d   :  { %v3822_v14 = vpop.permute.xlu0 %3821 }
 0x47e   :  { %3986 = vst.msk [vmem:[#allocation3 + $0xe0] sm:$0xff] %vm3957_vm11, %v3822_v14 }
 0x47f   :  { %v3824_v13 = vpop.permute.xlu1 %3823 }
 0x480   :  { %3987 = vst.msk [vmem:[#allocation3 + $0xe8] sm:$0xff] %vm3957_vm11, %v3824_v13 }
 0x481   :  { %v3886_v16 = vpop.permute.xlu0 %3885 }
 0x482   :  { %4018 = vst.msk [vmem:[#allocation3 + $0x1e0] sm:$0xff] %vm3957_vm11, %v3886_v16 }
 0x483   :  { %v3888_v15 = vpop.permute.xlu1 %3887 }
 0x484   :  { %4019 = vst.msk [vmem:[#allocation3 + $0x1e8] sm:$0xff] %vm3957_vm11, %v3888_v15 }
 0x485   :  { %v3826_v18 = vpop.permute.xlu0 %3825 }
 0x486   :  { %3988 = vst.msk [vmem:[#allocation3 + $0xf0] sm:$0xff] %vm3957_vm11, %v3826_v18 }
 0x487   :  { %v3828_v17 = vpop.permute.xlu1 %3827 }
 0x488   :  { %3989 = vst.msk [vmem:[#allocation3 + $0xf8] sm:$0xff] %vm3957_vm11, %v3828_v17 }
 0x489   :  { %v3890_v20 = vpop.permute.xlu0 %3889 }
 0x48a   :  { %4020 = vst.msk [vmem:[#allocation3 + $0x1f0] sm:$0xff] %vm3957_vm11, %v3890_v20 }
 0x48b   :  { %v3892_v19 = vpop.permute.xlu1 %3891 }
 0x48c   :  { %4021 = vst.msk [vmem:[#allocation3 + $0x1f8] sm:$0xff] %vm3957_vm11, %v3892_v19 }
 0x48d   :  { %v4271_v25 = vpop.permute.xlu0 %4270 }
 0x48e   :  { %v5976_v22 = vpop.f32.mrf.mxu0  ;;  %4435 = vst.msk [vmem:[#allocation3 + $0xe0] sm:$0xff] %vm4406_vm12, %v4271_v25 }
 0x48f   :  { %v4768_v23 = vadd.f32 %v5976_v22, %v8353_v21  ;;  %v4273_v24 = vpop.permute.xlu1 %4272 }
 0x490   :  { %4436 = vst.msk [vmem:[#allocation3 + $0xe8] sm:$0xff] %vm4406_vm12, %v4273_v24  ;;  %v4759_v26 = vpop.f32.mrf.mxu0 }
 0x491   :  { %v4992_v27 = vmax.f32 %v4768_v23, 0.0  ;;  %v4760_v28 = vadd.f32 %v8353_v21, %v4759_v26  ;;  %v4335_v36 = vpop.permute.xlu0 %4334 }
 0x492   :  { %v5977_v29 = vpop.f32.mrf.mxu0  ;;  %v6008_v30 = vpop.f32.mrf.mxu1  ;;  %4467 = vst.msk [vmem:[#allocation3 + $0x1e0] sm:$0xff] %vm4406_vm12, %v4335_v36 }
 0x493   :  { %v5874_v31 = vpack.c.bf16 %v4992_v27, %v4992_v27  ;;  %v4990_v32 = vmax.f32 %v4760_v28, 0.0  ;;  %v4771_v33 = vadd.f32 %v5977_v29, %v8353_v21  ;;  %v4896_v34 = vadd.f32 %v6008_v30, %v8353_v21  ;;  %v4337_v35 = vpop.permute.xlu1 %4336 }
 0x494   :  { %4468 = vst.msk [vmem:[#allocation3 + $0x1e8] sm:$0xff] %vm4406_vm12, %v4337_v35  ;;  %v4762_v37 = vpop.f32.mrf.mxu0  ;;  %v4887_v38 = vpop.f32.mrf.mxu1 }
 0x495   :  { %5313 = vst.msk [vmem:[#allocation4 + $0x28] sm:$0xf] %vm5302_vm14, %v5874_v31  ;;  %v5872_v39 = vpack.c.bf16 %v4990_v32, %v4990_v32  ;;  %v4993_v40 = vmax.f32 %v4771_v33, 0.0  ;;  %v5024_v41 = vmax.f32 %v4896_v34, 0.0  ;;  %v4763_v42 = vadd.f32 %v8353_v21, %v4762_v37  ;;  %v4275_v50 = vpop.permute.xlu0 %4274  ;;  %v4499_v51 = vld [vmem:[#allocation3 + $0xe0] sm:$0xff] }
 0x496   :  { %v4888_v43 = vadd.f32 %v8353_v21, %v4887_v38  ;;  %v6009_v44 = vpop.f32.mrf.mxu1  ;;  %4437 = vst.msk [vmem:[#allocation3 + $0xf0] sm:$0xff] %vm4406_vm12, %v4275_v50 }
 0x497   :  { %5311 = vst.msk [vmem:[#allocation4 + $0x20] sm:$0xf] %vm5302_vm14, %v5872_v39  ;;  %v5875_v45 = vpack.c.bf16 %v4993_v40, %v4993_v40  ;;  %v5906_v46 = vpack.c.bf16 %v5024_v41, %v5024_v41  ;;  %v4991_v47 = vmax.f32 %v4763_v42, 0.0  ;;  %v4899_v48 = vadd.f32 %v6009_v44, %v8353_v21  ;;  %v4277_v49 = vpop.permute.xlu1 %4276  ;;  %v4500_v52 = vld [vmem:[#allocation3 + $0xe8] sm:$0xff] }
 0x498   :  { %v5022_v53 = vmax.f32 %v4888_v43, 0.0  ;;  %4438 = vst.msk [vmem:[#allocation3 + $0xf8] sm:$0xff] %vm4406_vm12, %v4277_v49  ;;  %v4890_v54 = vpop.f32.mrf.mxu1  ;;  %v4549_v55 = vpack.c.bf16 %v4500_v52, %v4499_v51 }
 0x499   :  { %5314 = vst.msk [vmem:[#allocation4 + $0x2c] sm:$0xf] %vm5302_vm14, %v5875_v45  ;;  %5345 = vst.msk [vmem:[#allocation4 + $0xa8] sm:$0xf] %vm5302_vm14, %v5906_v46  ;;  %v5873_v56 = vpack.c.bf16 %v4991_v47, %v4991_v47  ;;  %v5025_v57 = vmax.f32 %v4899_v48, 0.0  ;;  %v4891_v58 = vadd.f32 %v8353_v21, %v4890_v54  ;;  %v4339_v63 = vpop.permute.xlu0 %4338  ;;  %v4531_v0 = vld [vmem:[#allocation3 + $0x1e0] sm:$0xff] }
 0x49a   :  { %v5904_v59 = vpack.c.bf16 %v5022_v53, %v5022_v53  ;;  %5994 = vmatprep.mubr.msk.bf16.mxu0 %vm4589_vm13, %v4549_v55  ;;  %4469 = vst.msk [vmem:[#allocation3 + $0x1f0] sm:$0xff] %vm4406_vm12, %v4339_v63 }
 0x49b   :  { %5312 = vst.msk [vmem:[#allocation4 + $0x24] sm:$0xf] %vm5302_vm14, %v5873_v56  ;;  %v5907_v60 = vpack.c.bf16 %v5025_v57, %v5025_v57  ;;  %v5023_v61 = vmax.f32 %v4891_v58, 0.0  ;;  %v4341_v62 = vpop.permute.xlu1 %4340  ;;  %v4532_v1 = vld [vmem:[#allocation3 + $0x1e8] sm:$0xff] }
 0x49c   :  { %5343 = vst.msk [vmem:[#allocation4 + $0xa0] sm:$0xf] %vm5302_vm14, %v5904_v59  ;;  %v4565_v2 = vpack.c.bf16 %v4532_v1, %v4531_v0 }
 0x49d   :  { %4470 = vst.msk [vmem:[#allocation3 + $0x1f8] sm:$0xff] %vm4406_vm12, %v4341_v62  ;;  %v5905_v3 = vpack.c.bf16 %v5023_v61, %v5023_v61  ;;  %v4501_v4 = vld [vmem:[#allocation3 + $0xf0] sm:$0xff] }
 0x49e   :  { %5346 = vst.msk [vmem:[#allocation4 + $0xac] sm:$0xf] %vm5302_vm14, %v5907_v60  ;;  %6026 = vmatprep.mubr.msk.bf16.mxu1 %vm4589_vm13, %v4565_v2 }
 0x49f   :  { %5344 = vst.msk [vmem:[#allocation4 + $0xa4] sm:$0xf] %vm5302_vm14, %v5905_v3  ;;  %v4502_v5 = vld [vmem:[#allocation3 + $0xf8] sm:$0xff] }
 0x4a0   :  { %v4550_v6 = vpack.c.bf16 %v4502_v5, %v4501_v4 }
 0x4a1   :  { %v4533_v7 = vld [vmem:[#allocation3 + $0x1f0] sm:$0xff] }
 0x4a2   :  { %5995 = vmatmul.mubr.msk.bf16.gmra.mxu0 %vm4589_vm13, %v4550_v6 }
 0x4a4   :  { %v4534_v8 = vld [vmem:[#allocation3 + $0x1f8] sm:$0xff] }
 0x4a5   :  { %v4566_v9 = vpack.c.bf16 %v4534_v8, %v4533_v7 }
 0x4a7   :  { %6027 = vmatmul.mubr.msk.bf16.gmra.mxu1 %vm4589_vm13, %v4566_v9 }
 0x4b6   :  { %v5980_v10 = vpop.f32.mrf.mxu0 }
 0x4b7   :  { %v4784_v11 = vadd.f32 %v5980_v10, %v8353_v21 }
 0x4b8   :  { %v4775_v12 = vpop.f32.mrf.mxu0 }
 0x4b9   :  { %v4996_v13 = vmax.f32 %v4784_v11, 0.0  ;;  %v4776_v14 = vadd.f32 %v8353_v21, %v4775_v12 }
 0x4ba   :  { %v5981_v15 = vpop.f32.mrf.mxu0  ;;  %v6012_v16 = vpop.f32.mrf.mxu1 }
 0x4bb   :  { %v5878_v17 = vpack.c.bf16 %v4996_v13, %v4996_v13  ;;  %v4994_v18 = vmax.f32 %v4776_v14, 0.0  ;;  %v4787_v19 = vadd.f32 %v5981_v15, %v8353_v21  ;;  %v4912_v20 = vadd.f32 %v6012_v16, %v8353_v21 }
 0x4bc   :  { %v4778_v22 = vpop.f32.mrf.mxu0  ;;  %v4903_v23 = vpop.f32.mrf.mxu1 }
 0x4bd   :  { %5317 = vst.msk [vmem:[#allocation4 + $0x38] sm:$0xf] %vm5302_vm14, %v5878_v17  ;;  %v5876_v24 = vpack.c.bf16 %v4994_v18, %v4994_v18  ;;  %v4997_v25 = vmax.f32 %v4787_v19, 0.0  ;;  %v5028_v26 = vmax.f32 %v4912_v20, 0.0  ;;  %v4779_v27 = vadd.f32 %v8353_v21, %v4778_v22 }
 0x4be   :  { %v4904_v28 = vadd.f32 %v8353_v21, %v4903_v23  ;;  %v6013_v29 = vpop.f32.mrf.mxu1 }
 0x4bf   :  { %5315 = vst.msk [vmem:[#allocation4 + $0x30] sm:$0xf] %vm5302_vm14, %v5876_v24  ;;  %v5879_v30 = vpack.c.bf16 %v4997_v25, %v4997_v25  ;;  %v5910_v31 = vpack.c.bf16 %v5028_v26, %v5028_v26  ;;  %v4995_v32 = vmax.f32 %v4779_v27, 0.0  ;;  %v4915_v33 = vadd.f32 %v6013_v29, %v8353_v21 }
 0x4c0   :  { %v5026_v34 = vmax.f32 %v4904_v28, 0.0  ;;  %v4906_v35 = vpop.f32.mrf.mxu1 }
 0x4c1   :  { %5318 = vst.msk [vmem:[#allocation4 + $0x3c] sm:$0xf] %vm5302_vm14, %v5879_v30  ;;  %5349 = vst.msk [vmem:[#allocation4 + $0xb8] sm:$0xf] %vm5302_vm14, %v5910_v31  ;;  %v5877_v36 = vpack.c.bf16 %v4995_v32, %v4995_v32  ;;  %v5029_v37 = vmax.f32 %v4915_v33, 0.0  ;;  %v4907_v38 = vadd.f32 %v8353_v21, %v4906_v35 }
 0x4c2   :  { %v5908_v39 = vpack.c.bf16 %v5026_v34, %v5026_v34 }
 0x4c3   :  { %5316 = vst.msk [vmem:[#allocation4 + $0x34] sm:$0xf] %vm5302_vm14, %v5877_v36  ;;  %v5911_v40 = vpack.c.bf16 %v5029_v37, %v5029_v37  ;;  %v5027_v41 = vmax.f32 %v4907_v38, 0.0 }
 0x4c4   :  { %5347 = vst.msk [vmem:[#allocation4 + $0xb0] sm:$0xf] %vm5302_vm14, %v5908_v39 }
 0x4c5   :  { %5350 = vst.msk [vmem:[#allocation4 + $0xbc] sm:$0xf] %vm5302_vm14, %v5911_v40  ;;  %v5909_v42 = vpack.c.bf16 %v5027_v41, %v5027_v41 }
 0x4c7   :  { %5348 = vst.msk [vmem:[#allocation4 + $0xb4] sm:$0xf] %vm5302_vm14, %v5909_v42 }
 0x4de   :  { %v5984_v43 = vpop.f32.mrf.mxu0 }
 0x4df   :  { %v4800_v44 = vadd.f32 %v5984_v43, %v8353_v21 }
 0x4e0   :  { %v4791_v45 = vpop.f32.mrf.mxu0 }
 0x4e1   :  { %v5000_v46 = vmax.f32 %v4800_v44, 0.0  ;;  %v4792_v47 = vadd.f32 %v8353_v21, %v4791_v45 }
 0x4e2   :  { %v5985_v48 = vpop.f32.mrf.mxu0  ;;  %v6016_v49 = vpop.f32.mrf.mxu1 }
 0x4e3   :  { %v5882_v50 = vpack.c.bf16 %v5000_v46, %v5000_v46  ;;  %v4998_v51 = vmax.f32 %v4792_v47, 0.0  ;;  %v4803_v52 = vadd.f32 %v5985_v48, %v8353_v21  ;;  %v4928_v53 = vadd.f32 %v6016_v49, %v8353_v21 }
 0x4e4   :  { %v4794_v54 = vpop.f32.mrf.mxu0  ;;  %v4919_v55 = vpop.f32.mrf.mxu1 }
 0x4e5   :  { %5321 = vst.msk [vmem:[#allocation4 + $0x48] sm:$0xf] %vm5302_vm14, %v5882_v50  ;;  %v5880_v56 = vpack.c.bf16 %v4998_v51, %v4998_v51  ;;  %v5001_v57 = vmax.f32 %v4803_v52, 0.0  ;;  %v5032_v58 = vmax.f32 %v4928_v53, 0.0  ;;  %v4795_v59 = vadd.f32 %v8353_v21, %v4794_v54 }
 0x4e6   :  { %v4920_v60 = vadd.f32 %v8353_v21, %v4919_v55  ;;  %v6017_v61 = vpop.f32.mrf.mxu1 }
 0x4e7   :  { %5319 = vst.msk [vmem:[#allocation4 + $0x40] sm:$0xf] %vm5302_vm14, %v5880_v56  ;;  %v5883_v62 = vpack.c.bf16 %v5001_v57, %v5001_v57  ;;  %v5914_v63 = vpack.c.bf16 %v5032_v58, %v5032_v58  ;;  %v4999_v0 = vmax.f32 %v4795_v59, 0.0  ;;  %v4931_v1 = vadd.f32 %v6017_v61, %v8353_v21 }
 0x4e8   :  { %v5030_v2 = vmax.f32 %v4920_v60, 0.0  ;;  %v4922_v3 = vpop.f32.mrf.mxu1 }
 0x4e9   :  { %5322 = vst.msk [vmem:[#allocation4 + $0x4c] sm:$0xf] %vm5302_vm14, %v5883_v62  ;;  %5353 = vst.msk [vmem:[#allocation4 + $0xc8] sm:$0xf] %vm5302_vm14, %v5914_v63  ;;  %v5881_v4 = vpack.c.bf16 %v4999_v0, %v4999_v0  ;;  %v5033_v5 = vmax.f32 %v4931_v1, 0.0  ;;  %v4923_v6 = vadd.f32 %v8353_v21, %v4922_v3 }
 0x4ea   :  { %v5912_v7 = vpack.c.bf16 %v5030_v2, %v5030_v2 }
 0x4eb   :  { %5320 = vst.msk [vmem:[#allocation4 + $0x44] sm:$0xf] %vm5302_vm14, %v5881_v4  ;;  %v5915_v8 = vpack.c.bf16 %v5033_v5, %v5033_v5  ;;  %v5031_v9 = vmax.f32 %v4923_v6, 0.0 }
 0x4ec   :  { %5351 = vst.msk [vmem:[#allocation4 + $0xc0] sm:$0xf] %vm5302_vm14, %v5912_v7 }
 0x4ed   :  { %5354 = vst.msk [vmem:[#allocation4 + $0xcc] sm:$0xf] %vm5302_vm14, %v5915_v8  ;;  %v5913_v10 = vpack.c.bf16 %v5031_v9, %v5031_v9 }
 0x4ef   :  { %5352 = vst.msk [vmem:[#allocation4 + $0xc4] sm:$0xf] %vm5302_vm14, %v5913_v10 }
 0x506   :  { %v5988_v11 = vpop.f32.mrf.mxu0 }
 0x507   :  { %v4816_v12 = vadd.f32 %v5988_v11, %v8353_v21 }
 0x508   :  { %v4807_v13 = vpop.f32.mrf.mxu0 }
 0x509   :  { %v5004_v14 = vmax.f32 %v4816_v12, 0.0  ;;  %v4808_v15 = vadd.f32 %v8353_v21, %v4807_v13 }
 0x50a   :  { %v5989_v16 = vpop.f32.mrf.mxu0  ;;  %v6020_v17 = vpop.f32.mrf.mxu1 }
 0x50b   :  { %v5886_v18 = vpack.c.bf16 %v5004_v14, %v5004_v14  ;;  %v5002_v19 = vmax.f32 %v4808_v15, 0.0  ;;  %v4819_v20 = vadd.f32 %v5989_v16, %v8353_v21  ;;  %v4944_v22 = vadd.f32 %v6020_v17, %v8353_v21 }
 0x50c   :  { %v4810_v23 = vpop.f32.mrf.mxu0  ;;  %v4935_v24 = vpop.f32.mrf.mxu1 }
 0x50d   :  { %5325 = vst.msk [vmem:[#allocation4 + $0x58] sm:$0xf] %vm5302_vm14, %v5886_v18  ;;  %v5884_v25 = vpack.c.bf16 %v5002_v19, %v5002_v19  ;;  %v5005_v26 = vmax.f32 %v4819_v20, 0.0  ;;  %v5036_v27 = vmax.f32 %v4944_v22, 0.0  ;;  %v4811_v28 = vadd.f32 %v8353_v21, %v4810_v23 }
 0x50e   :  { %v4936_v29 = vadd.f32 %v8353_v21, %v4935_v24  ;;  %v6021_v30 = vpop.f32.mrf.mxu1 }
 0x50f   :  { %5323 = vst.msk [vmem:[#allocation4 + $0x50] sm:$0xf] %vm5302_vm14, %v5884_v25  ;;  %v5887_v31 = vpack.c.bf16 %v5005_v26, %v5005_v26  ;;  %v5918_v32 = vpack.c.bf16 %v5036_v27, %v5036_v27  ;;  %v5003_v33 = vmax.f32 %v4811_v28, 0.0  ;;  %v4947_v34 = vadd.f32 %v6021_v30, %v8353_v21 }
 0x510   :  { %v5034_v35 = vmax.f32 %v4936_v29, 0.0  ;;  %v4938_v36 = vpop.f32.mrf.mxu1 }
 0x511   :  { %5326 = vst.msk [vmem:[#allocation4 + $0x5c] sm:$0xf] %vm5302_vm14, %v5887_v31  ;;  %5357 = vst.msk [vmem:[#allocation4 + $0xd8] sm:$0xf] %vm5302_vm14, %v5918_v32  ;;  %v5885_v37 = vpack.c.bf16 %v5003_v33, %v5003_v33  ;;  %v5037_v38 = vmax.f32 %v4947_v34, 0.0  ;;  %v4939_v39 = vadd.f32 %v8353_v21, %v4938_v36 }
 0x512   :  { %v5916_v40 = vpack.c.bf16 %v5034_v35, %v5034_v35 }
 0x513   :  { %5324 = vst.msk [vmem:[#allocation4 + $0x54] sm:$0xf] %vm5302_vm14, %v5885_v37  ;;  %v5919_v41 = vpack.c.bf16 %v5037_v38, %v5037_v38  ;;  %v5035_v42 = vmax.f32 %v4939_v39, 0.0 }
 0x514   :  { %5355 = vst.msk [vmem:[#allocation4 + $0xd0] sm:$0xf] %vm5302_vm14, %v5916_v40 }
 0x515   :  { %5358 = vst.msk [vmem:[#allocation4 + $0xdc] sm:$0xf] %vm5302_vm14, %v5919_v41  ;;  %v5917_v43 = vpack.c.bf16 %v5035_v42, %v5035_v42 }
 0x517   :  { %5356 = vst.msk [vmem:[#allocation4 + $0xd4] sm:$0xf] %vm5302_vm14, %v5917_v43 }
 0x532   :  { %v5992_v44 = vpop.f32.mrf.mxu0 }
 0x533   :  { %v4832_v45 = vadd.f32 %v5992_v44, %v8353_v21 }
 0x534   :  { %v4823_v46 = vpop.f32.mrf.mxu0 }
 0x535   :  { %v5008_v47 = vmax.f32 %v4832_v45, 0.0  ;;  %v4824_v48 = vadd.f32 %v8353_v21, %v4823_v46 }
 0x536   :  { %v5993_v49 = vpop.f32.mrf.mxu0  ;;  %v6024_v50 = vpop.f32.mrf.mxu1 }
 0x537   :  { %v5890_v51 = vpack.c.bf16 %v5008_v47, %v5008_v47  ;;  %v5006_v52 = vmax.f32 %v4824_v48, 0.0  ;;  %v4835_v53 = vadd.f32 %v5993_v49, %v8353_v21  ;;  %v4960_v54 = vadd.f32 %v6024_v50, %v8353_v21 }
 0x538   :  { %v4826_v55 = vpop.f32.mrf.mxu0  ;;  %v4951_v56 = vpop.f32.mrf.mxu1 }
 0x539   :  { %5329 = vst.msk [vmem:[#allocation4 + $0x68] sm:$0xf] %vm5302_vm14, %v5890_v51  ;;  %v5888_v57 = vpack.c.bf16 %v5006_v52, %v5006_v52  ;;  %v5009_v58 = vmax.f32 %v4835_v53, 0.0  ;;  %v5040_v59 = vmax.f32 %v4960_v54, 0.0  ;;  %v4827_v60 = vadd.f32 %v8353_v21, %v4826_v55 }
 0x53a   :  { %v4952_v61 = vadd.f32 %v8353_v21, %v4951_v56  ;;  %v6025_v62 = vpop.f32.mrf.mxu1 }
 0x53b   :  { %5327 = vst.msk [vmem:[#allocation4 + $0x60] sm:$0xf] %vm5302_vm14, %v5888_v57  ;;  %v5891_v63 = vpack.c.bf16 %v5009_v58, %v5009_v58  ;;  %v5922_v0 = vpack.c.bf16 %v5040_v59, %v5040_v59  ;;  %v5007_v1 = vmax.f32 %v4827_v60, 0.0  ;;  %v4963_v2 = vadd.f32 %v6025_v62, %v8353_v21 }
 0x53c   :  { %v5038_v3 = vmax.f32 %v4952_v61, 0.0  ;;  %v4954_v4 = vpop.f32.mrf.mxu1 }
 0x53d   :  { %5330 = vst.msk [vmem:[#allocation4 + $0x6c] sm:$0xf] %vm5302_vm14, %v5891_v63  ;;  %5361 = vst.msk [vmem:[#allocation4 + $0xe8] sm:$0xf] %vm5302_vm14, %v5922_v0  ;;  %v5889_v5 = vpack.c.bf16 %v5007_v1, %v5007_v1  ;;  %v5041_v6 = vmax.f32 %v4963_v2, 0.0  ;;  %v4955_v7 = vadd.f32 %v8353_v21, %v4954_v4 }
 0x53e   :  { %v5920_v8 = vpack.c.bf16 %v5038_v3, %v5038_v3 }
 0x53f   :  { %5328 = vst.msk [vmem:[#allocation4 + $0x64] sm:$0xf] %vm5302_vm14, %v5889_v5  ;;  %v5923_v9 = vpack.c.bf16 %v5041_v6, %v5041_v6  ;;  %v5039_v10 = vmax.f32 %v4955_v7, 0.0 }
 0x540   :  { %5359 = vst.msk [vmem:[#allocation4 + $0xe0] sm:$0xf] %vm5302_vm14, %v5920_v8 }
 0x541   :  { %5362 = vst.msk [vmem:[#allocation4 + $0xec] sm:$0xf] %vm5302_vm14, %v5923_v9  ;;  %v5921_v11 = vpack.c.bf16 %v5039_v10, %v5039_v10 }
 0x543   :  { %5360 = vst.msk [vmem:[#allocation4 + $0xe4] sm:$0xf] %vm5302_vm14, %v5921_v11 }
 0x562   :  { %v5996_v12 = vpop.f32.mrf.mxu0 }
 0x563   :  { %v4848_v13 = vadd.f32 %v5996_v12, %v8353_v21 }
 0x564   :  { %v4839_v14 = vpop.f32.mrf.mxu0 }
 0x565   :  { %v5012_v15 = vmax.f32 %v4848_v13, 0.0  ;;  %v4840_v16 = vadd.f32 %v8353_v21, %v4839_v14 }
 0x566   :  { %v5997_v17 = vpop.f32.mrf.mxu0 }
 0x567   :  { %v6028_v18 = vpop.f32.mrf.mxu1  ;;  %v5894_v19 = vpack.c.bf16 %v5012_v15, %v5012_v15  ;;  %v5010_v20 = vmax.f32 %v4840_v16, 0.0  ;;  %v4851_v22 = vadd.f32 %v5997_v17, %v8353_v21 }
 0x568   :  { %v4976_v23 = vadd.f32 %v6028_v18, %v8353_v21  ;;  %v4842_v24 = vpop.f32.mrf.mxu0 }
 0x569   :  { %v4967_v25 = vpop.f32.mrf.mxu1  ;;  %5333 = vst.msk [vmem:[#allocation4 + $0x78] sm:$0xf] %vm5302_vm14, %v5894_v19  ;;  %v5892_v26 = vpack.c.bf16 %v5010_v20, %v5010_v20  ;;  %v5013_v27 = vmax.f32 %v4851_v22, 0.0  ;;  %v4843_v29 = vadd.f32 %v8353_v21, %v4842_v24 }
 0x56a   :  { %v5044_v28 = vmax.f32 %v4976_v23, 0.0  ;;  %v4968_v30 = vadd.f32 %v8353_v21, %v4967_v25 }
 0x56b   :  { %v6029_v31 = vpop.f32.mrf.mxu1  ;;  %5331 = vst.msk [vmem:[#allocation4 + $0x70] sm:$0xf] %vm5302_vm14, %v5892_v26  ;;  %v5895_v32 = vpack.c.bf16 %v5013_v27, %v5013_v27  ;;  %v5011_v34 = vmax.f32 %v4843_v29, 0.0 }
 0x56c   :  { %v5926_v33 = vpack.c.bf16 %v5044_v28, %v5044_v28  ;;  %v4979_v35 = vadd.f32 %v6029_v31, %v8353_v21  ;;  %v5042_v36 = vmax.f32 %v4968_v30, 0.0 }
 0x56d   :  { %v4970_v37 = vpop.f32.mrf.mxu1  ;;  %5334 = vst.msk [vmem:[#allocation4 + $0x7c] sm:$0xf] %vm5302_vm14, %v5895_v32  ;;  %v5893_v38 = vpack.c.bf16 %v5011_v34, %v5011_v34 }
 0x56e   :  { %5365 = vst.msk [vmem:[#allocation4 + $0xf8] sm:$0xf] %vm5302_vm14, %v5926_v33  ;;  %v5045_v39 = vmax.f32 %v4979_v35, 0.0  ;;  %v4971_v40 = vadd.f32 %v8353_v21, %v4970_v37  ;;  %v5924_v41 = vpack.c.bf16 %v5042_v36, %v5042_v36 }
 0x56f   :  { %5332 = vst.msk [vmem:[#allocation4 + $0x74] sm:$0xf] %vm5302_vm14, %v5893_v38 }
 0x570   :  { %v5927_v42 = vpack.c.bf16 %v5045_v39, %v5045_v39  ;;  %v5043_v43 = vmax.f32 %v4971_v40, 0.0  ;;  %5363 = vst.msk [vmem:[#allocation4 + $0xf0] sm:$0xf] %vm5302_vm14, %v5924_v41 }
 0x572   :  { %5366 = vst.msk [vmem:[#allocation4 + $0xfc] sm:$0xf] %vm5302_vm14, %v5927_v42  ;;  %v5925_v44 = vpack.c.bf16 %v5043_v43, %v5043_v43 }
 0x574   :  { %5364 = vst.msk [vmem:[#allocation4 + $0xf4] sm:$0xf] %vm5302_vm14, %v5925_v44 }
 0x575   :  { %6060 = shalt.err (!%p6057_p4)
}
 0x576   :  { %s6082_s12 = smov 64   ;;  %s6083_s14 = smov 4  }
 0x577   :  { %5378 = dma.vmem_to_hbm [thread:$0]  %s5373_s11, 4096, %s8549_s3, [#allocation5], %s6082_s12, %s6082_s12, %s6083_s14  }
 0x578   :  { %6069 = dma.done.wait [#allocation5], 4096  }
 0x579   :  { %6070 = vsyncadd [#allocation5], 4294963200 }
 0x57a   :  { %5382 = vsyncpa [#allocation5], 1 }

</bundles_post_ra>
